<compile_context>
chip_gen: v7x
topology: tpu7x:2x2x1
jax: 0.10.0
libtpu: 0.0.40
codegen_flags: <defaults>
</compile_context>

<pallas_src>
import functools
import math

import numpy as np
import jax
import jax.numpy as jnp
from jax import lax
from jax.experimental import pallas as pl
from jax.experimental.pallas import tpu as pltpu


# Tap order matches the weight reshape below: t = ki*3 + kj, offset (ki-1, kj-1).
_TAP_OFFSETS = tuple((ki - 1, kj - 1) for ki in range(3) for kj in range(3))


# ----------------------------------------------------------------------------
# Host-side constant builders
# ----------------------------------------------------------------------------
def _downsample_matrix(n: int) -> np.ndarray:
    """(n//2, n): blur([1,2,1]/4 with replication pad) then bicubic x0.5
    (align_corners=False, a=-0.75) along one axis.  The 2-D DownSample is the
    separable (kron) product of this matrix over H and W."""
    smooth = np.zeros((n, n), np.float32)
    for i in range(n):
        for d, wgt in ((-1, 0.25), (0, 0.5), (1, 0.25)):
            smooth[i, min(max(i + d, 0), n - 1)] += wgt
    # bicubic, a=-0.75, scale 2, align_corners=False -> src = 2*i + 0.5, frac 0.5
    coeffs = ((-1, -0.09375), (0, 0.59375), (1, 0.59375), (2, -0.09375))
    interp = np.zeros((n // 2, n), np.float32)
    for i in range(n // 2):
        for d, wgt in coeffs:
            interp[i, min(max(2 * i + d, 0), n - 1)] += wgt
    return (interp @ smooth).astype(np.float32)


def _choose_packing(batch: int, hw: int, hw2: int):
    """Images packed per grid step (G) and number of grid steps (NB).

    Keeps the lane axis >=128 wide where possible and prefers NB >= 2 so v7x
    can split the parallel grid axis across its two TensorCores."""
    g_lane = max(1, -(-128 // hw))            # G for a >=128-lane conv axis
    g = min(max(1, -(-128 // hw2)), batch)    # G for a lane-dense output store
    g = max(g, 1)
    while g > g_lane and -(-batch // g) < 2:  # prefer >= 2 grid steps
        g = max(g_lane, (g + 1) // 2)
    return g, -(-batch // g)


# ----------------------------------------------------------------------------
# The fused DiscriminatorBlock kernel (one grid step = G packed images)
# ----------------------------------------------------------------------------
def _disc_block_kernel(x_ref, idx_ref, w1_ref, b1_ref, w2_ref, b2_ref,
                       wr_ref, br_ref, kdt_ref, o_ref, *,
                       taps, H, W, HW, G, Cin, neg_slope,
                       accumulate_taps, mm_dtype):
    mm_precision = (lax.Precision.HIGHEST if mm_dtype == jnp.float32
                    else lax.Precision.DEFAULT)

    def mm(a, b):
        return jnp.dot(a, b, precision=mm_precision,
                       preferred_element_type=jnp.float32)

    x = x_ref[0]                                   # (Cin, n) f32, n = G*H*W
    ph = idx_ref[0:1, :]                           # (1, n) int32 pixel row
    pw = idx_ref[1:2, :]                           # (1, n) int32 pixel col

    # 9 border masks (1, n) f32, built in-register (cheap VPU compares).
    masks = []
    for di, dj, _ in taps:
        if di == 0 and dj == 0:
            masks.append(None)                     # centre tap: always valid
        else:
            ok = ((ph >= -di) & (ph <= (H - 1) - di)
                  & (pw >= -dj) & (pw <= (W - 1) - dj))
            masks.append(ok.astype(jnp.float32))

    def conv3x3(inp, w_ref, b_ref):
        # in-register im2col: 9 lane rotations + border masks.
        taps_v = []
        for t, (_di, _dj, s) in enumerate(taps):
            shifted = pltpu.roll(inp, s, axis=1) if s else inp
            tap = shifted if masks[t] is None else shifted * masks[t]
            taps_v.append(tap.astype(mm_dtype))
        if accumulate_taps:
            # Large-Cin path: 9 accumulated dots, no 9*Cin*n im2col buffer.
            w = w_ref[...]
            acc = mm(w[:, 0:Cin], taps_v[0])
            for t in range(1, 9):
                acc = acc + mm(w[:, t * Cin:(t + 1) * Cin], taps_v[t])
        else:
            # Small-Cin path: one dot with K = 9*Cin keeps the MXU better fed.
            acc = mm(w_ref[...], jnp.concatenate(taps_v, axis=0))
        return acc + b_ref[...]

    lrelu = lambda v: jnp.maximum(v, neg_slope * v)        # LeakyReLU(0.2)

    y = lrelu(conv3x3(x, w1_ref, b1_ref))                  # (Cin, n)
    y = lrelu(conv3x3(y, w2_ref, b2_ref))                  # (Cout, n)

    # Residual 1x1 conv folded before the (linear) downsample:
    #   out = down(y + wr@x)/sqrt(2) + br/sqrt(2)
    # (kdt and br were pre-scaled by 1/sqrt(2) on the host).
    z = (y + mm(wr_ref[...], x.astype(mm_dtype))).astype(mm_dtype)   # (Cout, n)

    kdt = kdt_ref[...]                                     # (HW, HW2) per image
    parts = [mm(z[:, g * HW:(g + 1) * HW], kdt) for g in range(G)]
    z_dn = parts[0] if G == 1 else jnp.concatenate(parts, axis=1)
    o_ref[0] = (z_dn + br_ref[...]).astype(o_ref.dtype)


# ----------------------------------------------------------------------------
# Wrapper: parameter prep, packing, pallas_call
# ----------------------------------------------------------------------------
def discriminator_block(params, x, *, matmul_dtype=jnp.float32):
    """Forward of DiscriminatorBlock.

    params: w1 (Cin,Cin,3,3), b1 (Cin,), w2 (Cout,Cin,3,3), b2 (Cout,),
            wr (Cout,Cin,1,1), br (Cout,)  -- raw (un-equalized) weights.
    x: (B, Cin, H, W) float32 -> (B, Cout, H//2, W//2) float32.
    matmul_dtype: jnp.float32 (exact) or jnp.bfloat16 (v6e/v7x MXU-native
    matmul inputs; element-wise math and accumulation stay f32)."""
    B, Cin, H, W = x.shape
    Cout = params["w2"].shape[0]
    assert H % 2 == 0 and W % 2 == 0
    H2, W2 = H // 2, W // 2
    HW, HW2 = H * W, H2 * W2
    if HW > 64 * 64:
        # TODO(synk): separable DH/DW downsample for large spatial sizes.
        raise NotImplementedError("dense per-image downsample capped at 64x64")

    G, NB = _choose_packing(B, HW, HW2)
    Bp = NB * G
    n = G * HW

    # Equalized-lr scales folded into the weights; 1/sqrt(2) output scale
    # folded into the downsample matrix and the residual bias.
    c3 = 1.0 / math.sqrt(9 * Cin)
    c1 = 1.0 / math.sqrt(Cin)
    s2 = 1.0 / math.sqrt(2.0)
    w1m = (params["w1"] * c3).transpose(0, 2, 3, 1).reshape(Cin, 9 * Cin)
    w2m = (params["w2"] * c3).transpose(0, 2, 3, 1).reshape(Cout, 9 * Cin)
    wrm = (params["wr"] * c1).reshape(Cout, Cin)
    w1m, w2m, wrm = (w1m.astype(matmul_dtype), w2m.astype(matmul_dtype),
                     wrm.astype(matmul_dtype))
    b1c = params["b1"].reshape(Cin, 1).astype(jnp.float32)
    b2c = params["b2"].reshape(Cout, 1).astype(jnp.float32)
    brc = (params["br"] * s2).reshape(Cout, 1).astype(jnp.float32)

    # Per-image blur + bicubic /2 matrix (shared by both branches, pre-scaled).
    kdt = np.kron(_downsample_matrix(H), _downsample_matrix(W)).T * s2  # (HW,HW2)
    kdt = jnp.asarray(kdt, dtype=matmul_dtype)

    # Per-lane pixel coordinates (row, col); border masks are built in-kernel.
    p = np.arange(n) % HW
    idx = jnp.asarray(np.stack([p // W, p % W]).astype(np.int32))       # (2, n)

    # Lane shifts for the 9 conv taps.  pltpu.roll follows the jnp.roll
    # convention (out[i] = in[i - shift]); tap (di, dj) reads in[i + di*W + dj],
    # hence shift = -(di*W + dj) mod n.  Pinned statically (no runtime probe).
    taps = tuple((di, dj, (-(di * W + dj)) % n) for di, dj in _TAP_OFFSETS)

    # Pack G images along the lane axis; zero-pad the batch if needed.
    xp = x.astype(jnp.float32)
    if Bp != B:
        xp = jnp.concatenate(
            [xp, jnp.zeros((Bp - B, Cin, H, W), jnp.float32)], axis=0)
    xp = xp.reshape(NB, G, Cin, HW).transpose(0, 2, 1, 3).reshape(NB, Cin, n)

    kernel = functools.partial(
        _disc_block_kernel, taps=taps, H=H, W=W, HW=HW, G=G, Cin=Cin,
        neg_slope=0.2, accumulate_taps=(Cin >= 128), mm_dtype=matmul_dtype)

    # Constants are whole-array, single-buffered VMEM residents; only the
    # activations / output are pipelined (double-buffered) over the grid.
    vmem_const = lambda: pl.BlockSpec(memory_space=pltpu.MemorySpace.VMEM)
    in_specs = ([pl.BlockSpec((1, Cin, n), lambda i: (i, 0, 0))]
                + [vmem_const() for _ in range(8)])

    out = pl.pallas_call(
        kernel,
        out_shape=jax.ShapeDtypeStruct((NB, Cout, G * HW2), jnp.float32),
        grid=(NB,),
        in_specs=in_specs,
        out_specs=pl.BlockSpec((1, Cout, G * HW2), lambda i: (i, 0, 0)),
        compiler_params=pltpu.CompilerParams(
            dimension_semantics=("parallel",),
            vmem_limit_bytes=64 * 1024 * 1024),
    )(xp, idx, w1m, b1c, w2m, b2c, wrm, brc, kdt)

    # Unpack: (NB, Cout, G*HW2) -> (B, Cout, H2, W2)
    out = (out.reshape(NB, Cout, G, HW2).transpose(0, 2, 1, 3)
              .reshape(Bp, Cout, H2, W2))
    return out[:B]


# ----------------------------------------------------------------------------
# Pure-JAX reference (independent derivation of the downsample coefficients)
# ----------------------------------------------------------------------------
def _cubic_kernel(t: float, a: float = -0.75) -> float:
    t = abs(float(t))
    if t <= 1.0:
        return (a + 2.0) * t ** 3 - (a + 3.0) * t ** 2 + 1.0
    if t < 2.0:
        return a * t ** 3 - 5.0 * a * t ** 2 + 8.0 * a * t - 4.0 * a
    return 0.0


def _reference_bicubic_half(size: int) -> jnp.ndarray:
    """(size//2, size) PyTorch bicubic x0.5 (align_corners=False) matrix,
    derived from the cubic-convolution formula."""
    m = np.zeros((size // 2, size), np.float64)
    for i in range(size // 2):
        src = (i + 0.5) * 2.0 - 0.5
        j0 = int(np.floor(src))
        for j in range(j0 - 1, j0 + 3):
            m[i, min(max(j, 0), size - 1)] += _cubic_kernel(src - j)
    return jnp.asarray(m, jnp.float32)


def _reference_downsample(v):
    b, c, h, w = v.shape
    vp = jnp.pad(v, ((0, 0), (0, 0), (1, 1), (1, 1)), mode="edge")
    blur = jnp.asarray([[1., 2., 1.], [2., 4., 2.], [1., 2., 1.]],
                       jnp.float32) / 16.0
    vb = lax.conv_general_dilated(
        vp.reshape(b * c, 1, h + 2, w + 2), blur[None, None], (1, 1), "VALID",
        dimension_numbers=("NCHW", "OIHW", "NCHW"),
        precision=lax.Precision.HIGHEST).reshape(b, c, h, w)
    mh, mw = _reference_bicubic_half(h), _reference_bicubic_half(w)
    return jnp.einsum("ih,bchw,jw->bcij", mh, vb, mw,
                      precision=lax.Precision.HIGHEST)


def discriminator_block_reference(params, x):
    Cin = x.shape[1]
    c3 = 1.0 / math.sqrt(9 * Cin)
    c1 = 1.0 / math.sqrt(Cin)

    def conv(v, w, b, pad):
        y = lax.conv_general_dilated(
            v, w, (1, 1), ((pad, pad), (pad, pad)),
            dimension_numbers=("NCHW", "OIHW", "NCHW"),
            precision=lax.Precision.HIGHEST)
        return y + b[None, :, None, None]

    lrelu = lambda v: jnp.where(v > 0, v, 0.2 * v)
    residual = conv(_reference_downsample(x), params["wr"] * c1, params["br"], 0)
    y = lrelu(conv(x, params["w1"] * c3, params["b1"], 1))
    y = lrelu(conv(y, params["w2"] * c3, params["b2"], 1))
    return (_reference_downsample(y) + residual) * (1.0 / math.sqrt(2.0))


# ----------------------------------------------------------------------------
# Demo / self-check
# ----------------------------------------------------------------------------
if __name__ == "__main__":
    def make_params(key, cin, cout):
        k1, k2, k3 = jax.random.split(key, 3)
        return {
            "w1": jax.random.normal(k1, (cin, cin, 3, 3), jnp.float32),
            "b1": jnp.ones((cin,), jnp.float32),
            "w2": jax.random.normal(k2, (cout, cin, 3, 3), jnp.float32),
            "b2": jnp.ones((cout,), jnp.float32),
            "wr": jax.random.normal(k3, (cout, cin, 1, 1), jnp.float32),
            "br": jnp.ones((cout,), jnp.float32),
        }

    key = jax.random.PRNGKey(0)
    configs = [
        (4, 8, 16, 16, 16),    # concat-tap path, G=2 packing, NB=2
        (2, 128, 32, 8, 8),    # accumulated-tap path (Cin >= 128), tiny spatial
        (3, 8, 8, 16, 16),     # odd batch -> padded-batch path
    ]
    for ci, (b, cin, cout, h, w) in enumerate(configs):
        kp, kx, key = jax.random.split(key, 3)
        params = make_params(kp, cin, cout)
        x = jax.random.normal(kx, (b, cin, h, w), jnp.float32)
        fwd = jax.jit(functools.partial(discriminator_block,
                                        matmul_dtype=jnp.float32))
        out = jax.block_until_ready(fwd(params, x))
        assert out.shape == (b, cout, h // 2, w // 2)
        assert out.dtype == jnp.float32
        ref = discriminator_block_reference(params, x)
        err = float(jnp.max(jnp.abs(out - ref)))
        assert err < 5e-3, f"config {ci}: kernel/reference mismatch {err}"

    # bf16 matmul-input path (v6e/v7x perf knob): loose numerical check.
    b, cin, cout, h, w = configs[0]
    kp, kx, key = jax.random.split(key, 3)
    params = make_params(kp, cin, cout)
    x = jax.random.normal(kx, (b, cin, h, w), jnp.float32)
    fwd_bf16 = jax.jit(functools.partial(discriminator_block,
                                         matmul_dtype=jnp.bfloat16))
    out_bf16 = jax.block_until_ready(fwd_bf16(params, x))
    ref = discriminator_block_reference(params, x)
    assert bool(jnp.all(jnp.isfinite(out_bf16)))
    tol = 0.05 * float(jnp.max(jnp.abs(ref))) + 0.05
    err = float(jnp.max(jnp.abs(out_bf16 - ref)))
    assert err < tol, f"bf16 path too far from reference: {err} (tol {tol})"

    print("KERNEL_OK")
</pallas_src>

<mosaic_0001>
module attributes {stable_mosaic.version = 11 : i64} {
  func.func @_disc_block_kernel(%arg0: i32, %arg1: memref<1x8x512xf32, #tpu.memory_space<vmem>>, %arg2: memref<2x512xi32, #tpu.memory_space<vmem>>, %arg3: memref<8x72xf32, #tpu.memory_space<vmem>>, %arg4: memref<8x1xf32, #tpu.memory_space<vmem>>, %arg5: memref<16x72xf32, #tpu.memory_space<vmem>>, %arg6: memref<16x1xf32, #tpu.memory_space<vmem>>, %arg7: memref<16x8xf32, #tpu.memory_space<vmem>>, %arg8: memref<16x1xf32, #tpu.memory_space<vmem>>, %arg9: memref<256x64xf32, #tpu.memory_space<vmem>>, %arg10: memref<1x16x128xf32, #tpu.memory_space<vmem>>) attributes {dimension_semantics = [#tpu.dimension_semantics<parallel>], iteration_bounds = array<i64: 2>, scalar_prefetch = 0 : i64, scratch_operands = 0 : i64, tpu.core_type = #tpu.core_type<tc>, window_params = [{transform_indices = @transform_0, window_bounds = array<i64: 1, 8, 512>}, {pipeline_mode = #tpu.pipeline_mode<synchronous>, transform_indices = @transform_1, window_bounds = array<i64: 2, 512>}, {pipeline_mode = #tpu.pipeline_mode<synchronous>, transform_indices = @transform_2, window_bounds = array<i64: 8, 72>}, {pipeline_mode = #tpu.pipeline_mode<synchronous>, transform_indices = @transform_3, window_bounds = array<i64: 8, 1>}, {pipeline_mode = #tpu.pipeline_mode<synchronous>, transform_indices = @transform_4, window_bounds = array<i64: 16, 72>}, {pipeline_mode = #tpu.pipeline_mode<synchronous>, transform_indices = @transform_5, window_bounds = array<i64: 16, 1>}, {pipeline_mode = #tpu.pipeline_mode<synchronous>, transform_indices = @transform_6, window_bounds = array<i64: 16, 8>}, {pipeline_mode = #tpu.pipeline_mode<synchronous>, transform_indices = @transform_7, window_bounds = array<i64: 16, 1>}, {pipeline_mode = #tpu.pipeline_mode<synchronous>, transform_indices = @transform_8, window_bounds = array<i64: 256, 64>}, {transform_indices = @transform_9, window_bounds = array<i64: 1, 16, 128>}]} {
    %c0 = arith.constant 0 : index
    %c0_0 = arith.constant 0 : index
    %c0_1 = arith.constant 0 : index
    %0 = vector.load %arg1[%c0, %c0_0, %c0_1] : memref<1x8x512xf32, #tpu.memory_space<vmem>>, vector<1x8x512xf32>
    %1 = vector.shape_cast %0 : vector<1x8x512xf32> to vector<8x512xf32>
    %c0_2 = arith.constant 0 : index
    %c0_3 = arith.constant 0 : index
    %2 = vector.load %arg2[%c0_2, %c0_3] : memref<2x512xi32, #tpu.memory_space<vmem>>, vector<1x512xi32>
    %c1 = arith.constant 1 : index
    %c0_4 = arith.constant 0 : index
    %3 = vector.load %arg2[%c1, %c0_4] : memref<2x512xi32, #tpu.memory_space<vmem>>, vector<1x512xi32>
    %c1_i32 = arith.constant 1 : i32
    %4 = vector.broadcast %c1_i32 : i32 to vector<1x512xi32>
    %5 = arith.cmpi sge, %2, %4 : vector<1x512xi32>
    %c16_i32 = arith.constant 16 : i32
    %6 = vector.broadcast %c16_i32 : i32 to vector<1x512xi32>
    %7 = arith.cmpi sle, %2, %6 : vector<1x512xi32>
    %8 = arith.andi %5, %7 : vector<1x512xi1>
    %c1_i32_5 = arith.constant 1 : i32
    %9 = vector.broadcast %c1_i32_5 : i32 to vector<1x512xi32>
    %10 = arith.cmpi sge, %3, %9 : vector<1x512xi32>
    %11 = arith.andi %8, %10 : vector<1x512xi1>
    %c16_i32_6 = arith.constant 16 : i32
    %12 = vector.broadcast %c16_i32_6 : i32 to vector<1x512xi32>
    %13 = arith.cmpi sle, %3, %12 : vector<1x512xi32>
    %14 = arith.andi %11, %13 : vector<1x512xi1>
    %15 = arith.extui %14 : vector<1x512xi1> to vector<1x512xi32>
    %16 = arith.sitofp %15 : vector<1x512xi32> to vector<1x512xf32>
    %c1_i32_7 = arith.constant 1 : i32
    %17 = vector.broadcast %c1_i32_7 : i32 to vector<1x512xi32>
    %18 = arith.cmpi sge, %2, %17 : vector<1x512xi32>
    %c16_i32_8 = arith.constant 16 : i32
    %19 = vector.broadcast %c16_i32_8 : i32 to vector<1x512xi32>
    %20 = arith.cmpi sle, %2, %19 : vector<1x512xi32>
    %21 = arith.andi %18, %20 : vector<1x512xi1>
    %c0_i32 = arith.constant 0 : i32
    %22 = vector.broadcast %c0_i32 : i32 to vector<1x512xi32>
    %23 = arith.cmpi sge, %3, %22 : vector<1x512xi32>
    %24 = arith.andi %21, %23 : vector<1x512xi1>
    %c15_i32 = arith.constant 15 : i32
    %25 = vector.broadcast %c15_i32 : i32 to vector<1x512xi32>
    %26 = arith.cmpi sle, %3, %25 : vector<1x512xi32>
    %27 = arith.andi %24, %26 : vector<1x512xi1>
    %28 = arith.extui %27 : vector<1x512xi1> to vector<1x512xi32>
    %29 = arith.sitofp %28 : vector<1x512xi32> to vector<1x512xf32>
    %c1_i32_9 = arith.constant 1 : i32
    %30 = vector.broadcast %c1_i32_9 : i32 to vector<1x512xi32>
    %31 = arith.cmpi sge, %2, %30 : vector<1x512xi32>
    %c16_i32_10 = arith.constant 16 : i32
    %32 = vector.broadcast %c16_i32_10 : i32 to vector<1x512xi32>
    %33 = arith.cmpi sle, %2, %32 : vector<1x512xi32>
    %34 = arith.andi %31, %33 : vector<1x512xi1>
    %c-1_i32 = arith.constant -1 : i32
    %35 = vector.broadcast %c-1_i32 : i32 to vector<1x512xi32>
    %36 = arith.cmpi sge, %3, %35 : vector<1x512xi32>
    %37 = arith.andi %34, %36 : vector<1x512xi1>
    %c14_i32 = arith.constant 14 : i32
    %38 = vector.broadcast %c14_i32 : i32 to vector<1x512xi32>
    %39 = arith.cmpi sle, %3, %38 : vector<1x512xi32>
    %40 = arith.andi %37, %39 : vector<1x512xi1>
    %41 = arith.extui %40 : vector<1x512xi1> to vector<1x512xi32>
    %42 = arith.sitofp %41 : vector<1x512xi32> to vector<1x512xf32>
    %c0_i32_11 = arith.constant 0 : i32
    %43 = vector.broadcast %c0_i32_11 : i32 to vector<1x512xi32>
    %44 = arith.cmpi sge, %2, %43 : vector<1x512xi32>
    %c15_i32_12 = arith.constant 15 : i32
    %45 = vector.broadcast %c15_i32_12 : i32 to vector<1x512xi32>
    %46 = arith.cmpi sle, %2, %45 : vector<1x512xi32>
    %47 = arith.andi %44, %46 : vector<1x512xi1>
    %c1_i32_13 = arith.constant 1 : i32
    %48 = vector.broadcast %c1_i32_13 : i32 to vector<1x512xi32>
    %49 = arith.cmpi sge, %3, %48 : vector<1x512xi32>
    %50 = arith.andi %47, %49 : vector<1x512xi1>
    %c16_i32_14 = arith.constant 16 : i32
    %51 = vector.broadcast %c16_i32_14 : i32 to vector<1x512xi32>
    %52 = arith.cmpi sle, %3, %51 : vector<1x512xi32>
    %53 = arith.andi %50, %52 : vector<1x512xi1>
    %54 = arith.extui %53 : vector<1x512xi1> to vector<1x512xi32>
    %55 = arith.sitofp %54 : vector<1x512xi32> to vector<1x512xf32>
    %c0_i32_15 = arith.constant 0 : i32
    %56 = vector.broadcast %c0_i32_15 : i32 to vector<1x512xi32>
    %57 = arith.cmpi sge, %2, %56 : vector<1x512xi32>
    %c15_i32_16 = arith.constant 15 : i32
    %58 = vector.broadcast %c15_i32_16 : i32 to vector<1x512xi32>
    %59 = arith.cmpi sle, %2, %58 : vector<1x512xi32>
    %60 = arith.andi %57, %59 : vector<1x512xi1>
    %c-1_i32_17 = arith.constant -1 : i32
    %61 = vector.broadcast %c-1_i32_17 : i32 to vector<1x512xi32>
    %62 = arith.cmpi sge, %3, %61 : vector<1x512xi32>
    %63 = arith.andi %60, %62 : vector<1x512xi1>
    %c14_i32_18 = arith.constant 14 : i32
    %64 = vector.broadcast %c14_i32_18 : i32 to vector<1x512xi32>
    %65 = arith.cmpi sle, %3, %64 : vector<1x512xi32>
    %66 = arith.andi %63, %65 : vector<1x512xi1>
    %67 = arith.extui %66 : vector<1x512xi1> to vector<1x512xi32>
    %68 = arith.sitofp %67 : vector<1x512xi32> to vector<1x512xf32>
    %c-1_i32_19 = arith.constant -1 : i32
    %69 = vector.broadcast %c-1_i32_19 : i32 to vector<1x512xi32>
    %70 = arith.cmpi sge, %2, %69 : vector<1x512xi32>
    %c14_i32_20 = arith.constant 14 : i32
    %71 = vector.broadcast %c14_i32_20 : i32 to vector<1x512xi32>
    %72 = arith.cmpi sle, %2, %71 : vector<1x512xi32>
    %73 = arith.andi %70, %72 : vector<1x512xi1>
    %c1_i32_21 = arith.constant 1 : i32
    %74 = vector.broadcast %c1_i32_21 : i32 to vector<1x512xi32>
    %75 = arith.cmpi sge, %3, %74 : vector<1x512xi32>
    %76 = arith.andi %73, %75 : vector<1x512xi1>
    %c16_i32_22 = arith.constant 16 : i32
    %77 = vector.broadcast %c16_i32_22 : i32 to vector<1x512xi32>
    %78 = arith.cmpi sle, %3, %77 : vector<1x512xi32>
    %79 = arith.andi %76, %78 : vector<1x512xi1>
    %80 = arith.extui %79 : vector<1x512xi1> to vector<1x512xi32>
    %81 = arith.sitofp %80 : vector<1x512xi32> to vector<1x512xf32>
    %c-1_i32_23 = arith.constant -1 : i32
    %82 = vector.broadcast %c-1_i32_23 : i32 to vector<1x512xi32>
    %83 = arith.cmpi sge, %2, %82 : vector<1x512xi32>
    %c14_i32_24 = arith.constant 14 : i32
    %84 = vector.broadcast %c14_i32_24 : i32 to vector<1x512xi32>
    %85 = arith.cmpi sle, %2, %84 : vector<1x512xi32>
    %86 = arith.andi %83, %85 : vector<1x512xi1>
    %c0_i32_25 = arith.constant 0 : i32
    %87 = vector.broadcast %c0_i32_25 : i32 to vector<1x512xi32>
    %88 = arith.cmpi sge, %3, %87 : vector<1x512xi32>
    %89 = arith.andi %86, %88 : vector<1x512xi1>
    %c15_i32_26 = arith.constant 15 : i32
    %90 = vector.broadcast %c15_i32_26 : i32 to vector<1x512xi32>
    %91 = arith.cmpi sle, %3, %90 : vector<1x512xi32>
    %92 = arith.andi %89, %91 : vector<1x512xi1>
    %93 = arith.extui %92 : vector<1x512xi1> to vector<1x512xi32>
    %94 = arith.sitofp %93 : vector<1x512xi32> to vector<1x512xf32>
    %c-1_i32_27 = arith.constant -1 : i32
    %95 = vector.broadcast %c-1_i32_27 : i32 to vector<1x512xi32>
    %96 = arith.cmpi sge, %2, %95 : vector<1x512xi32>
    %c14_i32_28 = arith.constant 14 : i32
    %97 = vector.broadcast %c14_i32_28 : i32 to vector<1x512xi32>
    %98 = arith.cmpi sle, %2, %97 : vector<1x512xi32>
    %99 = arith.andi %96, %98 : vector<1x512xi1>
    %c-1_i32_29 = arith.constant -1 : i32
    %100 = vector.broadcast %c-1_i32_29 : i32 to vector<1x512xi32>
    %101 = arith.cmpi sge, %3, %100 : vector<1x512xi32>
    %102 = arith.andi %99, %101 : vector<1x512xi1>
    %c14_i32_30 = arith.constant 14 : i32
    %103 = vector.broadcast %c14_i32_30 : i32 to vector<1x512xi32>
    %104 = arith.cmpi sle, %3, %103 : vector<1x512xi32>
    %105 = arith.andi %102, %104 : vector<1x512xi1>
    %106 = arith.extui %105 : vector<1x512xi1> to vector<1x512xi32>
    %107 = arith.sitofp %106 : vector<1x512xi32> to vector<1x512xf32>
    %c17_i32 = arith.constant 17 : i32
    %108 = tpu.dynamic_rotate %1 by %c17_i32 dim 1 : vector<8x512xf32>, i32 -> vector<8x512xf32>
    %109 = vector.broadcast %16 : vector<1x512xf32> to vector<8x512xf32>
    %110 = arith.mulf %108, %109 : vector<8x512xf32>
    %c16_i32_31 = arith.constant 16 : i32
    %111 = tpu.dynamic_rotate %1 by %c16_i32_31 dim 1 : vector<8x512xf32>, i32 -> vector<8x512xf32>
    %112 = vector.broadcast %29 : vector<1x512xf32> to vector<8x512xf32>
    %113 = arith.mulf %111, %112 : vector<8x512xf32>
    %c15_i32_32 = arith.constant 15 : i32
    %114 = tpu.dynamic_rotate %1 by %c15_i32_32 dim 1 : vector<8x512xf32>, i32 -> vector<8x512xf32>
    %115 = vector.broadcast %42 : vector<1x512xf32> to vector<8x512xf32>
    %116 = arith.mulf %114, %115 : vector<8x512xf32>
    %c1_i32_33 = arith.constant 1 : i32
    %117 = tpu.dynamic_rotate %1 by %c1_i32_33 dim 1 : vector<8x512xf32>, i32 -> vector<8x512xf32>
    %118 = vector.broadcast %55 : vector<1x512xf32> to vector<8x512xf32>
    %119 = arith.mulf %117, %118 : vector<8x512xf32>
    %c511_i32 = arith.constant 511 : i32
    %120 = tpu.dynamic_rotate %1 by %c511_i32 dim 1 : vector<8x512xf32>, i32 -> vector<8x512xf32>
    %121 = vector.broadcast %68 : vector<1x512xf32> to vector<8x512xf32>
    %122 = arith.mulf %120, %121 : vector<8x512xf32>
    %c497_i32 = arith.constant 497 : i32
    %123 = tpu.dynamic_rotate %1 by %c497_i32 dim 1 : vector<8x512xf32>, i32 -> vector<8x512xf32>
    %124 = vector.broadcast %81 : vector<1x512xf32> to vector<8x512xf32>
    %125 = arith.mulf %123, %124 : vector<8x512xf32>
    %c496_i32 = arith.constant 496 : i32
    %126 = tpu.dynamic_rotate %1 by %c496_i32 dim 1 : vector<8x512xf32>, i32 -> vector<8x512xf32>
    %127 = vector.broadcast %94 : vector<1x512xf32> to vector<8x512xf32>
    %128 = arith.mulf %126, %127 : vector<8x512xf32>
    %c495_i32 = arith.constant 495 : i32
    %129 = tpu.dynamic_rotate %1 by %c495_i32 dim 1 : vector<8x512xf32>, i32 -> vector<8x512xf32>
    %130 = vector.broadcast %107 : vector<1x512xf32> to vector<8x512xf32>
    %131 = arith.mulf %129, %130 : vector<8x512xf32>
    %c0_34 = arith.constant 0 : index
    %c0_35 = arith.constant 0 : index
    %132 = vector.load %arg3[%c0_34, %c0_35] : memref<8x72xf32, #tpu.memory_space<vmem>>, vector<8x72xf32>
    %133 = tpu.concatenate %110, %113, %116, %119, %1, %122, %125, %128, %131 in 0 : vector<8x512xf32>, vector<8x512xf32>, vector<8x512xf32>, vector<8x512xf32>, vector<8x512xf32>, vector<8x512xf32>, vector<8x512xf32>, vector<8x512xf32>, vector<8x512xf32> -> vector<72x512xf32>
    %cst = arith.constant dense<0.000000e+00> : vector<8x512xf32>
    %134 = tpu.matmul %132, %133, %cst {dimension_numbers = #tpu.dot_dimension_numbers<[1], [0], [0], [1], [0, 0, 1, 1], [], []>, precision = #tpu.contract_precision<fp32>} : vector<8x72xf32>, vector<72x512xf32>, vector<8x512xf32> -> vector<8x512xf32>
    %c0_36 = arith.constant 0 : index
    %c0_37 = arith.constant 0 : index
    %135 = vector.load %arg4[%c0_36, %c0_37] : memref<8x1xf32, #tpu.memory_space<vmem>>, vector<8x1xf32>
    %136 = vector.broadcast %135 : vector<8x1xf32> to vector<8x512xf32>
    %137 = arith.addf %134, %136 : vector<8x512xf32>
    %cst_38 = arith.constant 2.000000e-01 : f32
    %138 = vector.broadcast %cst_38 : f32 to vector<8x512xf32>
    %139 = arith.mulf %138, %137 : vector<8x512xf32>
    %140 = arith.maximumf %137, %139 : vector<8x512xf32>
    %c17_i32_39 = arith.constant 17 : i32
    %141 = tpu.dynamic_rotate %140 by %c17_i32_39 dim 1 : vector<8x512xf32>, i32 -> vector<8x512xf32>
    %142 = vector.broadcast %16 : vector<1x512xf32> to vector<8x512xf32>
    %143 = arith.mulf %141, %142 : vector<8x512xf32>
    %c16_i32_40 = arith.constant 16 : i32
    %144 = tpu.dynamic_rotate %140 by %c16_i32_40 dim 1 : vector<8x512xf32>, i32 -> vector<8x512xf32>
    %145 = vector.broadcast %29 : vector<1x512xf32> to vector<8x512xf32>
    %146 = arith.mulf %144, %145 : vector<8x512xf32>
    %c15_i32_41 = arith.constant 15 : i32
    %147 = tpu.dynamic_rotate %140 by %c15_i32_41 dim 1 : vector<8x512xf32>, i32 -> vector<8x512xf32>
    %148 = vector.broadcast %42 : vector<1x512xf32> to vector<8x512xf32>
    %149 = arith.mulf %147, %148 : vector<8x512xf32>
    %c1_i32_42 = arith.constant 1 : i32
    %150 = tpu.dynamic_rotate %140 by %c1_i32_42 dim 1 : vector<8x512xf32>, i32 -> vector<8x512xf32>
    %151 = vector.broadcast %55 : vector<1x512xf32> to vector<8x512xf32>
    %152 = arith.mulf %150, %151 : vector<8x512xf32>
    %c511_i32_43 = arith.constant 511 : i32
    %153 = tpu.dynamic_rotate %140 by %c511_i32_43 dim 1 : vector<8x512xf32>, i32 -> vector<8x512xf32>
    %154 = vector.broadcast %68 : vector<1x512xf32> to vector<8x512xf32>
    %155 = arith.mulf %153, %154 : vector<8x512xf32>
    %c497_i32_44 = arith.constant 497 : i32
    %156 = tpu.dynamic_rotate %140 by %c497_i32_44 dim 1 : vector<8x512xf32>, i32 -> vector<8x512xf32>
    %157 = vector.broadcast %81 : vector<1x512xf32> to vector<8x512xf32>
    %158 = arith.mulf %156, %157 : vector<8x512xf32>
    %c496_i32_45 = arith.constant 496 : i32
    %159 = tpu.dynamic_rotate %140 by %c496_i32_45 dim 1 : vector<8x512xf32>, i32 -> vector<8x512xf32>
    %160 = vector.broadcast %94 : vector<1x512xf32> to vector<8x512xf32>
    %161 = arith.mulf %159, %160 : vector<8x512xf32>
    %c495_i32_46 = arith.constant 495 : i32
    %162 = tpu.dynamic_rotate %140 by %c495_i32_46 dim 1 : vector<8x512xf32>, i32 -> vector<8x512xf32>
    %163 = vector.broadcast %107 : vector<1x512xf32> to vector<8x512xf32>
    %164 = arith.mulf %162, %163 : vector<8x512xf32>
    %c0_47 = arith.constant 0 : index
    %c0_48 = arith.constant 0 : index
    %165 = vector.load %arg5[%c0_47, %c0_48] : memref<16x72xf32, #tpu.memory_space<vmem>>, vector<16x72xf32>
    %166 = tpu.concatenate %143, %146, %149, %152, %140, %155, %158, %161, %164 in 0 : vector<8x512xf32>, vector<8x512xf32>, vector<8x512xf32>, vector<8x512xf32>, vector<8x512xf32>, vector<8x512xf32>, vector<8x512xf32>, vector<8x512xf32>, vector<8x512xf32> -> vector<72x512xf32>
    %cst_49 = arith.constant dense<0.000000e+00> : vector<16x512xf32>
    %167 = tpu.matmul %165, %166, %cst_49 {dimension_numbers = #tpu.dot_dimension_numbers<[1], [0], [0], [1], [0, 0, 1, 1], [], []>, precision = #tpu.contract_precision<fp32>} : vector<16x72xf32>, vector<72x512xf32>, vector<16x512xf32> -> vector<16x512xf32>
    %c0_50 = arith.constant 0 : index
    %c0_51 = arith.constant 0 : index
    %168 = vector.load %arg6[%c0_50, %c0_51] : memref<16x1xf32, #tpu.memory_space<vmem>>, vector<16x1xf32>
    %169 = vector.broadcast %168 : vector<16x1xf32> to vector<16x512xf32>
    %170 = arith.addf %167, %169 : vector<16x512xf32>
    %cst_52 = arith.constant 2.000000e-01 : f32
    %171 = vector.broadcast %cst_52 : f32 to vector<16x512xf32>
    %172 = arith.mulf %171, %170 : vector<16x512xf32>
    %173 = arith.maximumf %170, %172 : vector<16x512xf32>
    %c0_53 = arith.constant 0 : index
    %c0_54 = arith.constant 0 : index
    %174 = vector.load %arg7[%c0_53, %c0_54] : memref<16x8xf32, #tpu.memory_space<vmem>>, vector<16x8xf32>
    %cst_55 = arith.constant dense<0.000000e+00> : vector<16x512xf32>
    %175 = tpu.matmul %174, %1, %cst_55 {dimension_numbers = #tpu.dot_dimension_numbers<[1], [0], [0], [1], [0, 0, 1, 1], [], []>, precision = #tpu.contract_precision<fp32>} : vector<16x8xf32>, vector<8x512xf32>, vector<16x512xf32> -> vector<16x512xf32>
    %176 = arith.addf %173, %175 : vector<16x512xf32>
    %c0_56 = arith.constant 0 : index
    %c0_57 = arith.constant 0 : index
    %177 = vector.load %arg9[%c0_56, %c0_57] : memref<256x64xf32, #tpu.memory_space<vmem>>, vector<256x64xf32>
    %178 = vector.extract_strided_slice %176 {offsets = [0, 0], sizes = [16, 256], strides = [1, 1]} : vector<16x512xf32> to vector<16x256xf32>
    %cst_58 = arith.constant dense<0.000000e+00> : vector<16x64xf32>
    %179 = tpu.matmul %178, %177, %cst_58 {dimension_numbers = #tpu.dot_dimension_numbers<[1], [0], [0], [1], [0, 0, 1, 1], [], []>, precision = #tpu.contract_precision<fp32>} : vector<16x256xf32>, vector<256x64xf32>, vector<16x64xf32> -> vector<16x64xf32>
    %180 = vector.extract_strided_slice %176 {offsets = [0, 256], sizes = [16, 256], strides = [1, 1]} : vector<16x512xf32> to vector<16x256xf32>
    %cst_59 = arith.constant dense<0.000000e+00> : vector<16x64xf32>
    %181 = tpu.matmul %180, %177, %cst_59 {dimension_numbers = #tpu.dot_dimension_numbers<[1], [0], [0], [1], [0, 0, 1, 1], [], []>, precision = #tpu.contract_precision<fp32>} : vector<16x256xf32>, vector<256x64xf32>, vector<16x64xf32> -> vector<16x64xf32>
    %182 = tpu.concatenate %179, %181 in 1 : vector<16x64xf32>, vector<16x64xf32> -> vector<16x128xf32>
    %c0_60 = arith.constant 0 : index
    %c0_61 = arith.constant 0 : index
    %183 = vector.load %arg8[%c0_60, %c0_61] : memref<16x1xf32, #tpu.memory_space<vmem>>, vector<16x1xf32>
    %184 = vector.broadcast %183 : vector<16x1xf32> to vector<16x128xf32>
    %185 = arith.addf %182, %184 : vector<16x128xf32>
    %c0_62 = arith.constant 0 : index
    %c0_63 = arith.constant 0 : index
    %c0_64 = arith.constant 0 : index
    %186 = vector.load %arg10[%c0_62, %c0_63, %c0_64] : memref<1x16x128xf32, #tpu.memory_space<vmem>>, vector<1x16x128xf32>
    %187 = vector.shape_cast %186 : vector<1x16x128xf32> to vector<16x128xf32>
    %188 = vector.shape_cast %185 : vector<16x128xf32> to vector<1x16x128xf32>
    tpu.vector_store %arg10[%c0_62, %c0_63, %c0_64], %188 {strides = array<i32>} : memref<1x16x128xf32, #tpu.memory_space<vmem>>, vector<1x16x128xf32>,
    return
  }
  func.func @transform_0(%arg0: i32) -> (i32, i32, i32) {
    %c0_i32 = arith.constant 0 : i32
    %c0_i32_0 = arith.constant 0 : i32
    %c0_i32_1 = arith.constant 0 : i32
    return %arg0, %c0_i32, %c0_i32_0 : i32, i32, i32
  }
  func.func @transform_1(%arg0: i32) -> (i32, i32) {
    %c0_i32 = arith.constant 0 : i32
    %c0_i32_0 = arith.constant 0 : i32
    %c0_i32_1 = arith.constant 0 : i32
    return %c0_i32, %c0_i32_0 : i32, i32
  }
  func.func @transform_2(%arg0: i32) -> (i32, i32) {
    %c0_i32 = arith.constant 0 : i32
    %c0_i32_0 = arith.constant 0 : i32
    %c0_i32_1 = arith.constant 0 : i32
    return %c0_i32, %c0_i32_0 : i32, i32
  }
  func.func @transform_3(%arg0: i32) -> (i32, i32) {
    %c0_i32 = arith.constant 0 : i32
    %c0_i32_0 = arith.constant 0 : i32
    %c0_i32_1 = arith.constant 0 : i32
    return %c0_i32, %c0_i32_0 : i32, i32
  }
  func.func @transform_4(%arg0: i32) -> (i32, i32) {
    %c0_i32 = arith.constant 0 : i32
    %c0_i32_0 = arith.constant 0 : i32
    %c0_i32_1 = arith.constant 0 : i32
    return %c0_i32, %c0_i32_0 : i32, i32
  }
  func.func @transform_5(%arg0: i32) -> (i32, i32) {
    %c0_i32 = arith.constant 0 : i32
    %c0_i32_0 = arith.constant 0 : i32
    %c0_i32_1 = arith.constant 0 : i32
    return %c0_i32, %c0_i32_0 : i32, i32
  }
  func.func @transform_6(%arg0: i32) -> (i32, i32) {
    %c0_i32 = arith.constant 0 : i32
    %c0_i32_0 = arith.constant 0 : i32
    %c0_i32_1 = arith.constant 0 : i32
    return %c0_i32, %c0_i32_0 : i32, i32
  }
  func.func @transform_7(%arg0: i32) -> (i32, i32) {
    %c0_i32 = arith.constant 0 : i32
    %c0_i32_0 = arith.constant 0 : i32
    %c0_i32_1 = arith.constant 0 : i32
    return %c0_i32, %c0_i32_0 : i32, i32
  }
  func.func @transform_8(%arg0: i32) -> (i32, i32) {
    %c0_i32 = arith.constant 0 : i32
    %c0_i32_0 = arith.constant 0 : i32
    %c0_i32_1 = arith.constant 0 : i32
    return %c0_i32, %c0_i32_0 : i32, i32
  }
  func.func @transform_9(%arg0: i32) -> (i32, i32, i32) {
    %c0_i32 = arith.constant 0 : i32
    %c0_i32_0 = arith.constant 0 : i32
    %c0_i32_1 = arith.constant 0 : i32
    return %arg0, %c0_i32, %c0_i32_0 : i32, i32, i32
  }
}

</mosaic_0001>

<bundles_post_ra>
// kernel: discriminator_block.1
= control target key start
LH: loop header
LB: loop body
LE: loop exit
PB: predicated region body
PF: predicated region fallthrough
CT: control target
= control target key end

     0   :  { %s11880_s0 = inlined_call_operand.hbm [shape: f32[2,8,512], index: 0, kind: input, shape index: {}]   ;;  %s11881_s1 = inlined_call_operand.hbm [shape: s32[2,512], index: 1, kind: input, shape index: {}]   ;;  %s11882_s2 = inlined_call_operand.hbm [shape: f32[8,72], index: 2, kind: input, shape index: {}]   ;;  %s11883_s3 = inlined_call_operand.hbm [shape: f32[8,1], index: 3, kind: input, shape index: {}]   ;;  %s11884_s4 = inlined_call_operand.hbm [shape: f32[16,72], index: 4, kind: input, shape index: {}]   ;;  %s11885_s5 = inlined_call_operand.hbm [shape: f32[16,1], index: 5, kind: input, shape index: {}]   ;;  %s11886_s6 = inlined_call_operand.hbm [shape: f32[16,8], index: 6, kind: input, shape index: {}]   ;;  %s11887_s7 = inlined_call_operand.hbm [shape: f32[16,1], index: 7, kind: input, shape index: {}]   ;;  %s11888_s8 = inlined_call_operand.hbm [shape: f32[256,64], index: 8, kind: input, shape index: {}]   ;;  %s11889_s9 = inlined_call_operand.hbm [shape: f32[2,16,128], index: 9, kind: output, shape index: {}]  }
   0x1   :  { %12150 = sst [smem:[#allocation95_spill]] %s11881_s1 }
   0x2   :  { %12151 = sst [smem:[#allocation96_spill]] %s11883_s3 }
   0x3   :  { %12152 = sst [smem:[#allocation97_spill]] %s11889_s9 }
   0x4   :  { %14 = vsyncpa [#allocation3], 0 }
   0x5   :  { %16 = vsyncpa [#allocation3 + $0x1], 0 }
   0x6   :  { %17 = vsyncpa [#allocation6], 0 }
   0x7   :  { %18 = vsyncpa [#allocation9], 0 }
   0x8   :  { %19 = vsyncpa [#allocation12], 0 }
   0x9   :  { %20 = vsyncpa [#allocation15], 0 }
   0xa   :  { %21 = vsyncpa [#allocation4], 0 }
   0xb   :  { %23 = vsyncpa [#allocation4 + $0x1], 0  ;;  %s8828_s30 = smov 0   ;;  %s8830_s10 = smov 0  }
   0xc   :  { %s8832_s11 = smov 0   ;;  %s8834_s12 = smov 0  }
   0xd LB: > { %s8753_s13 = smov [#allocation5]   ;;  %s8849_s15 = sadd.s32 4294967295, %s8751_s12   ;;  %s8751_s12 = sphi %s8834_s12, %s12619_s12   ;;  %s8747_s11 = sphi %s8832_s11, %s12618_s11   ;;  %s8743_s10 = sphi %s8830_s10, %s12617_s10   ;;  %s8739_s30 = sphi %s8828_s30, %s12616_s30  }
   0xe   : > { %s267_s14 = sshll.u32 %s8753_s13, 4  ;;  %p6896_p0 = scmp.ge.s32.totalorder %s8751_s12, 1  ;;  %s268_s14 = int_to_ptr.vmem [resolvable:$true] %s267_s14 }
   0xf   : > { %p11890_p1 = scmp.eq.s32.totalorder %s8849_s15, 0  ;;  %p254_p2 = scmp.lt.s32.totalorder %s8751_s12, 3 }
  0x10   : > { %s8754_s17 = smov [#allocation8]   ;;  %s8755_s20 = smov [#allocation11]  }
  0x11   : > { %p8854_p3 = pnand %p6896_p0, %p254_p2  ;;  %s289_s18 = sshll.u32 %s8754_s17, 4  ;;  %s8861_s18 = int_to_ptr.vmem [resolvable:$true] %s289_s18 }
  0x12   : > { %s312_s21 = sshll.u32 %s8755_s20, 4  ;;  %s12155_s1 = sld [smem:[#allocation95_spill]]  ;;  %s8869_s21 = int_to_ptr.vmem [resolvable:$true] %s312_s21 }
  0x13   : > { %s12153_s16 = scalar_select %p8854_p3, 1, 0 }
  0x14   : > { %p8307_p5 = pneg %p8854_p3 }
  0x16   : > { %p8865_p6 = pnand %p8307_p5, %p11890_p1 }
  0x18   : > { %s8415_s24 = scalar_lea.hbm %s12155_s1, 128  ;;  %p8879_p8 = pneg %p8865_p6 }
  0x19   : > { %p8416_p7 = scmp.ne.s32.totalorder %s12155_s1, %s8415_s24  ;;  %p8422_p11 = scmp.lt.u32.totalorder %s8415_s24, %s12155_s1 }
  0x1b   : > { %p8418_p9 = pnand %p8879_p8, %p8416_p7 }
  0x1d   : > { %p8419_p10 = pneg %p8418_p9 }
  0x1f   : > { %p8424_p12 = pnand %p8422_p11, %p8419_p10 }
  0x21   : > { %8427 = shalt.err (!%p8424_p12)
}
  0x22   : > { %s8428_s13 = scalar_lea.vmem %s268_s14, 128  ;;  %p8436_p5 = scmp.lt.s32.totalorder %s268_s14, %s268_s14 }
  0x23   : > { %p8429_p13 = scmp.ne.s32.totalorder %s268_s14, %s8428_s13  ;;  %p8437_p4 = scmp.lt.s32.totalorder %s8428_s13, %s8428_s13 }
  0x25   : > { %p8431_p0 = pnand %p8429_p13, %p8879_p8  ;;  %p8438_p1 = por %p8437_p4, %p8436_p5 }
  0x27   : > { %p8432_p2 = pneg %p8431_p0 }
  0x29   : > { %p8439_p3 = pnand %p8438_p1, %p8432_p2 }
  0x2b   : > { %8442 = shalt.err (!%p8439_p3)
}
  0x2c   : > { %8310 = dma.hbm_to_vmem [thread:$0]  (!%p8865_p6), %s12155_s1, 128, %s268_s14, [#allocation6]  }
  0x2d   : > { %s12157_s3 = sld [smem:[#allocation96_spill]] }
  0x33   : > { %s8443_s24 = scalar_lea.hbm %s12157_s3, 128 }
  0x34   : > { %p8444_p7 = scmp.ne.s32.totalorder %s12157_s3, %s8443_s24  ;;  %p8450_p1 = scmp.lt.u32.totalorder %s8443_s24, %s12157_s3 }
  0x36   : > { %p8446_p9 = pnand %p8444_p7, %p8879_p8 }
  0x38   : > { %p8447_p4 = pneg %p8446_p9 }
  0x3a   : > { %p8452_p3 = pnand %p8450_p1, %p8447_p4 }
  0x3c   : > { %8455 = shalt.err (!%p8452_p3)
}
  0x3d   : > { %s8456_s14 = scalar_lea.vmem %s8861_s18, 128  ;;  %p8464_p13 = scmp.lt.s32.totalorder %s8861_s18, %s8861_s18 }
  0x3e   : > { %p8457_p10 = scmp.ne.s32.totalorder %s8861_s18, %s8456_s14  ;;  %p8465_p0 = scmp.lt.s32.totalorder %s8456_s14, %s8456_s14 }
  0x40   : > { %p8459_p11 = pnand %p8457_p10, %p8879_p8  ;;  %p8466_p2 = por %p8465_p0, %p8464_p13 }
  0x42   : > { %p8460_p12 = pneg %p8459_p11 }
  0x44   : > { %p8467_p5 = pnand %p8466_p2, %p8460_p12 }
  0x46   : > { %8470 = shalt.err (!%p8467_p5)
}
  0x47   : > { %8316 = dma.hbm_to_vmem [thread:$0]  (!%p8865_p6), %s12157_s3, 128, %s8861_s18, [#allocation9]  }
  0x48   : > { %s8471_s23 = scalar_lea.hbm %s11885_s5, 256 }
  0x49   : > { %p8472_p7 = scmp.ne.s32.totalorder %s11885_s5, %s8471_s23  ;;  %p8478_p1 = scmp.lt.u32.totalorder %s8471_s23, %s11885_s5 }
  0x4b   : > { %p8474_p9 = pnand %p8472_p7, %p8879_p8 }
  0x4d   : > { %p8475_p4 = pneg %p8474_p9 }
  0x4f   : > { %p8480_p3 = pnand %p8478_p1, %p8475_p4 }
  0x51   : > { %8483 = shalt.err (!%p8480_p3)
}
  0x52   : > { %s8484_s18 = scalar_lea.vmem %s8869_s21, 256  ;;  %p8492_p13 = scmp.lt.s32.totalorder %s8869_s21, %s8869_s21 }
  0x53   : > { %p8485_p10 = scmp.ne.s32.totalorder %s8869_s21, %s8484_s18  ;;  %p8493_p0 = scmp.lt.s32.totalorder %s8484_s18, %s8484_s18 }
  0x55   : > { %p8487_p11 = pnand %p8485_p10, %p8879_p8  ;;  %p8494_p2 = por %p8493_p0, %p8492_p13 }
  0x57   : > { %p8488_p12 = pneg %p8487_p11 }
  0x59   : > { %p8495_p5 = pnand %p8494_p2, %p8488_p12 }
  0x5b   : > { %8498 = shalt.err (!%p8495_p5)
}
  0x5c   : > { %s8756_s29 = smov 128   ;;  %s8757_s14 = smov 8  }
  0x5d   : > { %8322 = dma.hbm_to_vmem [thread:$0]  (!%p8865_p6), %s11885_s5, 256, %s8869_s21, [#allocation12], %s8756_s29, %s8756_s29, %s8757_s14  }
  0x5e   : > { %s8758_s20 = smov [#allocation14]   ;;  %s8759_s23 = smov [#allocation7]  }
  0x5f   : > { %s338_s22 = sshll.u32 %s8758_s20, 4  ;;  %s278_s24 = sshll.u32 %s8759_s23, 4  ;;  %s339_s22 = int_to_ptr.vmem [resolvable:$true] %s338_s22  ;;  %s279_s24 = int_to_ptr.vmem [resolvable:$true] %s278_s24 }
  0x60   : > { %s8499_s28 = scalar_lea.hbm %s11887_s7, 256 }
  0x61   : > { %p8500_p7 = scmp.ne.s32.totalorder %s11887_s7, %s8499_s28  ;;  %p8506_p1 = scmp.lt.u32.totalorder %s8499_s28, %s11887_s7 }
  0x63   : > { %p8502_p9 = pnand %p8500_p7, %p8879_p8 }
  0x65   : > { %p8503_p4 = pneg %p8502_p9 }
  0x67   : > { %p8508_p3 = pnand %p8506_p1, %p8503_p4 }
  0x69   : > { %8511 = shalt.err (!%p8508_p3)
}
  0x6a   : > { %s8512_s21 = scalar_lea.vmem %s339_s22, 256  ;;  %p8520_p13 = scmp.lt.s32.totalorder %s339_s22, %s339_s22 }
  0x6b   : > { %p8513_p10 = scmp.ne.s32.totalorder %s339_s22, %s8512_s21  ;;  %p8521_p0 = scmp.lt.s32.totalorder %s8512_s21, %s8512_s21 }
  0x6d   : > { %p8515_p11 = pnand %p8513_p10, %p8879_p8  ;;  %p8522_p2 = por %p8521_p0, %p8520_p13 }
  0x6f   : > { %p8516_p12 = pneg %p8515_p11 }
  0x71   : > { %p8523_p5 = pnand %p8522_p2, %p8516_p12 }
  0x73   : > { %8526 = shalt.err (!%p8523_p5)
}
  0x74   : > { %8328 = dma.hbm_to_vmem [thread:$0]  (!%p8865_p6), %s11887_s7, 256, %s339_s22, [#allocation15], %s8756_s29, %s8756_s29, %s8757_s14  }
  0x75   : > { %s8527_s17 = scalar_lea.hbm %s11882_s2, 128 }
  0x76   : > { %p8528_p7 = scmp.ne.s32.totalorder %s11882_s2, %s8527_s17  ;;  %p8534_p1 = scmp.lt.u32.totalorder %s8527_s17, %s11882_s2 }
  0x78   : > { %p8530_p9 = pnand %p8528_p7, %p8879_p8 }
  0x7a   : > { %p8531_p4 = pneg %p8530_p9 }
  0x7c   : > { %p8536_p3 = pnand %p8534_p1, %p8531_p4 }
  0x7e   : > { %8539 = shalt.err (!%p8536_p3)
}
  0x7f   : > { %s8540_s28 = scalar_lea.vmem %s279_s24, 128  ;;  %p8548_p13 = scmp.lt.s32.totalorder %s279_s24, %s279_s24 }
  0x80   : > { %p8541_p10 = scmp.ne.s32.totalorder %s279_s24, %s8540_s28  ;;  %p8549_p0 = scmp.lt.s32.totalorder %s8540_s28, %s8540_s28 }
  0x82   : > { %p8543_p11 = pnand %p8541_p10, %p8879_p8  ;;  %p8550_p2 = por %p8549_p0, %p8548_p13 }
  0x84   : > { %p8544_p12 = pneg %p8543_p11 }
  0x86   : > { %p8551_p5 = pnand %p8550_p2, %p8544_p12 }
  0x88   : > { %8554 = shalt.err (!%p8551_p5)
}
  0x89   : > { %8313 = dma.hbm_to_vmem [thread:$0]  (!%p8865_p6), %s11882_s2, 128, %s279_s24, [#allocation6]  }
  0x8a   : > { %s8760_s21 = smov [#allocation10]   ;;  %s8761_s3 = smov [#allocation13]  }
  0x8b   : > { %s299_s1 = sshll.u32 %s8760_s21, 4  ;;  %s325_s9 = sshll.u32 %s8761_s3, 4  ;;  %s300_s1 = int_to_ptr.vmem [resolvable:$true] %s299_s1  ;;  %s326_s9 = int_to_ptr.vmem [resolvable:$true] %s325_s9 }
  0x8c   : > { %s8555_s20 = scalar_lea.hbm %s11884_s4, 256 }
  0x8d   : > { %p8556_p7 = scmp.ne.s32.totalorder %s11884_s4, %s8555_s20  ;;  %p8562_p1 = scmp.lt.u32.totalorder %s8555_s20, %s11884_s4 }
  0x8f   : > { %p8558_p9 = pnand %p8556_p7, %p8879_p8 }
  0x91   : > { %p8559_p4 = pneg %p8558_p9 }
  0x93   : > { %p8564_p3 = pnand %p8562_p1, %p8559_p4 }
  0x95   : > { %8567 = shalt.err (!%p8564_p3)
}
  0x96   : > { %s8568_s24 = scalar_lea.vmem %s300_s1, 256  ;;  %p8576_p13 = scmp.lt.s32.totalorder %s300_s1, %s300_s1 }
  0x97   : > { %p8569_p10 = scmp.ne.s32.totalorder %s300_s1, %s8568_s24  ;;  %p8577_p0 = scmp.lt.s32.totalorder %s8568_s24, %s8568_s24 }
  0x99   : > { %p8571_p11 = pnand %p8569_p10, %p8879_p8  ;;  %p8578_p2 = por %p8577_p0, %p8576_p13 }
  0x9b   : > { %p8572_p12 = pneg %p8571_p11 }
  0x9d   : > { %p8579_p5 = pnand %p8578_p2, %p8572_p12 }
  0x9f   : > { %8582 = shalt.err (!%p8579_p5)
}
  0xa0   : > { %8319 = dma.hbm_to_vmem [thread:$0]  (!%p8865_p6), %s11884_s4, 256, %s300_s1, [#allocation9], %s8756_s29, %s8756_s29, %s8757_s14  }
  0xa1   : > { %s8583_s13 = scalar_lea.hbm %s11886_s6, 256 }
  0xa2   : > { %p8584_p7 = scmp.ne.s32.totalorder %s11886_s6, %s8583_s13  ;;  %p8590_p1 = scmp.lt.u32.totalorder %s8583_s13, %s11886_s6 }
  0xa4   : > { %p8586_p9 = pnand %p8584_p7, %p8879_p8 }
  0xa6   : > { %p8587_p4 = pneg %p8586_p9 }
  0xa8   : > { %p8592_p3 = pnand %p8590_p1, %p8587_p4 }
  0xaa   : > { %8595 = shalt.err (!%p8592_p3)
}
  0xab   : > { %s8596_s26 = scalar_lea.vmem %s326_s9, 256  ;;  %p8604_p13 = scmp.lt.s32.totalorder %s326_s9, %s326_s9 }
  0xac   : > { %p8597_p10 = scmp.ne.s32.totalorder %s326_s9, %s8596_s26  ;;  %p8605_p0 = scmp.lt.s32.totalorder %s8596_s26, %s8596_s26 }
  0xae   : > { %p8599_p11 = pnand %p8597_p10, %p8879_p8  ;;  %p8606_p2 = por %p8605_p0, %p8604_p13 }
  0xb0   : > { %p8600_p12 = pneg %p8599_p11 }
  0xb2   : > { %p8607_p5 = pnand %p8606_p2, %p8600_p12 }
  0xb4   : > { %8610 = shalt.err (!%p8607_p5)
}
  0xb5   : > { %8325 = dma.hbm_to_vmem [thread:$0]  (!%p8865_p6), %s11886_s6, 256, %s326_s9, [#allocation12], %s8756_s29, %s8756_s29, %s8757_s14  }
  0xb6   : > { %s8762_s24 = smov [#allocation16]   ;;  %s8611_s3 = scalar_lea.hbm %s11888_s8, 4096 }
  0xb7   : > { %s351_s22 = sshll.u32 %s8762_s24, 4  ;;  %p8612_p7 = scmp.ne.s32.totalorder %s11888_s8, %s8611_s3  ;;  %s352_s22 = int_to_ptr.vmem [resolvable:$true] %s351_s22 }
  0xb8   : > { %p8618_p1 = scmp.lt.u32.totalorder %s8611_s3, %s11888_s8 }
  0xb9   : > { %p8614_p9 = pnand %p8612_p7, %p8879_p8 }
  0xbb   : > { %p8615_p4 = pneg %p8614_p9 }
  0xbd   : > { %p8620_p3 = pnand %p8618_p1, %p8615_p4 }
  0xbf   : > { %8623 = shalt.err (!%p8620_p3)
}
  0xc0   : > { %s8624_s9 = scalar_lea.vmem %s352_s22, 4096  ;;  %p8632_p13 = scmp.lt.s32.totalorder %s352_s22, %s352_s22 }
  0xc1   : > { %p8625_p10 = scmp.ne.s32.totalorder %s352_s22, %s8624_s9  ;;  %p8633_p0 = scmp.lt.s32.totalorder %s8624_s9, %s8624_s9 }
  0xc3   : > { %p8627_p11 = pnand %p8625_p10, %p8879_p8  ;;  %p8634_p2 = por %p8633_p0, %p8632_p13 }
  0xc5   : > { %p8628_p12 = pneg %p8627_p11 }
  0xc7   : > { %p8635_p5 = pnand %p8634_p2, %p8628_p12 }
  0xc9   : > { %8638 = shalt.err (!%p8635_p5)
}
  0xca   : > { %8331 = dma.hbm_to_vmem [thread:$0]  (!%p8865_p6), %s11888_s8, 4096, %s352_s22, [#allocation15], %s8756_s29, %s8756_s29, %s8757_s14  }
  0xcb   : > { %s6895_s19 = sadd.s32 4294967294, %s8751_s12   ;;  %s9048_s27 = sadd.s32 1, %s8751_s12  }
  0xcc   : > { %s33_s1 = ssub.s32 %s8751_s12, %s9048_s27  ;;  %s36_s28 = sadd.s32 1, %s8747_s11 }
  0xcd   : > { %p34_p8 = scmp.eq.s32.totalorder %s33_s1, 0  ;;  %p43_p7 = scmp.ne.s32.totalorder %s8747_s11, %s8743_s10 }
  0xce   : > { %p44_p9 = scmp.eq.s32.totalorder %s8751_s12, 0  ;;  %p49_p4 = scmp.ne.s32.totalorder %s8743_s10, %s8739_s30 }
  0xcf   : > { %s9059_s24 = scalar_select %p34_p8, %s8747_s11, %s36_s28  }
  0xd0   : > { %p9061_p1 = por %p44_p9, %p43_p7  ;;  %p12159_p3 = scmp.eq.s32.totalorder %s8849_s15, 0 }
  0xd1   : > { %p241_p10 = scmp.eq.s32.totalorder %s8849_s15, 1  ;;  %p247_p11 = scmp.eq.s32.totalorder %s6895_s19, 1 }
  0xd2   : > { %p9067_p6 = por %p12159_p3, %p49_p4  ;;  %p8348_p12 = scmp.lt.s32.totalorder %s8751_s12, 2 }
  0xd3   : > { %s365_s14 = sand.u32 1, %s8747_s11   ;;  %p9074_p13 = por %p241_p10, %p43_p7 }
  0xd4   : > { %p9078_p0 = por %p247_p11, %p49_p4  ;;  %s6906_s3 = sshll.u32 %s365_s14, 5 }
  0xd5   : > { %s12161_s22 = scalar_select %p9074_p13, 1, 0 }
  0xd6   : > { %s12162_s21 = scalar_select %p9078_p0, 1, 0 }
  0xd7   : > { %s6933_s13 = sshll.u32 %s8751_s12, 9  ;;  %s369_s9 = scalar_lea.vmem [#allocation2], %s6906_s3 }
  0xd8   : > { %s9086_s23 = scalar_lea.hbm %s11880_s0, %s6933_s13  ;;  %s377_s25 = sshll.u32 %s369_s9, 4  ;;  %s9088_s25 = int_to_ptr.vmem [resolvable:$true] %s377_s25 }
  0xd9   : > { %p9092_p2 = pnand %p8348_p12, %p9061_p1  ;;  %s366_s19 = scalar_lea.sflag [#allocation3], %s365_s14 }
  0xda   : > { %s8639_s1 = scalar_lea.hbm %s9086_s23, 512  ;;  %s8644_s13 = scalar_lea.hbm %s11880_s0, 1024 }
  0xdb   : > { %p8640_p5 = scmp.ne.s32.totalorder %s9086_s23, %s8639_s1  ;;  %p8641_p8 = pneg %p9092_p2 }
  0xdc   : > { %p8645_p4 = scmp.lt.u32.totalorder %s9086_s23, %s11880_s0  ;;  %p8646_p1 = scmp.lt.u32.totalorder %s8644_s13, %s8639_s1 }
  0xdd   : > { %p8642_p7 = pnand %p8641_p8, %p8640_p5  ;;  %p8648_p10 = scmp.lt.u32.totalorder %s8639_s1, %s9086_s23 }
  0xde   : > { %p8647_p3 = por %p8646_p1, %p8645_p4 }
  0xdf   : > { %p8643_p9 = pneg %p8642_p7 }
  0xe0   : > { %p8649_p11 = por %p8648_p10, %p8647_p3 }
  0xe2   : > { %p8650_p12 = pnand %p8649_p11, %p8643_p9 }
  0xe4   : > { %8653 = shalt.err (!%p8650_p12)
}
  0xe5   : > { %s8654_s14 = scalar_lea.vmem %s9088_s25, 512  ;;  %s8763_s20 = smov [#allocation2]  }
  0xe6   : > { %p8655_p5 = scmp.ne.s32.totalorder %s9088_s25, %s8654_s14  ;;  %s8659_s9 = sshll.u32 %s8763_s20, 4  ;;  %s8660_s9 = int_to_ptr.vmem [resolvable:$false] %s8659_s9 }
  0xe7   : > { %s8661_s28 = scalar_lea.vmem %s8660_s9, 1024  ;;  %p8662_p13 = scmp.lt.s32.totalorder %s9088_s25, %s8660_s9 }
  0xe8   : > { %p8657_p7 = pnand %p8655_p5, %p8641_p8  ;;  %p8663_p4 = scmp.lt.s32.totalorder %s8661_s28, %s8654_s14 }
  0xea   : > { %p8658_p0 = pneg %p8657_p7  ;;  %p8664_p1 = por %p8663_p4, %p8662_p13 }
  0xec   : > { %p8665_p3 = pnand %p8664_p1, %p8658_p0 }
  0xee   : > { %8668 = shalt.err (!%p8665_p3)
}
  0xef   : > { %8335 = dma.hbm_to_vmem [thread:$0]  (!%p9092_p2), %s9086_s23, 512, %s9088_s25, %s366_s19  }
  0xf0   : > { %p12164_p9 = scmp.ne.s32.totalorder %s12153_s16, 0 }
  0xf2   : > { %386 = sbr.rel (%p12164_p9) target bundleno = 1817 (0x719), region = 56 }
  0xf9   : > { %s9124_s1 = sand.u32 1, %s8743_s10  }
  0xfa   : > { %s6910_s3 = sshll.u32 %s9124_s1, 5  ;;  %s389_s13 = scalar_lea.sflag [#allocation3], %s9124_s1 }
  0xfb   : > { %s392_s18 = scalar_lea.vmem [#allocation2], %s6910_s3 }
  0xfc   : > { %8714 = dma.done.wait (%p9067_p6), %s389_s13, 512  }
  0xfd   : > { %8716 = vsyncadd (%p9067_p6), %s389_s13, 4294966784  ;;  %p12165_p13 = scmp.eq.s32.totalorder %s8849_s15, 0 }
  0xff   : > { %8718 = dma.done.wait (%p12165_p13), [#allocation6], 256   ;;  %p12166_p0 = pmov %p12165_p13 }
 0x101   : > { %8720 = vsyncadd (%p12166_p0), [#allocation6], 4294967040  ;;  %p12167_p2 = pmov %p12166_p0 }
 0x102   : > { %p12168_p8 = pmov %p12166_p0 }
 0x103   : > { %8722 = dma.done.wait (%p12167_p2), [#allocation9], 384  }
 0x104   : > { %8724 = vsyncadd (%p12168_p8), [#allocation9], 4294966912  ;;  %p12169_p10 = pmov %p12166_p0 }
 0x105   : > { %p12170_p11 = pmov %p12166_p0 }
 0x106   : > { %8726 = dma.done.wait (%p12169_p10), [#allocation12], 512  }
 0x107   : > { %8728 = vsyncadd (%p12170_p11), [#allocation12], 4294966784  ;;  %p12171_p6 = pmov %p12166_p0 }
 0x108   : > { %p12172_p12 = pmov %p12166_p0 }
 0x109   : > { %8730 = dma.done.wait (%p12171_p6), [#allocation15], 4352  }
 0x10a   : > { %8732 = vsyncadd (%p12172_p12), [#allocation15], 4294962944  ;;  %v11894_v0 = vmov 0.0   ;;  %v9150_v1 = vld [vmem:[%s392_s18] sm:$0xff]  ;;  %s8765_s16 = smov 16   ;;  %s8766_s29 = smov 17   ;;  %v521_v7 = vlaneseq }
 0x10b   : > { %912 = vmatprep.mubr.f32.mxu0 %v11894_v0  ;;  %1585 = vmatprep.mubr.f32.mxu1 %v11894_v0  ;;  %v9156_v2 = vld [vmem:[%s392_s18 + $0x8] sm:$0xff]  ;;  %v9162_v3 = vld [vmem:[%s392_s18 + $0x18] sm:$0xff]  ;;  %v9164_v4 = vld [vmem:[%s392_s18 + $0x10] sm:$0xff]  ;;  %s8767_s23 = smov 15   ;;  %s8768_s25 = smov 1   ;;  %v9382_v53 = vand.u32 4294901760, %v9150_v1 }
 0x10c   : > { %553 = vrot.lane.b32.xlu1 %v9150_v1, %s8765_s16  ;;  %513 = vrot.lane.b32.xlu0 %v9150_v1, %s8766_s29  ;;  %s8769_s26 = smov 127   ;;  %s8770_s19 = smov 113   ;;  %v463_v5 = vld [vmem:[#allocation5] ss:$2 sm:$0xf]  ;;  %v530_v10 = vshrl.u32 %v521_v7, 7 }
 0x10d   : > { %s8771_s17 = smov 112   ;;  %s8772_s14 = smov 111   ;;  %v9222_v6 = vld [vmem:[#allocation5 + $0x1] ss:$2 sm:$0xf]  ;;  %vm466_vm0 = vcmp.ge.s32.totalorder %v463_v5, 1 }
 0x10e   : > { %vm467_vm1 = vcmp.le.s32.totalorder %v463_v5, 16  ;;  %vm475_vm3 = vcmp.ge.s32.totalorder %v9222_v6, 0  ;;  %vm477_vm5 = vcmp.le.s32.totalorder %v9222_v6, 15  ;;  %vm487_vm6 = vcmp.ge.s32.totalorder %v463_v5, 0  ;;  %v819_v43 = vld [vmem:[#allocation7] sm:$0xff]  ;;  %12202 = vst [vmem:[#allocation43_spill] sm:$0xff] %v9382_v53 }
 0x10f   : > { %vm468_vm2 = vmand %vm466_vm0, %vm467_vm1  ;;  %vm488_vm7 = vcmp.le.s32.totalorder %v463_v5, 15  ;;  %vm469_vm8 = vcmp.ge.s32.totalorder %v9222_v6, 1  ;;  %vm481_vm10 = vcmp.ge.s32.totalorder %v9222_v6, 4294967295  ;;  %vm471_vm13 = vcmp.le.s32.totalorder %v9222_v6, 16  ;;  %s8774_s20 = smov 64   ;;  %s6919_s9 = sshll.u32 %s9124_s1, 4 }
 0x110   : > { %555 = vrot.lane.b32.xlu1 %v9156_v2, %s8765_s16  ;;  %515 = vrot.lane.b32.xlu0 %v9156_v2, %s8766_s29  ;;  %vm476_vm4 = vmand %vm468_vm2, %vm475_vm3  ;;  %vm483_vm15 = vcmp.le.s32.totalorder %v9222_v6, 14  ;;  %v9254_v11 = vand.u32 127, %v521_v7  ;;  %v9256_v12 = vsub.s32 1, %v530_v10  ;;  %v9272_v16 = vsub.s32 0, %v530_v10  ;;  %s458_s28 = scalar_lea.vmem [#allocation17], %s6919_s9  ;;  %s6934_s13 = sshll.u32 %s8849_s15, 8 }
 0x111   : > { %vm9231_vm9 = vmand %vm476_vm4, %vm477_vm5  ;;  %v9274_v17 = vsub.s32 2, %v530_v10  ;;  %v9276_v18 = vsub.s32 3, %v530_v10  ;;  %v9345_v41 = vand.u32 4294901760, %v9156_v2  ;;  %v9350_v42 = vand.u32 4294901760, %v9162_v3  ;;  %s6746_s3 = sshll.u32 %s458_s28, 4  ;;  %p12613_p7 = scmp.ne.s32.totalorder %s12161_s22, 0  ;;  %s11830_s3 = int_to_ptr.vmem [resolvable:$true] %s6746_s3 }
 0x112   : > { %vm9236_vm11 = vmand %vm487_vm6, %vm488_vm7  ;;  %vm498_vm6 = vcmp.ge.s32.totalorder %v463_v5, 4294967295  ;;  %vm499_vm7 = vcmp.le.s32.totalorder %v463_v5, 14  ;;  %v6921_v14 = vsel %vm9231_vm9, 1.0, %v11894_v0  ;;  %vm561_vm9 = vcmp.lt.s32.totalorder %v9254_v11, 16  ;;  %s8775_s15 = smov [#allocation17]  }
 0x113   : > { %vm470_vm12 = vmand %vm468_vm2, %vm469_vm8  ;;  %v9287_v23 = vrot.slane %v6921_v14, %v9256_v12  ;;  %v9291_v24 = vrot.slane %v6921_v14, %v9272_v16  ;;  %v9299_v26 = vrot.slane %v6921_v14, %v9274_v17  ;;  %v9302_v27 = vrot.slane %v6921_v14, %v9276_v18  ;;  %12196 = vst [vmem:[#allocation37_spill] sm:$0xff] %v9345_v41 }
 0x114   : > { %519 = vrot.lane.b32.xlu1 %v9162_v3, %s8766_s29  ;;  %517 = vrot.lane.b32.xlu0 %v9164_v4, %s8766_s29  ;;  %vm482_vm14 = vmand %vm468_vm2, %vm481_vm10  ;;  %12197 = vst [vmem:[#allocation38_spill] sm:$0xff] %v9350_v42  ;;  %v9385_v54 = vand.u32 4294901760, %v9164_v4  ;;  %v9392_v60 = vsub.f32 %v9156_v2, %v9345_v41  ;;  %v9396_v61 = vsub.f32 %v9162_v3, %v9350_v42 }
 0x115   : > { %vm490_vm0 = vmand %vm9236_vm11, %vm469_vm8  ;;  %12181 = vst [vmem:[#allocation24_spill] sm:$0xff] %v9287_v23  ;;  %v9426_v14 = vsub.f32 %v9150_v1, %v9382_v53 }
 0x116   : > { %vm472_vm1 = vmand %vm470_vm12, %vm471_vm13  ;;  %12182 = vst [vmem:[#allocation25_spill] sm:$0xff] %v9291_v24  ;;  %v9440_v37 = vand.u32 4294901760, %v9392_v60 }
 0x117   : > { %vm484_vm4 = vmand %vm482_vm14, %vm483_vm15  ;;  %v6920_v15 = vsel %vm472_vm1, 1.0, %v11894_v0  ;;  %12184 = vst [vmem:[#allocation27_spill] sm:$0xff] %v9299_v26 }
 0x118   : > { %559 = vrot.lane.b32.xlu1 %v9162_v3, %s8765_s16  ;;  %557 = vrot.lane.b32.xlu0 %v9164_v4, %s8765_s16  ;;  %vm9260_vm2 = vmand %vm490_vm0, %vm471_vm13  ;;  %v6922_v20 = vsel %vm484_vm4, 1.0, %v11894_v0  ;;  %v9296_v25 = vrot.slane %v6920_v15, %v9256_v12  ;;  %12185 = vst [vmem:[#allocation28_spill] sm:$0xff] %v9302_v27  ;;  %v9312_v29 = vrot.slane %v6920_v15, %v9272_v16 }
 0x119   : > { %vm494_vm12 = vmand %vm9236_vm11, %vm481_vm10  ;;  %vm523_vm11 = vcmp.lt.s32.totalorder %v9254_v11, 17  ;;  %v6923_v28 = vsel %vm9260_vm2, 1.0, %v11894_v0  ;;  %v9315_v30 = vrot.slane %v6920_v15, %v9274_v17  ;;  %v9318_v31 = vrot.slane %v6920_v15, %v9276_v18  ;;  %12203 = vst [vmem:[#allocation44_spill] sm:$0xff] %v9385_v54 }
 0x11a   : > { %vm9278_vm14 = vmand %vm498_vm6, %vm499_vm7  ;;  %12183 = vst [vmem:[#allocation26_spill] sm:$0xff] %v9296_v25  ;;  %v9321_v32 = vrot.slane %v6922_v20, %v9256_v12  ;;  %v9324_v33 = vrot.slane %v6922_v20, %v9272_v16  ;;  %v9327_v34 = vrot.slane %v6922_v20, %v9274_v17  ;;  %v9330_v35 = vrot.slane %v6922_v20, %v9276_v18 }
 0x11b   : > { %vm495_vm0 = vmand %vm494_vm12, %vm483_vm15  ;;  %12186 = vst [vmem:[#allocation29_spill] sm:$0xff] %v9312_v29  ;;  %v9342_v40 = vrot.slane %v6923_v28, %v9256_v12  ;;  %vm826_vm6 = vcmask 588800   ;;  %v9358_v46 = vrot.slane %v6923_v28, %v9272_v16  ;;  %v9361_v47 = vrot.slane %v6923_v28, %v9274_v17 }
 0x11c   : > { %593 = vrot.lane.b32.xlu1 %v9156_v2, %s8767_s23  ;;  %591 = vrot.lane.b32.xlu0 %v9150_v1, %s8767_s23  ;;  %vm501_vm1 = vmand %vm9278_vm14, %vm469_vm8  ;;  %12187 = vst [vmem:[#allocation30_spill] sm:$0xff] %v9315_v30  ;;  %v6924_v36 = vsel %vm495_vm0, 1.0, %v11894_v0  ;;  %v9370_v50 = vrot.slane %v6923_v28, %v9276_v18  ;;  %v828_v55 = vsel %vm826_vm6, %v819_v43, 0  ;;  %v9430_v15 = vsub.f32 %v9164_v4, %v9385_v54 }
 0x11d   : > { %12188 = vst [vmem:[#allocation31_spill] sm:$0xff] %v9318_v31  ;;  %12189 = vst [vmem:[#allocation32_spill] sm:$0xff] %v9321_v32  ;;  %v9373_v51 = vrot.slane %v6924_v36, %v9256_v12  ;;  %v9401_v63 = vrot.slane %v6924_v36, %v9274_v17  ;;  %v9404_v5 = vrot.slane %v6924_v36, %v9272_v16  ;;  %v9418_v9 = vand.u32 4294901760, %v828_v55 }
 0x11e   : > { %12190 = vst [vmem:[#allocation33_spill] sm:$0xff] %v9324_v33  ;;  %12191 = vst [vmem:[#allocation34_spill] sm:$0xff] %v9327_v34  ;;  %vm713_vm2 = vcmp.lt.s32.totalorder %v9254_v11, 113  ;;  %vm751_vm12 = vcmp.lt.s32.totalorder %v9254_v11, 112 }
 0x11f   : > { %12192 = vst [vmem:[#allocation35_spill] sm:$0xff] %v9330_v35  ;;  %vm9337_vm8 = vmand %vm9278_vm14, %vm475_vm3 }
 0x120   : > { %631 = vrot.lane.b32.xlu1 %v9156_v2, %s8768_s25  ;;  %629 = vrot.lane.b32.xlu0 %v9150_v1, %s8768_s25  ;;  %12195 = vst [vmem:[#allocation36_spill] sm:$0xff] %v9342_v40  ;;  %vm502_vm4 = vmand %vm501_vm1, %vm471_vm13  ;;  %vm599_vm13 = vcmp.lt.s32.totalorder %v9254_v11, 15 }
 0x121   : > { %12198 = vst [vmem:[#allocation39_spill] sm:$0xff] %v9358_v46  ;;  %12199 = vst [vmem:[#allocation40_spill] sm:$0xff] %v9361_v47  ;;  %v6925_v52 = vsel %vm502_vm4, 1.0, %v11894_v0 }
 0x122   : > { %12200 = vst [vmem:[#allocation41_spill] sm:$0xff] %v9370_v50  ;;  %12201 = vst [vmem:[#allocation42_spill] sm:$0xff] %v9373_v51  ;;  %v9416_v8 = vrot.slane %v6925_v52, %v9256_v12 }
 0x123   : > { %vm506_vm3 = vmand %vm9337_vm8, %vm477_vm5  ;;  %12204 = vst [vmem:[#allocation45_spill] sm:$0xff] %v9392_v60  ;;  %vm637_vm5 = vcmp.lt.s32.totalorder %v9254_v11, 1 }
 0x124   : > { %597 = vrot.lane.b32.xlu1 %v9162_v3, %s8767_s23  ;;  %595 = vrot.lane.b32.xlu0 %v9164_v4, %s8767_s23  ;;  %12205 = vst [vmem:[#allocation46_spill] sm:$0xff] %v9396_v61  ;;  %12206 = vst [vmem:[#allocation47_spill] sm:$0xff] %v9401_v63  ;;  %v9407_v7 = vsel %vm506_vm3, 1.0, %v11894_v0 }
 0x125   : > { %12207 = vst [vmem:[#allocation48_spill] sm:$0xff] %v9404_v5  ;;  %12209 = vst [vmem:[#allocation50_spill] sm:$0xff] %v9416_v8 }
 0x126   : > { %12210 = vst [vmem:[#allocation51_spill] sm:$0xff] %v9418_v9  ;;  %12212 = vst [vmem:[#allocation53_spill] sm:$0xff] %v9426_v14 }
 0x127   : > { %12213 = vst [vmem:[#allocation54_spill] sm:$0xff] %v9430_v15  ;;  %12215 = vst [vmem:[#allocation56_spill] sm:$0xff] %v9440_v37 }
 0x128   : > { %635 = vrot.lane.b32.xlu1 %v9162_v3, %s8768_s25  ;;  %633 = vrot.lane.b32.xlu0 %v9164_v4, %s8768_s25  ;;  %vm9467_vm7 = vmand %vm9278_vm14, %vm481_vm10  ;;  %vm789_vm14 = vcmp.lt.s32.totalorder %v9254_v11, 111 }
 0x129   : > { %vm510_vm10 = vmand %vm9467_vm7, %vm483_vm15  ;;  %vm675_vm15 = vcmp.lt.s32.totalorder %v9254_v11, 127 }
 0x12c   : > { %671 = vrot.lane.b32.xlu1 %v9164_v4, %s8769_s26  ;;  %669 = vrot.lane.b32.xlu0 %v9156_v2, %s8769_s26 }
 0x130   : > { %673 = vrot.lane.b32.xlu1 %v9162_v3, %s8769_s26  ;;  %667 = vrot.lane.b32.xlu0 %v9150_v1, %s8769_s26 }
 0x134   : > { %709 = vrot.lane.b32.xlu1 %v9164_v4, %s8770_s19  ;;  %707 = vrot.lane.b32.xlu0 %v9156_v2, %s8770_s19 }
 0x138   : > { %747 = vrot.lane.b32.xlu1 %v9164_v4, %s8771_s17  ;;  %745 = vrot.lane.b32.xlu0 %v9156_v2, %s8771_s17 }
 0x13c   : > { %711 = vrot.lane.b32.xlu1 %v9162_v3, %s8770_s19  ;;  %705 = vrot.lane.b32.xlu0 %v9150_v1, %s8770_s19 }
 0x140   : > { %749 = vrot.lane.b32.xlu1 %v9162_v3, %s8771_s17  ;;  %743 = vrot.lane.b32.xlu0 %v9150_v1, %s8771_s17 }
 0x144   : > { %785 = vrot.lane.b32.xlu1 %v9164_v4, %s8772_s14  ;;  %783 = vrot.lane.b32.xlu0 %v9156_v2, %s8772_s14 }
 0x148   : > { %787 = vrot.lane.b32.xlu1 %v9162_v3, %s8772_s14  ;;  %781 = vrot.lane.b32.xlu0 %v9150_v1, %s8772_s14  ;;  %v9413_v3 = vrot.slane %v6924_v36, %v9276_v18  ;;  %v9437_v36 = vrot.slane %v9407_v7, %v9256_v12 }
 0x14a   : > { %12208 = vst [vmem:[#allocation49_spill] sm:$0xff] %v9413_v3  ;;  %12214 = vst [vmem:[#allocation55_spill] sm:$0xff] %v9437_v36 }
 0x17e   : > { %v9283_v21 = vpop.permute.xlu1 %553  ;;  %v514_v22 = vpop.permute.xlu0 %513 }
 0x182   : > { %v556_v38 = vpop.permute.xlu1 %555  ;;  %v516_v39 = vpop.permute.xlu0 %515 }
 0x183   : > { %v564_v44 = vsel %vm561_vm9, %v9283_v21, %v556_v38  ;;  %v526_v45 = vsel %vm523_vm11, %v514_v22, %v516_v39 }
 0x184   : > { %v9364_v48 = vmul.f32 %v9287_v23, %v564_v44  ;;  %v9367_v49 = vmul.f32 %v9296_v25, %v526_v45 }
 0x186   : > { %v834_v56 = vand.u32 4294901760, %v9364_v48  ;;  %v830_v57 = vand.u32 4294901760, %v9367_v49  ;;  %v520_v58 = vpop.permute.xlu1 %519  ;;  %v518_v59 = vpop.permute.xlu0 %517 }
 0x187   : > { %v527_v62 = vsel %vm523_vm11, %v520_v58, %v514_v22  ;;  %v524_v2 = vsel %vm523_vm11, %v518_v59, %v520_v58  ;;  %v525_v10 = vsel %vm523_vm11, %v516_v39, %v518_v59  ;;  %v9443_v39 = vand.u32 4294901760, %v9396_v61 }
 0x188   : > { %v9422_v13 = vpack.c.bf16 %v834_v56, %v830_v57  ;;  %v9433_v20 = vmul.f32 %v9312_v29, %v527_v62  ;;  %v9446_v1 = vmul.f32 %v9318_v31, %v524_v2  ;;  %v551_v45 = vmul.f32 %v9315_v30, %v525_v10 }
 0x189   : > { %12216 = vst [vmem:[#allocation57_spill] sm:$0xff] %v9443_v39  ;;  %v9472_v62 = vsub.f32 %v828_v55, %v9418_v9  ;;  %v9478_v2 = vrot.slane %v6925_v52, %v9274_v17  ;;  %v9481_v10 = vand.u32 4294901760, %v9426_v14  ;;  %v9489_v55 = vrot.slane %v6925_v52, %v9272_v16 }
 0x18a   : > { %12211 = vst [vmem:[#allocation52_spill] sm:$0xff] %v9422_v13  ;;  %v560_v22 = vpop.permute.xlu1 %559  ;;  %v558_v28 = vpop.permute.xlu0 %557  ;;  %7392 = vmatprep.subr.bf16.mxu0 %v9422_v13  ;;  %v832_v0 = vand.u32 4294901760, %v9433_v20  ;;  %v1505_v31 = vand.u32 4294901760, %v551_v45  ;;  %v1648_v29 = vsub.f32 %v9396_v61, %v9443_v39  ;;  %v9519_v25 = vsub.f32 %v9364_v48, %v834_v56 }
 0x18b   : > { %v565_v4 = vsel %vm561_vm9, %v560_v22, %v9283_v21  ;;  %v562_v43 = vsel %vm561_vm9, %v558_v28, %v560_v22  ;;  %v563_v44 = vsel %vm561_vm9, %v556_v38, %v558_v28  ;;  %12219 = vst [vmem:[#allocation58_spill] sm:$0xff] %v9472_v62  ;;  %12220 = vst [vmem:[#allocation59_spill] sm:$0xff] %v9478_v2  ;;  %v9484_v22 = vand.u32 4294901760, %v9430_v15 }
 0x18c   : > { %v9458_v58 = vmul.f32 %v9291_v24, %v565_v4  ;;  %v9461_v59 = vmul.f32 %v9299_v26, %v563_v44  ;;  %v9475_v38 = vmul.f32 %v9302_v27, %v562_v43  ;;  %12221 = vst [vmem:[#allocation60_spill] sm:$0xff] %v9481_v10  ;;  %12223 = vst [vmem:[#allocation62_spill] sm:$0xff] %v9489_v55  ;;  %v1503_v27 = vand.u32 4294901760, %v9446_v1 }
 0x18d   : > { %12222 = vst [vmem:[#allocation61_spill] sm:$0xff] %v9484_v22  ;;  %v9492_v43 = vrot.slane %v6925_v52, %v9276_v18  ;;  %v975_v28 = vsub.f32 %v9392_v60, %v9440_v37  ;;  %v9506_v52 = vand.u32 4294901760, %v9472_v62  ;;  %v981_v6 = vsub.f32 %v9426_v14, %v9481_v10 }
 0x18e   : > { %v836_v19 = vand.u32 4294901760, %v9458_v58  ;;  %v594_v4 = vpop.permute.xlu1 %593  ;;  %v592_v44 = vpop.permute.xlu0 %591  ;;  %v1507_v26 = vand.u32 4294901760, %v9475_v38  ;;  %v1654_v21 = vsub.f32 %v9430_v15, %v9484_v22  ;;  %v9522_v37 = vsub.f32 %v9367_v49, %v830_v57 }
 0x18f   : > { %12224 = vst [vmem:[#allocation63_spill] sm:$0xff] %v9492_v43  ;;  %v602_v30 = vsel %vm599_vm13, %v592_v44, %v594_v4  ;;  %12225 = vst [vmem:[#allocation64_spill] sm:$0xff] %v9506_v52  ;;  %v12228_v39 = vand.u32 4294901760, %v9461_v59  ;;  %v12230_v9 = vmov 0.0   ;;  %v9538_v49 = vrot.slane %v9407_v7, %v9274_v17 }
 0x190   : > { %v9510_v24 = vpack.c.bf16 %v836_v19, %v832_v0  ;;  %v9512_v23 = vpack.c.bf16 %v1507_v26, %v1503_v27  ;;  %v6927_v2 = vsel %vm510_vm10, 1.0, %v12230_v9  ;;  %v9530_v43 = vmul.f32 %v9321_v32, %v602_v30 }
 0x191   : > { %v9526_v61 = vpack.c.bf16 %v12228_v39, %v1505_v31  ;;  %12231 = vst [vmem:[#allocation68_spill] sm:$0xff] %v9538_v49  ;;  %v9540_v56 = vand.u32 4294901760, %v975_v28  ;;  %v9549_v30 = vrot.slane %v9407_v7, %v9272_v16  ;;  %v9553_v39 = vrot.slane %v9407_v7, %v9276_v18 }
 0x192   : > { %12226 = vst [vmem:[#allocation65_spill] sm:$0xff] %v9510_v24  ;;  %12227 = vst [vmem:[#allocation66_spill] sm:$0xff] %v9512_v23  ;;  %v632_v13 = vpop.permute.xlu1 %631  ;;  %v630_v60 = vpop.permute.xlu0 %629  ;;  %7394 = vmatpush1.bf16.msra.mxu0 %v9510_v24  ;;  %7488 = vmatprep.subr.bf16.mxu1 %v9512_v23  ;;  %v916_v32 = vsub.f32 %v9472_v62, %v9506_v52  ;;  %v9558_v28 = vrot.slane %v6927_v2, %v9256_v12  ;;  %v9564_v22 = vand.u32 4294901760, %v1654_v21 }
 0x193   : > { %12229 = vst [vmem:[#allocation67_spill] sm:$0xff] %v9526_v61  ;;  %v640_v48 = vsel %vm637_vm5, %v630_v60, %v632_v13  ;;  %12232 = vst [vmem:[#allocation69_spill] sm:$0xff] %v9540_v56  ;;  %7490 = vmatpush1.bf16.msra.mxu1 %v9526_v61  ;;  %v9568_v24 = vrot.slane %v6927_v2, %v9274_v17  ;;  %v838_v12 = vand.u32 4294901760, %v9530_v43 }
 0x194   : > { %v9543_v57 = vmul.f32 %v9342_v40, %v640_v48  ;;  %12233 = vst [vmem:[#allocation70_spill] sm:$0xff] %v9549_v30  ;;  %12234 = vst [vmem:[#allocation71_spill] sm:$0xff] %v9553_v39  ;;  %v9560_v48 = vand.u32 4294901760, %v1648_v29  ;;  %v9562_v40 = vand.u32 4294901760, %v981_v6  ;;  %v9576_v6 = vrot.slane %v6927_v2, %v9272_v16 }
 0x195   : > { %12235 = vst [vmem:[#allocation72_spill] sm:$0xff] %v9558_v28  ;;  %12238 = vst [vmem:[#allocation75_spill] sm:$0xff] %v9564_v22  ;;  %v9579_v21 = vrot.slane %v6927_v2, %v9276_v18  ;;  %v9582_v62 = vsub.f32 %v9433_v20, %v832_v0  ;;  %v9584_v17 = vsub.f32 %v551_v45, %v1505_v31  ;;  %v9588_v52 = vand.u32 4294901760, %v916_v32 }
 0x196   : > { %12236 = vst [vmem:[#allocation73_spill] sm:$0xff] %v9560_v48  ;;  %12237 = vst [vmem:[#allocation74_spill] sm:$0xff] %v9562_v40  ;;  %v842_v10 = vand.u32 4294901760, %v9543_v57  ;;  %v598_v61 = vpop.permute.xlu1 %597  ;;  %v596_v23 = vpop.permute.xlu0 %595  ;;  %v9591_v15 = vsub.f32 %v9446_v1, %v1503_v27  ;;  %v9601_v0 = vsub.f32 %v9475_v38, %v1507_v26  ;;  %v12244_v20 = vand.u32 4294901760, %v9522_v37 }
 0x197   : > { %12239 = vst [vmem:[#allocation76_spill] sm:$0xff] %v9568_v24  ;;  %v603_v29 = vsel %vm599_vm13, %v598_v61, %v592_v44  ;;  %12240 = vst [vmem:[#allocation77_spill] sm:$0xff] %v9576_v6  ;;  %v600_v7 = vsel %vm599_vm13, %v596_v23, %v598_v61  ;;  %v9594_v44 = vsub.f32 %v9458_v58, %v836_v19  ;;  %v12245_v1 = vand.u32 4294901760, %v9519_v25 }
 0x198   : > { %12241 = vst [vmem:[#allocation78_spill] sm:$0xff] %v9579_v21  ;;  %12242 = vst [vmem:[#allocation79_spill] sm:$0xff] %v9584_v17  ;;  %v601_v16 = vsel %vm599_vm13, %v594_v4, %v596_v23  ;;  %v9598_v18 = vpack.c.bf16 %v842_v10, %v838_v12  ;;  %v9604_v31 = vmul.f32 %v9324_v33, %v603_v29  ;;  %v12246_v19 = vand.u32 4294901760, %v9461_v59 }
 0x199   : > { %v9609_v27 = vsub.f32 %v9522_v37, %v12244_v20  ;;  %v9614_v45 = vsub.f32 %v9519_v25, %v12245_v1  ;;  %v9617_v23 = vmul.f32 %v9330_v35, %v600_v7  ;;  %v627_v7 = vmul.f32 %v9327_v34, %v601_v16 }
 0x19a   : > { %12243 = vst [vmem:[#allocation80_spill] sm:$0xff] %v9598_v18  ;;  %v636_v61 = vpop.permute.xlu1 %635  ;;  %v634_v32 = vpop.permute.xlu0 %633  ;;  %7396 = vmatprep.subr.bf16.mxu0 %v9598_v18  ;;  %v9630_v4 = vsub.f32 %v9461_v59, %v12246_v19  ;;  %v9660_v2 = vsub.f32 %v9543_v57, %v842_v10  ;;  %v12254_v10 = vand.u32 4294901760, %v9601_v0 }
 0x19b   : > { %v641_v26 = vsel %vm637_vm5, %v636_v61, %v630_v60  ;;  %v638_v58 = vsel %vm637_vm5, %v634_v32, %v636_v61  ;;  %v639_v38 = vsel %vm637_vm5, %v632_v13, %v634_v32  ;;  %v840_v13 = vand.u32 4294901760, %v9604_v31 }
 0x19c   : > { %12247 = vst [vmem:[#allocation81_spill] sm:$0xff] %v9630_v4  ;;  %v663_v29 = vmul.f32 %v9358_v46, %v641_v26  ;;  %v665_v61 = vmul.f32 %v9361_v47, %v639_v38  ;;  %v9638_v1 = vmul.f32 %v9370_v50, %v638_v58  ;;  %v928_v16 = vand.u32 4294901760, %v9609_v27 }
 0x19d   : > { %v1513_v50 = vand.u32 4294901760, %v627_v7  ;;  %v12248_v26 = vand.u32 4294901760, %v9594_v44  ;;  %v12250_v38 = vand.u32 4294901760, %v9617_v23  ;;  %v9671_v46 = vsub.f32 %v9530_v43, %v838_v12 }
 0x19e   : > { %v844_v32 = vand.u32 4294901760, %v663_v29  ;;  %v672_v59 = vpop.permute.xlu1 %671  ;;  %v670_v19 = vpop.permute.xlu0 %669  ;;  %v1517_v20 = vand.u32 4294901760, %v665_v61  ;;  %v12251_v34 = vand.u32 4294901760, %v9638_v1  ;;  %v1612_v57 = vsub.f32 %v9601_v0, %v12254_v10 }
 0x19f   : > { %v677_v58 = vsel %vm675_vm15, %v670_v19, %v672_v59  ;;  %v9657_v60 = vsub.f32 %v9594_v44, %v12248_v26  ;;  %v940_v12 = vand.u32 4294901760, %v9614_v45  ;;  %v12256_v10 = vand.u32 4294901760, %v9584_v17 }
 0x1a0   : > { %v9650_v47 = vmul.f32 %v9373_v51, %v677_v58  ;;  %v9662_v35 = vpack.c.bf16 %v844_v32, %v840_v13  ;;  %v9668_v58 = vpack.c.bf16 %v12251_v34, %v12250_v38  ;;  %v9674_v26 = vpack.c.bf16 %v1517_v20, %v1513_v50 }
 0x1a1   : > { %v12255_v38 = vand.u32 4294901760, %v9582_v62  ;;  %v9725_v14 = vsub.f32 %v627_v7, %v1513_v50  ;;  %v12269_v7 = vand.u32 4294901760, %v9660_v2 }
 0x1a2   : > { %12249 = vst [vmem:[#allocation82_spill] sm:$0xff] %v9662_v35  ;;  %12252 = vst [vmem:[#allocation83_spill] sm:$0xff] %v9668_v58  ;;  %v674_v51 = vpop.permute.xlu1 %673  ;;  %v668_v33 = vpop.permute.xlu0 %667  ;;  %7398 = vmatpush1.bf16.msra.mxu0 %v9662_v35  ;;  %7492 = vmatprep.subr.bf16.mxu1 %v9668_v58 }
 0x1a3   : > { %12253 = vst [vmem:[#allocation84_spill] sm:$0xff] %v9674_v26  ;;  %v676_v18 = vsel %vm675_vm15, %v672_v59, %v674_v51  ;;  %v678_v34 = vsel %vm675_vm15, %v668_v33, %v670_v19  ;;  %v679_v43 = vsel %vm675_vm15, %v674_v51, %v668_v33  ;;  %v933_v27 = vsub.f32 %v9582_v62, %v12255_v38 }
 0x1a4   : > { %v1606_v59 = vsub.f32 %v9584_v17, %v12256_v10  ;;  %v9695_v35 = vmul.f32 %v9401_v63, %v676_v18  ;;  %v9698_v58 = vmul.f32 %v9404_v5, %v678_v34  ;;  %7494 = vmatpush1.bf16.msra.mxu1 %v9674_v26  ;;  %v12257_v33 = vand.u32 4294901760, %v9630_v4  ;;  %12262 = vst [vmem:[#allocation87_spill] sm:$0xff] %v9725_v14 }
 0x1a5   : > { %v9705_v45 = vmul.f32 %v9413_v3, %v679_v43  ;;  %v12258_v19 = vand.u32 4294901760, %v9650_v47  ;;  %v946_v26 = vand.u32 4294901760, %v9657_v60  ;;  %v9720_v3 = vsub.f32 %v9604_v31, %v840_v13 }
 0x1a6   : > { %v1618_v51 = vsub.f32 %v9630_v4, %v12257_v33  ;;  %v1525_v10 = vand.u32 4294901760, %v9695_v35  ;;  %v710_v63 = vpop.permute.xlu1 %709  ;;  %v708_v5 = vpop.permute.xlu0 %707  ;;  %v12260_v33 = vand.u32 4294901760, %v9591_v15  ;;  %v1613_v18 = vand.u32 4294901760, %v1612_v57 }
 0x1a7   : > { %v9710_v38 = vpack.c.bf16 %v12258_v19, %v9345_v41  ;;  %12261 = vst [vmem:[#allocation86_spill] sm:$0xff] %v9720_v3  ;;  %v11962_v19 = vand.u32 4294901760, %v9705_v45  ;;  %v9727_v34 = vsub.f32 %v663_v29, %v844_v32  ;;  %v715_v60 = vsel %vm713_vm2, %v708_v5, %v710_v63 }
 0x1a8   : > { %v1600_v43 = vsub.f32 %v9591_v15, %v12260_v33  ;;  %v12264_v33 = vand.u32 4294901760, %v9698_v58  ;;  %v9736_v31 = vsub.f32 %v665_v61, %v1517_v20  ;;  %v9744_v50 = vpack.c.bf16 %v1525_v10, %v9385_v54 }
 0x1a9   : > { %12259 = vst [vmem:[#allocation85_spill] sm:$0xff] %v9710_v38  ;;  %7400 = vmatprep.subr.bf16.mxu0 %v9710_v38  ;;  %12263 = vst [vmem:[#allocation88_spill] sm:$0xff] %v9727_v34  ;;  %v9741_v13 = vpack.c.bf16 %v11962_v19, %v9350_v42  ;;  %v963_v29 = vsub.f32 %v9660_v2, %v12269_v7  ;;  %v934_v20 = vand.u32 4294901760, %v933_v27  ;;  %v1619_v41 = vand.u32 4294901760, %v1618_v51 }
 0x1aa   : > { %v9734_v4 = vpack.c.bf16 %v12264_v33, %v9382_v53  ;;  %12266 = vst [vmem:[#allocation90_spill] sm:$0xff] %v9736_v31  ;;  %12268 = vst [vmem:[#allocation92_spill] sm:$0xff] %v9744_v50  ;;  %v748_v32 = vpop.permute.xlu1 %747  ;;  %v746_v57 = vpop.permute.xlu0 %745  ;;  %v9750_v33 = vpack.c.bf16 %v940_v12, %v928_v16  ;;  %v1601_v61 = vand.u32 4294901760, %v1600_v43  ;;  %v9754_v19 = vmul.f32 %v9416_v8, %v715_v60 }
 0x1ab   : > { %12267 = vst [vmem:[#allocation91_spill] sm:$0xff] %v9741_v13  ;;  %7496 = vmatprep.subr.bf16.mxu1 %v9741_v13  ;;  %v753_v54 = vsel %vm751_vm12, %v746_v57, %v748_v32  ;;  %v12270_v7 = vand.u32 4294901760, %v9671_v46  ;;  %v1607_v51 = vand.u32 4294901760, %v1606_v59  ;;  %v9770_v60 = vpack.c.bf16 %v946_v26, %v934_v20 }
 0x1ac   : > { %12265 = vst [vmem:[#allocation89_spill] sm:$0xff] %v9734_v4  ;;  %7402 = vmatpush1.bf16.msra.mxu0 %v9734_v4  ;;  %v9765_v12 = vmul.f32 %v9437_v36, %v753_v54  ;;  %7498 = vmatpush1.bf16.msra.mxu1 %v9744_v50  ;;  %v9772_v53 = vpack.c.bf16 %v1613_v18, %v1601_v61  ;;  %v964_v8 = vand.u32 4294901760, %v963_v29  ;;  %v12273_v54 = vand.u32 4294901760, %v9638_v1 }
 0x1ad   : > { %v951_v42 = vsub.f32 %v9671_v46, %v12270_v7  ;;  %v12271_v7 = vand.u32 4294901760, %v9617_v23  ;;  %v9785_v43 = vpack.c.bf16 %v1619_v41, %v1607_v51  ;;  %v12274_v26 = vand.u32 4294901760, %v9720_v3 }
 0x1ae   : > { %v9782_v27 = vsub.f32 %v9638_v1, %v12273_v54  ;;  %v858_v36 = vand.u32 4294901760, %v9765_v12  ;;  %v712_v59 = vpop.permute.xlu1 %711  ;;  %v706_v50 = vpop.permute.xlu0 %705  ;;  %v854_v29 = vand.u32 4294901760, %v9754_v19  ;;  %v12275_v61 = vand.u32 4294901760, %v9725_v14 }
 0x1af   : > { %v9777_v16 = vsub.f32 %v9617_v23, %v12271_v7  ;;  %v957_v18 = vsub.f32 %v9720_v3, %v12274_v26  ;;  %v716_v23 = vsel %vm713_vm2, %v706_v50, %v708_v5  ;;  %v952_v20 = vand.u32 4294901760, %v951_v42 }
 0x1b0   : > { %v9796_v1 = vsub.f32 %v9725_v14, %v12275_v61  ;;  %v12276_v7 = vand.u32 4294901760, %v9727_v34  ;;  %v12277_v51 = vand.u32 4294901760, %v9650_v47  ;;  %v717_v26 = vsel %vm713_vm2, %v712_v59, %v706_v50 }
 0x1b1   : > { %12272 = vst [vmem:[#allocation93_spill] sm:$0xff] %v9777_v16  ;;  %v12278_v5 = vand.u32 4294901760, %v9736_v31  ;;  %v714_v61 = vsel %vm713_vm2, %v710_v63, %v712_v59  ;;  %v9815_v4 = vpack.c.bf16 %v858_v36, %v854_v29  ;;  %v9817_v13 = vpack.c.bf16 %v964_v8, %v952_v20 }
 0x1b2   : > { %v969_v41 = vsub.f32 %v9727_v34, %v12276_v7  ;;  %v9804_v54 = vsub.f32 %v9650_v47, %v12277_v51  ;;  %v9820_v7 = vsub.f32 %v9695_v35, %v1525_v10  ;;  %v739_v47 = vmul.f32 %v9489_v55, %v716_v23  ;;  %v750_v51 = vpop.permute.xlu1 %749  ;;  %v744_v38 = vpop.permute.xlu0 %743  ;;  %v12282_v23 = vld [vmem:[#allocation59_spill] sm:$0xff] }
 0x1b3   : > { %v9811_v42 = vsub.f32 %v9736_v31, %v12278_v5  ;;  %12279 = vst [vmem:[#allocation94_spill] sm:$0xff] %v9815_v4  ;;  %v12280_v5 = vld [vmem:[#allocation63_spill] sm:$0xff]  ;;  %v752_v63 = vsel %vm751_vm12, %v748_v32, %v750_v51  ;;  %v754_v8 = vsel %vm751_vm12, %v744_v38, %v746_v57  ;;  %v755_v35 = vsel %vm751_vm12, %v750_v51, %v744_v38 }
 0x1b4   : > { %v742_v31 = vmul.f32 %v12280_v5, %v717_v26  ;;  %7404 = vmatprep.subr.bf16.mxu0 %v9815_v4  ;;  %v12281_v10 = vand.u32 4294901760, %v9698_v58  ;;  %v741_v20 = vmul.f32 %v12282_v23, %v714_v61  ;;  %v779_v26 = vmul.f32 %v9538_v49, %v752_v63 }
 0x1b5   : > { %v958_v14 = vand.u32 4294901760, %v957_v18  ;;  %v12283_v32 = vand.u32 4294901760, %v9705_v45  ;;  %v777_v57 = vmul.f32 %v9549_v30, %v754_v8  ;;  %v780_v38 = vmul.f32 %v9553_v39, %v755_v35 }
 0x1b6   : > { %v9836_v59 = vsub.f32 %v9698_v58, %v12281_v10  ;;  %v970_v51 = vand.u32 4294901760, %v969_v41  ;;  %v856_v55 = vand.u32 4294901760, %v739_v47  ;;  %v1533_v58 = vand.u32 4294901760, %v779_v26  ;;  %v786_v10 = vpop.permute.xlu1 %785  ;;  %v784_v4 = vpop.permute.xlu0 %783 }
 0x1b7   : > { %v9843_v50 = vsub.f32 %v9705_v45, %v12283_v32  ;;  %v12284_v61 = vand.u32 4294901760, %v9777_v16  ;;  %v1527_v63 = vand.u32 4294901760, %v742_v31  ;;  %v860_v23 = vand.u32 4294901760, %v777_v57 }
 0x1b8   : > { %v1531_v45 = vand.u32 4294901760, %v780_v38  ;;  %v791_v8 = vsel %vm789_vm14, %v784_v4, %v786_v10  ;;  %v1529_v41 = vand.u32 4294901760, %v741_v20  ;;  %v12285_v5 = vand.u32 4294901760, %v9782_v27 }
 0x1b9   : > { %v9851_v18 = vsub.f32 %v9777_v16, %v12284_v61  ;;  %v816_v32 = vmul.f32 %v9558_v28, %v791_v8  ;;  %v9862_v30 = vpack.c.bf16 %v860_v23, %v856_v55  ;;  %v9864_v61 = vpack.c.bf16 %v970_v51, %v958_v14 }
 0x1ba   : > { %v1636_v39 = vsub.f32 %v9782_v27, %v12285_v5  ;;  %v9860_v49 = vpack.c.bf16 %v1531_v45, %v1527_v63  ;;  %v9868_v3 = vsub.f32 %v9754_v19, %v854_v29  ;;  %v9871_v35 = vsub.f32 %v9765_v12, %v858_v36  ;;  %v788_v8 = vpop.permute.xlu1 %787  ;;  %v782_v28 = vpop.permute.xlu0 %781 }
 0x1bb   : > { %v9873_v16 = vand.u32 4294901760, %v816_v32  ;;  %v9875_v17 = vpack.c.bf16 %v1533_v58, %v1529_v41  ;;  %v790_v5 = vsel %vm789_vm14, %v786_v10, %v788_v8  ;;  %v792_v14 = vsel %vm789_vm14, %v782_v28, %v784_v4  ;;  %7406 = vmatpush1.bf16.msra.mxu0 %v9862_v30 }
 0x1bc   : > { %7500 = vmatprep.subr.bf16.mxu1 %v9860_v49  ;;  %v793_v19 = vsel %vm789_vm14, %v788_v8, %v782_v28  ;;  %v1625_v36 = vand.u32 4294901760, %v9851_v18  ;;  %v9886_v12 = vsub.f32 %v780_v38, %v1531_v45  ;;  %v817_v29 = vmul.f32 %v9568_v24, %v790_v5 }
 0x1bd   : > { %v815_v51 = vmul.f32 %v9576_v6, %v792_v14  ;;  %7502 = vmatpush1.bf16.msra.mxu1 %v9875_v17  ;;  %v12286_v34 = vand.u32 4294901760, %v9836_v59  ;;  %v9897_v28 = vsub.f32 %v777_v57, %v860_v23  ;;  %v818_v8 = vmul.f32 %v9579_v21, %v793_v19  ;;  %863 = vmatprep.subr.mxu0 %v9873_v16 }
 0x1be   : > { %v12287_v38 = vand.u32 4294901760, %v9804_v54  ;;  %v9904_v45 = vsub.f32 %v742_v31, %v1527_v63  ;;  %v9906_v5 = vand.u32 4294901760, %v817_v29  ;;  %v11998_v10 = vand.u32 4294901760, %v9871_v35 }
 0x1bf   : > { %v9895_v4 = vsub.f32 %v9836_v59, %v12286_v34  ;;  %v9908_v14 = vand.u32 4294901760, %v815_v51  ;;  %v9911_v34 = vsub.f32 %v739_v47, %v856_v55  ;;  %v9913_v23 = vsub.f32 %v779_v26, %v1533_v58 }
 0x1c0   : > { %v987_v18 = vsub.f32 %v9804_v54, %v12287_v38  ;;  %v9915_v57 = vand.u32 4294901760, %v818_v8  ;;  %v1637_v19 = vand.u32 4294901760, %v1636_v39  ;;  %v12288_v24 = vand.u32 4294901760, %v9820_v7 }
 0x1c1   : > { %865 = vmatpush1.msra.mxu0 %v9908_v14  ;;  %v12289_v31 = vand.u32 4294901760, %v9843_v50  ;;  %v12004_v38 = vand.u32 4294901760, %v9868_v3  ;;  %v11999_v55 = vand.u32 4294901760, %v9886_v12  ;;  %v9928_v47 = vsub.f32 %v741_v20, %v1529_v41 }
 0x1c2   : > { %v9920_v21 = vsub.f32 %v9820_v7, %v12288_v24  ;;  %1536 = vmatprep.subr.mxu1 %v9915_v57  ;;  %7408 = vmatprep.subr.bf16.mxu0 %v9750_v33  ;;  %v1631_v24 = vand.u32 4294901760, %v9796_v1  ;;  %v1643_v39 = vand.u32 4294901760, %v9811_v42  ;;  %v9936_v58 = vsub.f32 %v816_v32, %v9873_v16 }
 0x1c3   : > { %v1660_v63 = vsub.f32 %v9843_v50, %v12289_v31  ;;  %1538 = vmatpush1.msra.mxu1 %v9906_v5  ;;  %918 = vmatmul.mubr.f32.vlgmr.msra.gmra.mrb[0].mxu0 %v9588_v52  ;;  %v988_v31 = vand.u32 4294901760, %v987_v18  ;;  %v1011_v20 = vsub.f32 %v9871_v35, %v11998_v10  ;;  %v12002_v41 = vand.u32 4294901760, %v9904_v45 }
 0x1c4   : > { %v12000_v33 = vand.u32 4294901760, %v9911_v34  ;;  %v12001_v1 = vand.u32 4294901760, %v9913_v23  ;;  %7410 = vmatpush1.bf16.msra.mxu0 %v9770_v60  ;;  %7504 = vmatprep.subr.bf16.mxu1 %v9772_v53  ;;  %v7507_v42 = vpack.c.bf16 %v1637_v19, %v1625_v36  ;;  %v994_v32 = vand.u32 4294901760, %v9895_v4 }
 0x1c5   : > { %v9950_v26 = vsub.f32 %v818_v8, %v9915_v57  ;;  %7412 = vmatprep.subr.bf16.mxu0 %v9817_v13  ;;  %1591 = vmatmul.mubr.f32.vlgmr.msra.gmra.mrb[0].mxu1 %v9588_v52  ;;  %v1661_v18 = vand.u32 4294901760, %v1660_v63  ;;  %v999_v10 = vsub.f32 %v9868_v3, %v12004_v38  ;;  %v1684_v60 = vsub.f32 %v9886_v12, %v11999_v55 }
 0x1c6   : > { %v12003_v53 = vand.u32 4294901760, %v9928_v47  ;;  %v12290_v36 = vand.u32 4294901760, %v9897_v28  ;;  %v9965_v8 = vsub.f32 %v815_v51, %v9908_v14  ;;  %7506 = vmatpush1.bf16.msra.mxu1 %v9785_v43  ;;  %v7509_v52 = vpack.c.bf16 %v1643_v39, %v1631_v24  ;;  %1078 = vmatprep.mubr.f32.mxu0 %v12230_v9 }
 0x1c7   : > { %7508 = vmatprep.subr.bf16.mxu1 %v7507_v42  ;;  %v7415_v13 = vpack.c.bf16 %v988_v31, %v9540_v56  ;;  %v1012_v19 = vand.u32 4294901760, %v1011_v20  ;;  %v1672_v63 = vsub.f32 %v9904_v45, %v12002_v41  ;;  %v12008_v55 = vand.u32 4294901760, %v9936_v58  ;;  %1751 = vmatprep.mubr.f32.mxu1 %v12230_v9 }
 0x1c8   : > { %v1017_v4 = vsub.f32 %v9897_v28, %v12290_v36  ;;  %v1005_v51 = vsub.f32 %v9911_v34, %v12000_v33  ;;  %v1690_v43 = vsub.f32 %v9913_v23, %v12001_v1  ;;  %v9982_v24 = vsub.f32 %v817_v29, %v9906_v5  ;;  %7414 = vmatpush1.bf16.msra.mxu0 %v9864_v61 }
 0x1c9   : > { %v1667_v39 = vand.u32 4294901760, %v9920_v21  ;;  %7416 = vmatprep.subr.bf16.mxu0 %v7415_v13  ;;  %v7511_v31 = vpack.c.bf16 %v1661_v18, %v9560_v48  ;;  %v1000_v20 = vand.u32 4294901760, %v999_v10  ;;  %v1685_v42 = vand.u32 4294901760, %v1684_v60 }
 0x1ca   : > { %v12007_v36 = vand.u32 4294901760, %v9950_v26  ;;  %v1678_v33 = vsub.f32 %v9928_v47, %v12003_v53  ;;  %v12006_v1 = vand.u32 4294901760, %v9965_v8  ;;  %7510 = vmatpush1.bf16.msra.mxu1 %v7509_v52  ;;  %v7417_v29 = vpack.c.bf16 %v994_v32, %v9562_v40  ;;  %v12321_v40 = vld [vmem:[#allocation64_spill] sm:$0xff] }
 0x1cb   : > { %v1018_v41 = vand.u32 4294901760, %v1017_v4  ;;  %7512 = vmatprep.subr.bf16.mxu1 %v7511_v31  ;;  %v7419_v61 = vpack.c.bf16 %v1012_v19, %v1000_v20  ;;  %v1673_v21 = vand.u32 4294901760, %v1672_v63  ;;  %v1023_v10 = vsub.f32 %v9936_v58, %v12008_v55  ;;  %v820_v63 = vld [vmem:[#allocation8] sm:$0xff]  ;;  %v12315_v55 = vld [vmem:[#allocation94_spill] sm:$0xff] }
 0x1cc   : > { %v12005_v18 = vand.u32 4294901760, %v9982_v24  ;;  %7418 = vmatpush1.bf16.msra.mxu0 %v7417_v29  ;;  %v7513_v60 = vpack.c.bf16 %v1667_v39, %v9564_v22  ;;  %v1006_v13 = vand.u32 4294901760, %v1005_v51  ;;  %v1691_v53 = vand.u32 4294901760, %v1690_v43 }
 0x1cd   : > { %7420 = vmatprep.subr.bf16.mxu0 %v7419_v61  ;;  %v7515_v38 = vpack.c.bf16 %v1685_v42, %v1673_v21  ;;  %v1696_v32 = vsub.f32 %v9950_v26, %v12007_v36  ;;  %v1679_v52 = vand.u32 4294901760, %v1678_v33  ;;  %v1029_v19 = vsub.f32 %v9965_v8, %v12006_v1  ;;  %v12291_v42 = vld [vmem:[#allocation51_spill] sm:$0xff]  ;;  %v12314_v36 = vld [vmem:[#allocation89_spill] sm:$0xff] }
 0x1ce   : > { %7514 = vmatpush1.bf16.msra.mxu1 %v7513_v60  ;;  %v7421_v4 = vpack.c.bf16 %v1018_v41, %v1006_v13  ;;  %v1024_v31 = vand.u32 4294901760, %v1023_v10  ;;  %v1702_v51 = vsub.f32 %v9982_v24, %v12005_v18  ;;  %v8773_v43 = vmov 0   ;;  %v12292_v21 = vld [vmem:[#allocation79_spill] sm:$0xff]  ;;  %v12293_v10 = vld [vmem:[#allocation81_spill] sm:$0xff]  ;;  %v12312_v18 = vld [vmem:[#allocation84_spill] sm:$0xff] }
 0x1cf   : > { %7516 = vmatprep.subr.bf16.mxu1 %v7515_v38  ;;  %v7517_v39 = vpack.c.bf16 %v1691_v53, %v1679_v52  ;;  %8413 = vset.pattern.permute.xlu0 %v8773_v43  ;;  %v1697_v20 = vand.u32 4294901760, %v1696_v32  ;;  %v1030_v41 = vand.u32 4294901760, %v1029_v19  ;;  %v7423_v33 = vpack.c.bf16 %v9519_v25, %v9522_v37  ;;  %v12294_v13 = vld [vmem:[#allocation93_spill] sm:$0xff]  ;;  %v12296_v52 = vld [vmem:[#allocation88_spill] sm:$0xff]  ;;  %v12313_v1 = vld [vmem:[#allocation91_spill] sm:$0xff] }
 0x1d0   : > { %7422 = vmatpush1.bf16.msra.mxu0 %v7421_v4  ;;  %823 = vperm.xlu0 %8413, %v820_v63   ;;  %v1703_v38 = vand.u32 4294901760, %v1702_v51  ;;  %v7425_v53 = vpack.c.bf16 %v9594_v44, %v9582_v62  ;;  %v7519_v29 = vpack.c.bf16 %v9601_v0, %v9591_v15  ;;  %v7427_v61 = vpack.c.bf16 %v9660_v2, %v9671_v46  ;;  %v12295_v4 = vld [vmem:[#allocation86_spill] sm:$0xff]  ;;  %v12297_v63 = vld [vmem:[#allocation45_spill] sm:$0xff] }
 0x1d1   : > { %1025 = vmatprep.subr.mxu0 %v1024_v31  ;;  %8414 = vset.pattern.permute.xlu1 %v8773_v43  ;;  %v7521_v60 = vpack.c.bf16 %v12293_v10, %v12292_v21  ;;  %v7523_v32 = vpack.c.bf16 %v9782_v27, %v12294_v13  ;;  %v7429_v19 = vpack.c.bf16 %v12296_v52, %v12295_v4  ;;  %v12299_v51 = vld [vmem:[#allocation90_spill] sm:$0xff]  ;;  %v12319_v48 = vand.u32 4294901760, %v9582_v62 }
 0x1d2   : > { %7518 = vmatpush1.bf16.msra.mxu1 %v7517_v39  ;;  %v7431_v31 = vpack.c.bf16 %v9804_v54, %v12297_v63  ;;  %v12298_v39 = vld [vmem:[#allocation87_spill] sm:$0xff]  ;;  %v12322_v56 = vand.u32 4294901760, %v9671_v46  ;;  %v12323_v6 = vand.u32 4294901760, %v9660_v2  ;;  %v12326_v62 = vand.u32 4294901760, %v12292_v21  ;;  %v12332_v2 = vld [vmem:[#allocation56_spill] sm:$0xff] }
 0x1d3   : > { %1698 = vmatprep.subr.mxu1 %v1697_v20  ;;  %v7525_v43 = vpack.c.bf16 %v12299_v51, %v12298_v39  ;;  %v12300_v20 = vld [vmem:[#allocation46_spill] sm:$0xff]  ;;  %v12328_v46 = vand.u32 4294901760, %v12294_v13  ;;  %v12333_v21 = vand.u32 4294901760, %v9804_v54  ;;  %v12336_v13 = vld [vmem:[#allocation57_spill] sm:$0xff]  ;;  %v12340_v54 = vand.u32 4294901760, %v9868_v3 }
 0x1d4   : > { %1031 = vmatpush1.msra.mxu0 %v1030_v41  ;;  %v7527_v41 = vpack.c.bf16 %v9843_v50, %v12300_v20  ;;  %v12318_v20 = vand.u32 4294901760, %v9519_v25  ;;  %v12324_v25 = vand.u32 4294901760, %v9591_v15  ;;  %v12329_v15 = vand.u32 4294901760, %v9782_v27 }
 0x1d5   : > { %7424 = vmatprep.subr.bf16.mxu0 %v7423_v33  ;;  %1080 = vmatmul.mubr.f32.vlgmr.msra.gmra.mrb[0].mxu0 %v12291_v42  ;;  %v12301_v33 = vld [vmem:[#allocation53_spill] sm:$0xff]  ;;  %v12335_v27 = vand.u32 4294901760, %v12299_v51  ;;  %v12343_v51 = vand.u32 4294901760, %v9820_v7 }
 0x1d6   : > { %1704 = vmatpush1.msra.mxu1 %v1703_v38  ;;  %7426 = vmatpush1.bf16.msra.mxu0 %v7425_v53  ;;  %v7433_v38 = vpack.c.bf16 %v9836_v59, %v12301_v33  ;;  %v7435_v53 = vpack.c.bf16 %v9871_v35, %v9868_v3  ;;  %v12320_v33 = vand.u32 4294901760, %v9594_v44  ;;  %v12331_v44 = vand.u32 4294901760, %v12296_v52 }
 0x1d7   : > { %7520 = vmatprep.subr.bf16.mxu1 %v7519_v29  ;;  %7428 = vmatprep.subr.bf16.mxu0 %v7427_v61  ;;  %v12302_v29 = vld [vmem:[#allocation54_spill] sm:$0xff] }
 0x1d8   : > { %1753 = vmatmul.mubr.f32.vlgmr.msra.gmra.mrb[0].mxu1 %v12291_v42  ;;  %1186 = vmatprep.mubr.f32.mxu0 %v12230_v9  ;;  %v7529_v61 = vpack.c.bf16 %v9820_v7, %v12302_v29  ;;  %v12316_v29 = vld [vmem:[#allocation92_spill] sm:$0xff]  ;;  %v7457_v63 = vpack.c.bf16 %v12320_v33, %v12319_v48  ;;  %v12350_v7 = vand.u32 4294901760, %v9913_v23 }
 0x1d9   : > { %7522 = vmatpush1.bf16.msra.mxu1 %v7521_v60  ;;  %1859 = vmatprep.mubr.f32.mxu1 %v12230_v9  ;;  %v7531_v60 = vpack.c.bf16 %v9886_v12, %v9904_v45  ;;  %v12338_v33 = vld [vmem:[#allocation60_spill] sm:$0xff] }
 0x1da   : > { %7524 = vmatprep.subr.bf16.mxu1 %v7523_v32  ;;  %7430 = vmatpush1.bf16.msra.mxu0 %v7429_v19  ;;  %v7437_v32 = vpack.c.bf16 %v9897_v28, %v9911_v34  ;;  %v7533_v19 = vpack.c.bf16 %v9913_v23, %v9928_v47 }
 0x1db   : > { %7432 = vmatprep.subr.bf16.mxu0 %v7431_v31  ;;  %v12303_v31 = vld [vmem:[#allocation52_spill] sm:$0xff] }
 0x1dd   : > { %7526 = vmatpush1.bf16.msra.mxu1 %v7525_v43  ;;  %v12304_v43 = vld [vmem:[#allocation58_spill] sm:$0xff] }
 0x1de   : > { %7528 = vmatprep.subr.bf16.mxu1 %v7527_v41  ;;  %7434 = vmatpush1.bf16.msra.mxu0 %v7433_v38  ;;  %v12305_v41 = vld [vmem:[#allocation65_spill] sm:$0xff]  ;;  %v12306_v38 = vld [vmem:[#allocation80_spill] sm:$0xff] }
 0x1df   : > { %7436 = vmatprep.subr.bf16.mxu0 %v7435_v53  ;;  %v12307_v53 = vld [vmem:[#allocation66_spill] sm:$0xff] }
 0x1e1   : > { %7530 = vmatpush1.bf16.msra.mxu1 %v7529_v61  ;;  %v12308_v61 = vld [vmem:[#allocation67_spill] sm:$0xff] }
 0x1e2   : > { %7532 = vmatprep.subr.bf16.mxu1 %v7531_v60  ;;  %7438 = vmatpush1.bf16.msra.mxu0 %v7437_v32  ;;  %v12309_v60 = vld [vmem:[#allocation83_spill] sm:$0xff]  ;;  %v12310_v32 = vld [vmem:[#allocation82_spill] sm:$0xff] }
 0x1e3   : > { %1136 = vmatprep.subr.mxu0 %v9936_v58 }
 0x1e5   : > { %7534 = vmatpush1.bf16.msra.mxu1 %v7533_v19  ;;  %v12311_v19 = vld [vmem:[#allocation85_spill] sm:$0xff] }
 0x1e6   : > { %1809 = vmatprep.subr.mxu1 %v9950_v26  ;;  %1139 = vmatpush1.msra.mxu0 %v9965_v8 }
 0x1e7   : > { %7440 = vmatprep.subr.bf16.mxu0 %v12303_v31  ;;  %1189 = vmatmul.mubr.f32.vlgmr.msra.gmra.mrb[0].mxu0 %v12304_v43 }
 0x1e8   : > { %7442 = vmatpush1.bf16.msra.mxu0 %v12305_v41  ;;  %1277 = vmatprep.mubr.f32.mxu0 %v12230_v9 }
 0x1e9   : > { %1812 = vmatpush1.msra.mxu1 %v9982_v24  ;;  %7444 = vmatprep.subr.bf16.mxu0 %v12306_v38 }
 0x1ea   : > { %7536 = vmatprep.subr.bf16.mxu1 %v12307_v53  ;;  %1862 = vmatmul.mubr.f32.vlgmr.msra.gmra.mrb[0].mxu1 %v12304_v43  ;;  %v12317_v43 = vand.u32 4294901760, %v9522_v37  ;;  %v7459_v37 = vpack.c.bf16 %v12323_v6, %v12322_v56  ;;  %v7555_v56 = vpack.c.bf16 %v12329_v15, %v12328_v46  ;;  %v12330_v6 = vand.u32 4294901760, %v12295_v4 }
 0x1eb   : > { %7538 = vmatpush1.bf16.msra.mxu1 %v12308_v61  ;;  %1950 = vmatprep.mubr.f32.mxu1 %v12230_v9  ;;  %v12337_v4 = vand.u32 4294901760, %v9843_v50  ;;  %v12344_v50 = vand.u32 4294901760, %v9904_v45  ;;  %v12347_v46 = vand.u32 4294901760, %v9897_v28  ;;  %v12349_v15 = vand.u32 4294901760, %v9928_v47 }
 0x1ec   : > { %7540 = vmatprep.subr.bf16.mxu1 %v12309_v60  ;;  %7446 = vmatpush1.bf16.msra.mxu0 %v12310_v32  ;;  %v7455_v22 = vpack.c.bf16 %v12318_v20, %v12317_v43  ;;  %v12325_v20 = vand.u32 4294901760, %v9601_v0  ;;  %v7461_v0 = vpack.c.bf16 %v12331_v44, %v12330_v6  ;;  %v12352_v45 = vand.u32 4294901760, %v9965_v8  ;;  %v2312_v6 = vld [vmem:[#allocation10] sm:$0xff] }
 0x1ed   : > { %7448 = vmatprep.subr.bf16.mxu0 %v12311_v19  ;;  %v7559_v52 = vpack.c.bf16 %v12337_v4, %v12336_v13  ;;  %v12353_v28 = vand.u32 4294901760, %v9982_v24 }
 0x1ee   : > { %v7551_v43 = vpack.c.bf16 %v12325_v20, %v12324_v25  ;;  %v12341_v20 = vand.u32 4294901760, %v9871_v35  ;;  %v12348_v35 = vand.u32 4294901760, %v9936_v58 }
 0x1ef   : > { %7542 = vmatpush1.bf16.msra.mxu1 %v12312_v18 }
 0x1f0   : > { %7544 = vmatprep.subr.bf16.mxu1 %v12313_v1  ;;  %7450 = vmatpush1.bf16.msra.mxu0 %v12314_v36 }
 0x1f1   : > { %7452 = vmatprep.subr.bf16.mxu0 %v12315_v55 }
 0x1f3   : > { %7546 = vmatpush1.bf16.msra.mxu1 %v12316_v29 }
 0x1f4   : > { %7548 = vmatprep.subr.bf16.mxu1 %v9860_v49  ;;  %7454 = vmatpush1.bf16.msra.mxu0 %v9862_v30 }
 0x1f5   : > { %1228 = vmatprep.subr.mxu0 %v9873_v16 }
 0x1f7   : > { %7550 = vmatpush1.bf16.msra.mxu1 %v9875_v17 }
 0x1f8   : > { %1901 = vmatprep.subr.mxu1 %v9915_v57  ;;  %1230 = vmatpush1.msra.mxu0 %v9908_v14 }
 0x1f9   : > { %7456 = vmatprep.subr.bf16.mxu0 %v7455_v22  ;;  %1281 = vmatmul.mubr.f32.vlgmr.msra.gmra.mrb[0].mxu0 %v12321_v40  ;;  %v12327_v22 = vand.u32 4294901760, %v12293_v10 }
 0x1fa   : > { %7458 = vmatpush1.bf16.msra.mxu0 %v7457_v63  ;;  %1405 = vmatprep.mubr.f32.mxu0 %v12230_v9  ;;  %v7463_v63 = vpack.c.bf16 %v12333_v21, %v12332_v2 }
 0x1fb   : > { %1903 = vmatpush1.msra.mxu1 %v9906_v5  ;;  %7460 = vmatprep.subr.bf16.mxu0 %v7459_v37  ;;  %v7553_v48 = vpack.c.bf16 %v12327_v22, %v12326_v62  ;;  %v12339_v37 = vand.u32 4294901760, %v9836_v59  ;;  %v12345_v22 = vand.u32 4294901760, %v9886_v12  ;;  %v12346_v59 = vand.u32 4294901760, %v9911_v34 }
 0x1fc   : > { %7552 = vmatprep.subr.bf16.mxu1 %v7551_v43  ;;  %1954 = vmatmul.mubr.f32.vlgmr.msra.gmra.mrb[0].mxu1 %v12321_v40  ;;  %v12334_v40 = vand.u32 4294901760, %v12298_v39  ;;  %v7467_v43 = vpack.c.bf16 %v12341_v20, %v12340_v54  ;;  %v12342_v39 = vld [vmem:[#allocation61_spill] sm:$0xff]  ;;  %v12351_v12 = vand.u32 4294901760, %v9950_v26 }
 0x1fd   : > { %7554 = vmatpush1.bf16.msra.mxu1 %v7553_v48  ;;  %2078 = vmatprep.mubr.f32.mxu1 %v12230_v9  ;;  %v7465_v25 = vpack.c.bf16 %v12339_v37, %v12338_v33  ;;  %v7561_v62 = vpack.c.bf16 %v12343_v51, %v12342_v39  ;;  %v7563_v48 = vpack.c.bf16 %v12345_v22, %v12344_v50  ;;  %v2313_v37 = vld [vmem:[#allocation10 + $0x8] sm:$0xff] }
 0x1fe   : > { %7556 = vmatprep.subr.bf16.mxu1 %v7555_v56  ;;  %7462 = vmatpush1.bf16.msra.mxu0 %v7461_v0  ;;  %v7557_v10 = vpack.c.bf16 %v12335_v27, %v12334_v40  ;;  %v7469_v3 = vpack.c.bf16 %v12347_v46, %v12346_v59  ;;  %v7565_v56 = vpack.c.bf16 %v12350_v7, %v12349_v15  ;;  %v2327_v27 = vsel %vm826_vm6, %v2312_v6, 0  ;;  %v12359_v7 = vld [vmem:[#allocation25_spill] sm:$0xff] }
 0x1ff   : > { %7464 = vmatprep.subr.bf16.mxu0 %v7463_v63  ;;  %v10273_v51 = vand.u32 4294901760, %v2327_v27  ;;  %v2330_v22 = vsel %vm826_vm6, %v2313_v37, 0  ;;  %v12371_v37 = vld [vmem:[#allocation36_spill] sm:$0xff] }
 0x201   : > { %7558 = vmatpush1.bf16.msra.mxu1 %v7557_v10  ;;  %v12355_v10 = vld [vmem:[#allocation24_spill] sm:$0xff] }
 0x202   : > { %7560 = vmatprep.subr.bf16.mxu1 %v7559_v52  ;;  %7466 = vmatpush1.bf16.msra.mxu0 %v7465_v25 }
 0x203   : > { %7468 = vmatprep.subr.bf16.mxu0 %v7467_v43 }
 0x205   : > { %7562 = vmatpush1.bf16.msra.mxu1 %v7561_v62 }
 0x206   : > { %7564 = vmatprep.subr.bf16.mxu1 %v7563_v48  ;;  %7470 = vmatpush1.bf16.msra.mxu0 %v7469_v3 }
 0x207   : > { %1354 = vmatprep.subr.mxu0 %v12348_v35 }
 0x209   : > { %7566 = vmatpush1.bf16.msra.mxu1 %v7565_v56 }
 0x20a   : > { %2027 = vmatprep.subr.mxu1 %v12351_v12  ;;  %1358 = vmatpush1.msra.mxu0 %v12352_v45 }
 0x20b   : > { %7472 = vmatprep.subr.bf16.mxu0 %v12303_v31  ;;  %1407 = vmatmul.mubr.f32.vlgmr.msra.gmra.mrb[0].mxu0 %v12291_v42 }
 0x20c   : > { %7474 = vmatpush1.bf16.msra.mxu0 %v12305_v41  ;;  %1495 = vmatprep.mubr.f32.mxu0 %v12230_v9 }
 0x20d   : > { %2031 = vmatpush1.msra.mxu1 %v12353_v28  ;;  %7476 = vmatprep.subr.bf16.mxu0 %v12306_v38 }
 0x20e   : > { %7568 = vmatprep.subr.bf16.mxu1 %v12307_v53  ;;  %2080 = vmatmul.mubr.f32.vlgmr.msra.gmra.mrb[0].mxu1 %v12291_v42 }
 0x20f   : > { %7570 = vmatpush1.bf16.msra.mxu1 %v12308_v61  ;;  %2168 = vmatprep.mubr.f32.mxu1 %v12230_v9 }
 0x210   : > { %7572 = vmatprep.subr.bf16.mxu1 %v12309_v60  ;;  %7478 = vmatpush1.bf16.msra.mxu0 %v12310_v32  ;;  %v12354_v32 = vld [vmem:[#allocation26_spill] sm:$0xff] }
 0x211   : > { %7480 = vmatprep.subr.bf16.mxu0 %v12311_v19 }
 0x213   : > { %7574 = vmatpush1.bf16.msra.mxu1 %v12312_v18  ;;  %v2314_v18 = vld [vmem:[#allocation11] sm:$0xff] }
 0x214   : > { %7576 = vmatprep.subr.bf16.mxu1 %v12313_v1  ;;  %7482 = vmatpush1.bf16.msra.mxu0 %v12314_v36 }
 0x215   : > { %7484 = vmatprep.subr.bf16.mxu0 %v12315_v55 }
 0x217   : > { %7578 = vmatpush1.bf16.msra.mxu1 %v12316_v29 }
 0x218   : > { %7580 = vmatprep.subr.bf16.mxu1 %v9860_v49  ;;  %7486 = vmatpush1.bf16.msra.mxu0 %v9862_v30 }
 0x219   : > { %1446 = vmatprep.subr.mxu0 %v9873_v16 }
 0x21b   : > { %7582 = vmatpush1.bf16.msra.mxu1 %v9875_v17 }
 0x21c   : > { %2119 = vmatprep.subr.mxu1 %v9915_v57  ;;  %1448 = vmatpush1.msra.mxu0 %v9908_v14 }
 0x21d   : > { %1497 = vmatmul.mubr.f32.vlgmr.msra.gmra.mrb[0].mxu0 %v12291_v42 }
 0x21e   : > { %2414 = vmatprep.mubr.f32.mxu0 %v12230_v9 }
 0x21f   : > { %2121 = vmatpush1.msra.mxu1 %v9906_v5 }
 0x220   : > { %2170 = vmatmul.mubr.f32.vlgmr.msra.gmra.mrb[0].mxu1 %v12291_v42  ;;  %v6716_v42 = vld [vmem:[#allocation14] sm:$0xff] }
 0x221   : > { %3136 = vmatprep.mubr.f32.mxu1 %v12230_v9 }
 0x24f   : > { %v824_v49 = vpop.permute.xlu0 %823 }
 0x2f0   : > { %v1498_v30 = vpop.f32.mrb[0].mxu0 }
 0x2f1   : > { %v8159_v34 = vadd.f32 %v1498_v30, %v824_v49  ;;  %v1500_v16 = vpop.f32.mrb[1].mxu0  ;;  %v10303_v30 = vand.u32 4294901760, %v2330_v22 }
 0x2f2   : > { %v8160_v14 = vadd.f32 %v1500_v16, %v824_v49 }
 0x2f3   : > { %v2176_v23 = vmul.f32 0.2, %v8159_v34  ;;  %v2171_v17 = vpop.f32.mrb[0].mxu1  ;;  %12361 = vst [vmem:[#allocation86_spill] sm:$0xff] %v10303_v30 }
 0x2f4   : > { %v8161_v55 = vadd.f32 %v2171_v17, %v824_v49  ;;  %v2173_v57 = vpop.f32.mrb[1].mxu1  ;;  %v2177_v5 = vmul.f32 0.2, %v8160_v14 }
 0x2f5   : > { %v10171_v47 = vmax.f32 %v8159_v34, %v2176_v23  ;;  %v8162_v8 = vadd.f32 %v2173_v57, %v824_v49  ;;  %v10301_v49 = vsub.f32 %v2327_v27, %v10273_v51  ;;  %v12362_v23 = vld [vmem:[#allocation29_spill] sm:$0xff] }
 0x2f6   : > { %v2178_v26 = vmul.f32 0.2, %v8161_v55  ;;  %v10183_v1 = vmax.f32 %v8160_v14, %v2177_v5 }
 0x2f7   : > { %2200 = vrot.lane.b32.xlu0 %v10171_v47, %s8765_s16  ;;  %2184 = vrot.lane.b32.xlu1 %v10171_v47, %s8766_s29  ;;  %v2179_v24 = vmul.f32 0.2, %v8162_v8  ;;  %v12018_v44 = vand.u32 4294901760, %v10171_v47  ;;  %12360 = vst [vmem:[#allocation93_spill] sm:$0xff] %v10301_v49 }
 0x2f8   : > { %v10177_v58 = vmax.f32 %v8161_v55, %v2178_v26  ;;  %v12019_v52 = vand.u32 4294901760, %v10183_v1  ;;  %v12380_v13 = vand.u32 4294901760, %v10183_v1 }
 0x2f9   : > { %v10193_v36 = vmax.f32 %v8162_v8, %v2179_v24  ;;  %v10267_v25 = vsub.f32 %v10171_v47, %v12018_v44 }
 0x2fa   : > { %v10288_v46 = vsub.f32 %v10183_v1, %v12019_v52  ;;  %v12017_v3 = vand.u32 4294901760, %v10177_v58 }
 0x2fb   : > { %2216 = vrot.lane.b32.xlu0 %v10171_v47, %s8767_s23  ;;  %2252 = vrot.lane.b32.xlu1 %v10177_v58, %s8769_s26  ;;  %12356 = vst [vmem:[#allocation51_spill] sm:$0xff] %v10267_v25  ;;  %v12014_v35 = vand.u32 4294901760, %v10267_v25  ;;  %v12016_v15 = vand.u32 4294901760, %v10193_v36 }
 0x2fc   : > { %12358 = vst [vmem:[#allocation81_spill] sm:$0xff] %v10288_v46  ;;  %v12015_v57 = vand.u32 4294901760, %v10288_v46  ;;  %v10317_v14 = vsub.f32 %v10177_v58, %v12017_v3 }
 0x2fd   : > { %v10322_v26 = vsub.f32 %v10267_v25, %v12014_v35  ;;  %v10327_v5 = vsub.f32 %v10193_v36, %v12016_v15 }
 0x2fe   : > { %12363 = vst [vmem:[#allocation88_spill] sm:$0xff] %v10317_v14  ;;  %v10354_v27 = vsub.f32 %v10288_v46, %v12015_v57  ;;  %v12374_v57 = vld [vmem:[#allocation42_spill] sm:$0xff] }
 0x2ff   : > { %2232 = vrot.lane.b32.xlu0 %v10171_v47, %s8768_s25  ;;  %2186 = vrot.lane.b32.xlu1 %v10183_v1, %s8766_s29  ;;  %12364 = vst [vmem:[#allocation87_spill] sm:$0xff] %v10327_v5 }
 0x303   : > { %2248 = vrot.lane.b32.xlu0 %v10171_v47, %s8769_s26  ;;  %2202 = vrot.lane.b32.xlu1 %v10183_v1, %s8765_s16 }
 0x307   : > { %2268 = vrot.lane.b32.xlu0 %v10177_v58, %s8770_s19  ;;  %2206 = vrot.lane.b32.xlu1 %v10193_v36, %s8765_s16 }
 0x30b   : > { %2190 = vrot.lane.b32.xlu0 %v10193_v36, %s8766_s29  ;;  %2218 = vrot.lane.b32.xlu1 %v10183_v1, %s8767_s23 }
 0x30f   : > { %2222 = vrot.lane.b32.xlu0 %v10193_v36, %s8767_s23  ;;  %2234 = vrot.lane.b32.xlu1 %v10183_v1, %s8768_s25 }
 0x313   : > { %2250 = vrot.lane.b32.xlu0 %v10183_v1, %s8769_s26  ;;  %2238 = vrot.lane.b32.xlu1 %v10193_v36, %s8768_s25 }
 0x317   : > { %2284 = vrot.lane.b32.xlu0 %v10177_v58, %s8771_s17  ;;  %2264 = vrot.lane.b32.xlu1 %v10171_v47, %s8770_s19 }
 0x31b   : > { %2280 = vrot.lane.b32.xlu0 %v10171_v47, %s8771_s17  ;;  %2266 = vrot.lane.b32.xlu1 %v10183_v1, %s8770_s19 }
 0x31f   : > { %2300 = vrot.lane.b32.xlu0 %v10177_v58, %s8772_s14  ;;  %2282 = vrot.lane.b32.xlu1 %v10183_v1, %s8771_s17 }
 0x323   : > { %2188 = vrot.lane.b32.xlu0 %v10177_v58, %s8766_s29  ;;  %2298 = vrot.lane.b32.xlu1 %v10183_v1, %s8772_s14  ;;  %s12612_s29 = sld [smem:[#allocation97_spill]] }
 0x327   : > { %2220 = vrot.lane.b32.xlu0 %v10177_v58, %s8767_s23  ;;  %2296 = vrot.lane.b32.xlu1 %v10171_v47, %s8772_s14 }
 0x329   : > { %s11836_s23 = scalar_lea.hbm %s12612_s29, %s6934_s13 }
 0x32b   : > { %2254 = vrot.lane.b32.xlu0 %v10193_v36, %s8769_s26  ;;  %2204 = vrot.lane.b32.xlu1 %v10177_v58, %s8765_s16  ;;  %s8669_s26 = scalar_lea.vmem %s11830_s3, 256 }
 0x32c   : > { %p8670_p5 = scmp.ne.s32.totalorder %s11830_s3, %s8669_s26 }
 0x32e   : > { %p8671_p4 = pnand %p8670_p5, %p12613_p7 }
 0x32f   : > { %2286 = vrot.lane.b32.xlu0 %v10193_v36, %s8771_s17  ;;  %2236 = vrot.lane.b32.xlu1 %v10177_v58, %s8768_s25  ;;  %s6733_s25 = scalar_lea.sflag [#allocation4], %s9124_s1 }
 0x330   : > { %p8672_p1 = pneg %p8671_p4 }
 0x333   : > { %2318 = vperm.xlu0 %8413, %v2314_v18   ;;  %2270 = vrot.lane.b32.xlu1 %v10193_v36, %s8770_s19  ;;  %s8673_s19 = sshll.u32 %s8775_s15, 4  ;;  %s8674_s19 = int_to_ptr.vmem [resolvable:$false] %s8673_s19 }
 0x334   : > { %s8675_s17 = scalar_lea.vmem %s8674_s19, 512  ;;  %p8676_p3 = scmp.lt.s32.totalorder %s11830_s3, %s8674_s19 }
 0x335   : > { %p8677_p9 = scmp.lt.s32.totalorder %s8675_s17, %s8669_s26 }
 0x337   : > { %6720 = vperm.xlu0 %8413, %v6716_v42   ;;  %2302 = vrot.lane.b32.xlu1 %v10193_v36, %s8772_s14  ;;  %p8678_p13 = por %p8677_p9, %p8676_p3 }
 0x339   : > { %p8679_p0 = pnand %p8678_p13, %p8672_p1 }
 0x369   : > { %v2201_v29 = vpop.permute.xlu0 %2200  ;;  %v2185_v31 = vpop.permute.xlu1 %2184 }
 0x36d   : > { %v2217_v41 = vpop.permute.xlu0 %2216  ;;  %v10243_v38 = vpop.permute.xlu1 %2252 }
 0x371   : > { %v10245_v53 = vpop.permute.xlu0 %2232  ;;  %v10247_v61 = vpop.permute.xlu1 %2186 }
 0x372   : > { %v2194_v60 = vsel %vm523_vm11, %v2185_v31, %v10247_v61 }
 0x373   : > { %v2197_v19 = vmul.f32 %v2194_v60, %v12354_v32  ;;  %v10339_v60 = vsub.f32 %v2330_v22, %v10303_v30  ;;  %v12368_v32 = vld [vmem:[#allocation32_spill] sm:$0xff] }
 0x375   : > { %v10254_v0 = vpop.permute.xlu0 %2248  ;;  %v10256_v21 = vpop.permute.xlu1 %2202  ;;  %v2332_v63 = vand.u32 4294901760, %v2197_v19  ;;  %12367 = vst [vmem:[#allocation58_spill] sm:$0xff] %v10339_v60 }
 0x376   : > { %v2210_v40 = vsel %vm561_vm9, %v2201_v29, %v10256_v21 }
 0x377   : > { %v2213_v4 = vmul.f32 %v2210_v40, %v12355_v10  ;;  %v10275_v62 = vsub.f32 %v2197_v19, %v2332_v63  ;;  %v12370_v10 = vld [vmem:[#allocation33_spill] sm:$0xff] }
 0x379   : > { %v2336_v54 = vand.u32 4294901760, %v2213_v4  ;;  %v10269_v20 = vpop.permute.xlu0 %2268  ;;  %v10271_v43 = vpop.permute.xlu1 %2206  ;;  %v2439_v16 = vand.u32 4294901760, %v10275_v62 }
 0x37a   : > { %v2211_v50 = vsel %vm561_vm9, %v10271_v43, %v2201_v29 }
 0x37b   : > { %v10281_v48 = vsub.f32 %v2213_v4, %v2336_v54  ;;  %v10283_v59 = vpack.c.bf16 %v2336_v54, %v2332_v63  ;;  %v2212_v56 = vmul.f32 %v2211_v50, %v12359_v7  ;;  %v12375_v50 = vld [vmem:[#allocation39_spill] sm:$0xff] }
 0x37d   : > { %12357 = vst [vmem:[#allocation79_spill] sm:$0xff] %v10283_v59  ;;  %v10294_v12 = vpop.permute.xlu0 %2190  ;;  %7584 = vmatprep.subr.bf16.mxu0 %v10283_v59  ;;  %v10297_v45 = vpop.permute.xlu1 %2218  ;;  %v2451_v28 = vand.u32 4294901760, %v10281_v48  ;;  %v2338_v24 = vand.u32 4294901760, %v2212_v56 }
 0x37e   : > { %v2195_v34 = vsel %vm523_vm11, %v10294_v12, %v2185_v31  ;;  %v2226_v55 = vsel %vm599_vm13, %v2217_v41, %v10297_v45  ;;  %v10336_v31 = vand.u32 4294901760, %v10301_v49 }
 0x37f   : > { %v2196_v17 = vmul.f32 %v2195_v34, %v12362_v23  ;;  %v10329_v8 = vpack.c.bf16 %v2451_v28, %v2439_v16  ;;  %v2229_v19 = vmul.f32 %v2226_v55, %v12368_v32  ;;  %v10360_v22 = vsub.f32 %v2212_v56, %v2338_v24 }
 0x380   : > { %12366 = vst [vmem:[#allocation52_spill] sm:$0xff] %v10336_v31  ;;  %v2418_v23 = vsub.f32 %v10301_v49, %v10336_v31  ;;  %v10368_v55 = vand.u32 4294901760, %v10339_v60 }
 0x381   : > { %12365 = vst [vmem:[#allocation90_spill] sm:$0xff] %v10329_v8  ;;  %v2334_v18 = vand.u32 4294901760, %v2196_v17  ;;  %v10331_v42 = vpop.permute.xlu0 %2222  ;;  %v10333_v29 = vpop.permute.xlu1 %2234 }
 0x382   : > { %v2227_v6 = vsel %vm599_vm13, %v10331_v42, %v2217_v41  ;;  %v2242_v63 = vsel %vm637_vm5, %v10245_v53, %v10333_v29  ;;  %12372 = vst [vmem:[#allocation80_spill] sm:$0xff] %v10368_v55 }
 0x383   : > { %v10349_v40 = vpack.c.bf16 %v2338_v24, %v2334_v18  ;;  %v2228_v4 = vmul.f32 %v2227_v6, %v12370_v10  ;;  %v2245_v54 = vmul.f32 %v2242_v63, %v12371_v37  ;;  %v2340_v6 = vand.u32 4294901760, %v2229_v19  ;;  %v12373_v37 = vld [vmem:[#allocation48_spill] sm:$0xff] }
 0x384   : > { %v10377_v10 = vsub.f32 %v2196_v17, %v2334_v18 }
 0x385   : > { %12369 = vst [vmem:[#allocation65_spill] sm:$0xff] %v10349_v40  ;;  %v2251_v7 = vpop.permute.xlu0 %2250  ;;  %7586 = vmatpush1.bf16.msra.mxu0 %v10349_v40  ;;  %v10363_v34 = vpop.permute.xlu1 %2238  ;;  %v2344_v63 = vand.u32 4294901760, %v2245_v54  ;;  %v2342_v3 = vand.u32 4294901760, %v2228_v4  ;;  %v10407_v39 = vsub.f32 %v2229_v19, %v2340_v6 }
 0x386   : > { %v2257_v56 = vsel %vm675_vm15, %v2251_v7, %v10243_v38  ;;  %v2258_v24 = vsel %vm675_vm15, %v10254_v0, %v2251_v7  ;;  %v2243_v15 = vsel %vm637_vm5, %v10363_v34, %v10245_v53  ;;  %v2445_v7 = vand.u32 4294901760, %v10377_v10 }
 0x387   : > { %v2260_v35 = vmul.f32 %v2258_v24, %v12373_v37  ;;  %v2261_v41 = vmul.f32 %v2257_v56, %v12374_v57  ;;  %v2244_v44 = vmul.f32 %v2243_v15, %v12375_v50  ;;  %v10386_v52 = vpack.c.bf16 %v2344_v63, %v2340_v6  ;;  %12379 = vst [vmem:[#allocation83_spill] sm:$0xff] %v10407_v39 }
 0x388   : > { %v2452_v57 = vsub.f32 %v10281_v48, %v2451_v28  ;;  %v2429_v56 = vsub.f32 %v10339_v60, %v10368_v55  ;;  %v2440_v15 = vsub.f32 %v10275_v62, %v2439_v16  ;;  %v10399_v50 = vand.u32 4294901760, %v2418_v23 }
 0x389   : > { %12376 = vst [vmem:[#allocation66_spill] sm:$0xff] %v10386_v52  ;;  %v2352_v17 = vand.u32 4294901760, %v2261_v41  ;;  %v10390_v18 = vpop.permute.xlu0 %2284  ;;  %v10392_v24 = vpop.permute.xlu1 %2264  ;;  %v2346_v53 = vand.u32 4294901760, %v2244_v44  ;;  %7588 = vmatprep.subr.bf16.mxu0 %v10386_v52  ;;  %v12377_v37 = vand.u32 4294901760, %v10327_v5  ;;  %v2354_v28 = vand.u32 4294901760, %v2260_v35 }
 0x38a   : > { %v10413_v2 = vsub.f32 %v2228_v4, %v2342_v3  ;;  %v10415_v55 = vsub.f32 %v2245_v54, %v2344_v63  ;;  %v10430_v8 = vand.u32 4294901760, %v2429_v56  ;;  %v2441_v4 = vand.u32 4294901760, %v2440_v15 }
 0x38b   : > { %v10404_v32 = vsub.f32 %v10327_v5, %v12377_v37  ;;  %v10411_v33 = vpack.c.bf16 %v2352_v17, %v12380_v13  ;;  %v10417_v16 = vpack.c.bf16 %v2346_v53, %v2342_v3  ;;  %v10419_v23 = vsub.f32 %v2244_v44, %v2346_v53  ;;  %v12391_v5 = vld [vmem:[#allocation50_spill] sm:$0xff] }
 0x38c   : > { %12382 = vst [vmem:[#allocation85_spill] sm:$0xff] %v10413_v2  ;;  %v12385_v37 = vand.u32 4294901760, %v10360_v22  ;;  %v10426_v19 = vsub.f32 %v2261_v41, %v2352_v17  ;;  %v2453_v13 = vand.u32 4294901760, %v2452_v57  ;;  %v10442_v41 = vsub.f32 %v10377_v10, %v2445_v7  ;;  %v12388_v17 = vld [vmem:[#allocation62_spill] sm:$0xff] }
 0x38d   : > { %12378 = vst [vmem:[#allocation67_spill] sm:$0xff] %v10404_v32  ;;  %12381 = vst [vmem:[#allocation82_spill] sm:$0xff] %v10411_v33  ;;  %v10428_v6 = vpop.permute.xlu0 %2280  ;;  %v2267_v1 = vpop.permute.xlu1 %2266  ;;  %7590 = vmatpush1.bf16.msra.mxu0 %v10417_v16  ;;  %v10444_v63 = vsub.f32 %v2260_v35, %v2354_v28  ;;  %v12394_v56 = vand.u32 4294901760, %v10407_v39  ;;  %v12395_v15 = vand.u32 4294901760, %v10413_v2 }
 0x38e   : > { %12383 = vst [vmem:[#allocation84_spill] sm:$0xff] %v10417_v16  ;;  %12384 = vst [vmem:[#allocation91_spill] sm:$0xff] %v10419_v23  ;;  %v10424_v31 = vsub.f32 %v10360_v22, %v12385_v37  ;;  %v2273_v44 = vsel %vm713_vm2, %v2267_v1, %v10269_v20  ;;  %v2274_v3 = vsel %vm713_vm2, %v10392_v24, %v2267_v1  ;;  %7592 = vmatprep.subr.bf16.mxu0 %v10411_v33 }
 0x38f   : > { %12386 = vst [vmem:[#allocation89_spill] sm:$0xff] %v10426_v19  ;;  %12387 = vst [vmem:[#allocation94_spill] sm:$0xff] %v10444_v63  ;;  %v2276_v57 = vmul.f32 %v2274_v3, %v12388_v17  ;;  %v12389_v37 = vand.u32 4294901760, %v10171_v47  ;;  %v2277_v16 = vmul.f32 %v2273_v44, %v12391_v5  ;;  %v10459_v3 = vpack.c.bf16 %v2453_v13, %v2441_v4  ;;  %v12392_v44 = vld [vmem:[#allocation70_spill] sm:$0xff]  ;;  %v12393_v4 = vld [vmem:[#allocation55_spill] sm:$0xff] }
 0x390   : > { %v2459_v17 = vand.u32 4294901760, %v10424_v31  ;;  %v2464_v54 = vsub.f32 %v10407_v39, %v12394_v56  ;;  %v2470_v33 = vsub.f32 %v10413_v2, %v12395_v15  ;;  %v2447_v5 = vand.u32 4294901760, %v10442_v41  ;;  %v12402_v41 = vld [vmem:[#allocation72_spill] sm:$0xff]  ;;  %v12403_v2 = vld [vmem:[#allocation30_spill] sm:$0xff] }
 0x391   : > { %v10452_v1 = vpack.c.bf16 %v2354_v28, %v12389_v37  ;;  %v10457_v35 = vpop.permute.xlu0 %2300  ;;  %v2283_v60 = vpop.permute.xlu1 %2282  ;;  %v2358_v53 = vand.u32 4294901760, %v2276_v57  ;;  %v12397_v13 = vand.u32 4294901760, %v10415_v55  ;;  %v12398_v56 = vand.u32 4294901760, %v10426_v19 }
 0x392   : > { %v2289_v47 = vsel %vm751_vm12, %v2283_v60, %v10390_v18  ;;  %v2290_v28 = vsel %vm751_vm12, %v10428_v6, %v2283_v60  ;;  %v12396_v60 = vand.u32 4294901760, %v10419_v23  ;;  %v12401_v32 = vand.u32 4294901760, %v10444_v63 }
 0x393   : > { %12390 = vst [vmem:[#allocation92_spill] sm:$0xff] %v10452_v1  ;;  %7594 = vmatpush1.bf16.msra.mxu0 %v10452_v1  ;;  %v2292_v31 = vmul.f32 %v2290_v28, %v12392_v44  ;;  %v2293_v37 = vmul.f32 %v2289_v47, %v12393_v4  ;;  %v2476_v28 = vsub.f32 %v10415_v55, %v12397_v13  ;;  %v2356_v44 = vand.u32 4294901760, %v2277_v16 }
 0x394   : > { %v2482_v1 = vsub.f32 %v10419_v23, %v12396_v60  ;;  %v2500_v49 = vsub.f32 %v10426_v19, %v12398_v56  ;;  %v10491_v15 = vsub.f32 %v2276_v57, %v2358_v53  ;;  %v12399_v13 = vand.u32 4294901760, %v10360_v22 }
 0x395   : > { %v2360_v47 = vand.u32 4294901760, %v2293_v37  ;;  %v2362_v4 = vand.u32 4294901760, %v2292_v31  ;;  %v2189_v52 = vpop.permute.xlu0 %2188  ;;  %v2299_v40 = vpop.permute.xlu1 %2298  ;;  %v2506_v30 = vsub.f32 %v10444_v63, %v12401_v32  ;;  %v2465_v56 = vand.u32 4294901760, %v2464_v54 }
 0x396   : > { %v2305_v60 = vsel %vm789_vm14, %v2299_v40, %v10457_v35  ;;  %v10500_v59 = vpack.c.bf16 %v12399_v13, %v2445_v7  ;;  %v2193_v57 = vsel %vm523_vm11, %v10247_v61, %v2189_v52  ;;  %v2192_v19 = vsel %vm523_vm11, %v2189_v52, %v10294_v12  ;;  %v12404_v12 = vld [vmem:[#allocation31_spill] sm:$0xff] }
 0x397   : > { %v10505_v25 = vpack.c.bf16 %v2362_v4, %v2358_v53  ;;  %v2309_v46 = vmul.f32 %v2305_v60, %v12402_v41  ;;  %v10514_v14 = vpack.c.bf16 %v2360_v47, %v2356_v44  ;;  %v2477_v7 = vand.u32 4294901760, %v2476_v28  ;;  %v12408_v61 = vld [vmem:[#allocation35_spill] sm:$0xff] }
 0x398   : > { %12400 = vst [vmem:[#allocation64_spill] sm:$0xff] %v10500_v59  ;;  %v10516_v13 = vsub.f32 %v2277_v16, %v2356_v44  ;;  %v2471_v53 = vand.u32 4294901760, %v2470_v33  ;;  %v2483_v63 = vand.u32 4294901760, %v2482_v1  ;;  %v2501_v23 = vand.u32 4294901760, %v2500_v49  ;;  %v12405_v1 = vld [vmem:[#allocation34_spill] sm:$0xff] }
 0x399   : > { %v2221_v59 = vpop.permute.xlu0 %2220  ;;  %v10518_v32 = vpop.permute.xlu1 %2296  ;;  %v10521_v54 = vsub.f32 %v2292_v31, %v2362_v4  ;;  %v10524_v39 = vmul.f32 %v2193_v57, %v12403_v2  ;;  %v10526_v52 = vand.u32 4294901760, %v2309_v46  ;;  %7596 = vmatprep.subr.bf16.mxu0 %v10514_v14  ;;  %v10530_v16 = vmul.f32 %v2192_v19, %v12404_v12 }
 0x39a   : > { %v2224_v33 = vsel %vm599_vm13, %v2221_v59, %v10331_v42  ;;  %v2225_v49 = vsel %vm599_vm13, %v10297_v45, %v2221_v59  ;;  %v2306_v2 = vsel %vm789_vm14, %v10518_v32, %v2299_v40  ;;  %7598 = vmatpush1.bf16.msra.mxu0 %v10505_v25  ;;  %v7601_v19 = vpack.c.bf16 %v2459_v17, %v2447_v5  ;;  %v12406_v42 = vld [vmem:[#allocation77_spill] sm:$0xff] }
 0x39b   : > { %v10543_v31 = vmul.f32 %v2225_v49, %v12405_v1  ;;  %2365 = vmatprep.subr.mxu0 %v10526_v52  ;;  %v7603_v28 = vpack.c.bf16 %v2477_v7, %v2465_v56  ;;  %v2507_v44 = vand.u32 4294901760, %v2506_v30  ;;  %v10546_v4 = vsub.f32 %v2293_v37, %v2360_v47  ;;  %v12413_v1 = vld [vmem:[#allocation27_spill] sm:$0xff] }
 0x39c   : > { %v2308_v60 = vmul.f32 %v2306_v2, %v12406_v42  ;;  %v7605_v45 = vpack.c.bf16 %v2483_v63, %v2471_v53  ;;  %v12407_v57 = vand.u32 4294901760, %v10354_v27  ;;  %v3056_v12 = vand.u32 4294901760, %v10524_v39 }
 0x39d   : > { %v2255_v41 = vpop.permute.xlu0 %2254  ;;  %v2205_v59 = vpop.permute.xlu1 %2204  ;;  %v10553_v49 = vmul.f32 %v2224_v33, %v12408_v61  ;;  %v12061_v30 = vand.u32 4294901760, %v10516_v13  ;;  %v12409_v5 = vand.u32 4294901760, %v10491_v15  ;;  %v12060_v63 = vand.u32 4294901760, %v10521_v54  ;;  %v12412_v33 = vld [vmem:[#allocation47_spill] sm:$0xff] }
 0x39e   : > { %v7607_v40 = vpack.c.bf16 %v2501_v23, %v12407_v57  ;;  %v2256_v17 = vsel %vm675_vm15, %v10243_v38, %v2255_v41  ;;  %v3054_v27 = vand.u32 4294901760, %v10530_v16  ;;  %v10566_v23 = vand.u32 4294901760, %v2308_v60 }
 0x39f   : > { %v10562_v37 = vsub.f32 %v10491_v15, %v12409_v5  ;;  %v3064_v47 = vand.u32 4294901760, %v10543_v31  ;;  %v2208_v56 = vsel %vm561_vm9, %v2205_v59, %v10271_v43  ;;  %v2209_v38 = vsel %vm561_vm9, %v10256_v21, %v2205_v59 }
 0x3a0   : > { %12410 = vst [vmem:[#allocation26_spill] sm:$0xff] %v10566_v23  ;;  %v12411_v7 = vand.u32 4294901760, %v10322_v26  ;;  %v2259_v61 = vsel %vm675_vm15, %v2255_v41, %v10254_v0  ;;  %v2262_v2 = vmul.f32 %v2256_v17, %v12412_v33  ;;  %v2214_v42 = vmul.f32 %v2209_v38, %v12413_v1  ;;  %2367 = vmatpush1.msra.mxu0 %v10566_v23  ;;  %v12414_v26 = vld [vmem:[#allocation28_spill] sm:$0xff]  ;;  %v12415_v38 = vld [vmem:[#allocation49_spill] sm:$0xff] }
 0x3a1   : > { %v2237_v57 = vpop.permute.xlu1 %2236  ;;  %v12062_v43 = vand.u32 4294901760, %v10546_v4  ;;  %v10587_v5 = vsub.f32 %v10524_v39, %v3056_v12  ;;  %v3062_v21 = vand.u32 4294901760, %v10553_v49  ;;  %7600 = vmatprep.subr.bf16.mxu0 %v10459_v3  ;;  %2420 = vmatmul.mubr.f32.vlgmr.msra.gmra.mrb[2].mxu0 %v10399_v50  ;;  %v10596_v0 = vsub.f32 %v10516_v13, %v12061_v30  ;;  %v2287_v17 = vpop.permute.xlu0 %2286  ;;  %v12417_v30 = vld [vmem:[#allocation41_spill] sm:$0xff] }
 0x3a2   : > { %v10577_v53 = vpack.c.bf16 %v2507_v44, %v12411_v7  ;;  %v2215_v44 = vmul.f32 %v2208_v56, %v12414_v26  ;;  %v10601_v41 = vsub.f32 %v10521_v54, %v12060_v63  ;;  %v10604_v39 = vsub.f32 %v10530_v16, %v3054_v27  ;;  %7602 = vmatpush1.bf16.msra.mxu0 %v7601_v19 }
 0x3a3   : > { %v10607_v59 = vsub.f32 %v2309_v46, %v10526_v52  ;;  %2425 = vmatprep.mubr.f32.mxu0 %v12230_v9  ;;  %v10612_v56 = vsub.f32 %v10543_v31, %v3064_v47  ;;  %v2263_v7 = vmul.f32 %v2259_v61, %v12415_v38  ;;  %v3060_v1 = vand.u32 4294901760, %v2214_v42  ;;  %7604 = vmatprep.subr.bf16.mxu0 %v7603_v28 }
 0x3a4   : > { %v3058_v33 = vand.u32 4294901760, %v2215_v44  ;;  %v3076_v26 = vand.u32 4294901760, %v2262_v2  ;;  %v2240_v46 = vsel %vm637_vm5, %v2237_v57, %v10363_v34  ;;  %v2241_v16 = vsel %vm637_vm5, %v10333_v29, %v2237_v57  ;;  %v12416_v57 = vld [vmem:[#allocation40_spill] sm:$0xff] }
 0x3a5   : > { %v2271_v19 = vpop.permute.xlu1 %2270  ;;  %v2524_v31 = vsub.f32 %v10546_v4, %v12062_v43  ;;  %v10626_v61 = vsub.f32 %v10553_v49, %v3062_v21  ;;  %v10629_v28 = vsub.f32 %v2308_v60, %v10566_v23  ;;  %v2288_v34 = vsel %vm751_vm12, %v10390_v18, %v2287_v17  ;;  %2431 = vmatmul.mubr.f32.gmra.mrb[4].mxu0 %v10430_v8 }
 0x3a6   : > { %v10635_v29 = vpack.c.bf16 %v3060_v1, %v3056_v12  ;;  %v2246_v38 = vmul.f32 %v2241_v16, %v12416_v57  ;;  %v2247_v43 = vmul.f32 %v2240_v46, %v12417_v30  ;;  %7606 = vmatpush1.bf16.msra.mxu0 %v7605_v45  ;;  %v2513_v3 = vand.u32 4294901760, %v10596_v0  ;;  %2591 = vmatprep.mubr.f32.mxu0 %v12230_v9  ;;  %v12420_v46 = vld [vmem:[#allocation68_spill] sm:$0xff] }
 0x3a7   : > { %v3074_v49 = vand.u32 4294901760, %v2263_v7  ;;  %v2291_v18 = vsel %vm751_vm12, %v2287_v17, %v10428_v6  ;;  %v10645_v63 = vpack.c.bf16 %v3058_v33, %v3054_v27  ;;  %7608 = vmatprep.subr.bf16.mxu0 %v7607_v40  ;;  %v10647_v12 = vsub.f32 %v2262_v2, %v3076_v26  ;;  %v12421_v40 = vld [vmem:[#allocation63_spill] sm:$0xff] }
 0x3a8   : > { %v3066_v16 = vand.u32 4294901760, %v2247_v43  ;;  %v3068_v57 = vand.u32 4294901760, %v2246_v38  ;;  %v2275_v45 = vsel %vm713_vm2, %v2271_v19, %v10392_v24  ;;  %v12419_v30 = vand.u32 4294901760, %v10587_v5  ;;  %v12422_v17 = vld [vmem:[#allocation71_spill] sm:$0xff] }
 0x3a9   : > { %12418 = vst [vmem:[#allocation24_spill] sm:$0xff] %v10645_v63  ;;  %v10658_v60 = vmul.f32 %v2288_v34, %v12420_v46  ;;  %7680 = vmatprep.subr.bf16.mxu1 %v10645_v63  ;;  %v2272_v6 = vsel %vm713_vm2, %v10269_v20, %v2271_v19  ;;  %v2279_v27 = vmul.f32 %v2275_v45, %v12421_v40  ;;  %v2303_v34 = vpop.permute.xlu1 %2302  ;;  %v12423_v46 = vand.u32 4294901760, %v10612_v56 }
 0x3aa   : > { %v10655_v0 = vsub.f32 %v10587_v5, %v12419_v30  ;;  %v10665_v2 = vsub.f32 %v2214_v42, %v3060_v1  ;;  %v2295_v24 = vmul.f32 %v2291_v18, %v12422_v17  ;;  %v10668_v23 = vpack.c.bf16 %v3068_v57, %v3064_v47  ;;  %7682 = vmatpush1.bf16.msra.mxu1 %v10635_v29  ;;  %v12426_v18 = vld [vmem:[#allocation59_spill] sm:$0xff] }
 0x3ab   : > { %v10671_v30 = vpack.c.bf16 %v3066_v16, %v3062_v21  ;;  %v10676_v63 = vsub.f32 %v10612_v56, %v12423_v46  ;;  %v12075_v20 = vand.u32 4294901760, %v10629_v28  ;;  %v12424_v19 = vand.u32 4294901760, %v10177_v58  ;;  %7610 = vmatpush1.bf16.msra.mxu0 %v10577_v53 }
 0x3ac   : > { %v10683_v1 = vsub.f32 %v2263_v7, %v3074_v49  ;;  %v12071_v47 = vand.u32 4294901760, %v10647_v12  ;;  %v10687_v21 = vsub.f32 %v2246_v38, %v3068_v57  ;;  %v2278_v45 = vmul.f32 %v2272_v6, %v12426_v18 }
 0x3ad   : > { %v10681_v42 = vpack.c.bf16 %v3076_v26, %v12424_v19  ;;  %7684 = vmatprep.subr.bf16.mxu1 %v10671_v30  ;;  %v2525_v40 = vand.u32 4294901760, %v2524_v31  ;;  %v10691_v17 = vsub.f32 %v2215_v44, %v3058_v33  ;;  %v3084_v46 = vand.u32 4294901760, %v10658_v60 }
 0x3ae   : > { %v3078_v58 = vand.u32 4294901760, %v2279_v27  ;;  %v2307_v7 = vsel %vm789_vm14, %v2303_v34, %v10518_v32  ;;  %v12067_v53 = vand.u32 4294901760, %v10665_v2  ;;  %v3082_v26 = vand.u32 4294901760, %v2295_v24  ;;  %7686 = vmatpush1.bf16.msra.mxu1 %v10668_v23 }
 0x3af   : > { %12425 = vst [vmem:[#allocation25_spill] sm:$0xff] %v10681_v42  ;;  %v7611_v19 = vpack.c.bf16 %v2525_v40, %v2513_v3  ;;  %v12427_v38 = vand.u32 4294901760, %v10193_v36  ;;  %v10703_v31 = vsub.f32 %v2247_v43, %v3066_v16  ;;  %v2304_v44 = vsel %vm789_vm14, %v10457_v35, %v2303_v34  ;;  %v12428_v3 = vld [vmem:[#allocation78_spill] sm:$0xff] }
 0x3b0   : > { %v2531_v33 = vand.u32 4294901760, %v10601_v41  ;;  %v12076_v32 = vand.u32 4294901760, %v10607_v59  ;;  %v12069_v6 = vand.u32 4294901760, %v10687_v21  ;;  %v3080_v18 = vand.u32 4294901760, %v2278_v45 }
 0x3b1   : > { %v10701_v57 = vpack.c.bf16 %v3074_v49, %v12427_v38  ;;  %v2311_v40 = vmul.f32 %v2307_v7, %v12428_v3  ;;  %7612 = vmatprep.subr.bf16.mxu0 %v7611_v19  ;;  %v12073_v36 = vand.u32 4294901760, %v10604_v39  ;;  %v12429_v43 = vand.u32 4294901760, %v10562_v37  ;;  %v12431_v7 = vld [vmem:[#allocation76_spill] sm:$0xff] }
 0x3b2   : > { %v2536_v11 = vsub.f32 %v10607_v59, %v12076_v32  ;;  %v10719_v35 = vpack.c.bf16 %v3082_v26, %v3078_v58  ;;  %v2542_v41 = vsub.f32 %v10629_v28, %v12075_v20  ;;  %v3180_v16 = vsub.f32 %v10665_v2, %v12067_v53 }
 0x3b3   : > { %7688 = vmatprep.subr.bf16.mxu1 %v10701_v57  ;;  %v7613_v49 = vpack.c.bf16 %v2531_v33, %v12429_v43  ;;  %v10727_v34 = vsub.f32 %v2295_v24, %v3082_v26  ;;  %v2310_v19 = vmul.f32 %v2304_v44, %v12431_v7  ;;  %v12068_v37 = vand.u32 4294901760, %v10691_v17 }
 0x3b4   : > { %12430 = vst [vmem:[#allocation29_spill] sm:$0xff] %v10719_v35  ;;  %7690 = vmatpush1.bf16.msra.mxu1 %v10681_v42  ;;  %v10732_v38 = vsub.f32 %v2279_v27, %v3078_v58  ;;  %v2537_v33 = vand.u32 4294901760, %v2536_v11  ;;  %v3162_v3 = vsub.f32 %v10604_v39, %v12073_v36  ;;  %v12072_v43 = vand.u32 4294901760, %v10626_v61 }
 0x3b5   : > { %7614 = vmatpush1.bf16.msra.mxu0 %v7613_v49  ;;  %7692 = vmatprep.subr.bf16.mxu1 %v10719_v35  ;;  %v10739_v24 = vpack.c.bf16 %v3084_v46, %v3080_v18  ;;  %v10741_v26 = vsub.f32 %v2278_v45, %v3080_v18  ;;  %v3174_v44 = vsub.f32 %v10691_v17, %v12068_v37  ;;  %v12070_v27 = vand.u32 4294901760, %v10703_v31 }
 0x3b6   : > { %v3204_v58 = vsub.f32 %v10687_v21, %v12069_v6  ;;  %v10750_v49 = vand.u32 4294901760, %v2311_v40  ;;  %2538 = vmatprep.subr.mxu0 %v2537_v33  ;;  %v2543_v11 = vand.u32 4294901760, %v2542_v41  ;;  %v3186_v7 = vsub.f32 %v10626_v61, %v12072_v43 }
 0x3b7   : > { %12432 = vst [vmem:[#allocation32_spill] sm:$0xff] %v10739_v24  ;;  %v3175_v45 = vand.u32 4294901760, %v3174_v44  ;;  %v3181_v18 = vand.u32 4294901760, %v3180_v16  ;;  %v3198_v53 = vsub.f32 %v10703_v31, %v12070_v27  ;;  %v12074_v37 = vand.u32 4294901760, %v10683_v1 }
 0x3b8   : > { %12433 = vst [vmem:[#allocation33_spill] sm:$0xff] %v10750_v49  ;;  %7694 = vmatpush1.bf16.msra.mxu1 %v10739_v24  ;;  %v10763_v6 = vsub.f32 %v10647_v12, %v12071_v47  ;;  %v10766_v41 = vsub.f32 %v10658_v60, %v3084_v46  ;;  %v3163_v33 = vand.u32 4294901760, %v3162_v3  ;;  %v12077_v16 = vand.u32 4294901760, %v10732_v38 }
 0x3b9   : > { %2544 = vmatpush1.msra.mxu0 %v2543_v11  ;;  %3087 = vmatprep.subr.mxu1 %v10750_v49  ;;  %v10770_v44 = vand.u32 4294901760, %v2310_v19  ;;  %v12434_v27 = vpack.c.bf16 %v10281_v48, %v10275_v62  ;;  %v3169_v47 = vand.u32 4294901760, %v10655_v0  ;;  %v3199_v43 = vand.u32 4294901760, %v3198_v53  ;;  %v12436_v0 = vld [vmem:[#allocation83_spill] sm:$0xff] }
 0x3ba   : > { %2593 = vmatmul.mubr.f32.vlgmr.msra.gmra.mrb[2].mxu0 %v10273_v51  ;;  %v3222_v60 = vsub.f32 %v10683_v1, %v12074_v37  ;;  %v12435_v3 = vpack.c.bf16 %v10360_v22, %v10377_v10  ;;  %v7695_v11 = vpack.c.bf16 %v3175_v45, %v3163_v33  ;;  %v3187_v36 = vand.u32 4294901760, %v3186_v7  ;;  %v12438_v10 = vld [vmem:[#allocation85_spill] sm:$0xff]  ;;  %v12439_v7 = vld [vmem:[#allocation91_spill] sm:$0xff] }
 0x3bb   : > { %7616 = vmatprep.subr.bf16.mxu0 %v12434_v27  ;;  %2598 = vmatprep.mubr.f32.mxu0 %v12230_v9  ;;  %v10787_v48 = vsub.f32 %v2311_v40, %v10750_v49  ;;  %v12437_v53 = vpack.c.bf16 %v10415_v55, %v12436_v0  ;;  %v7697_v27 = vpack.c.bf16 %v3181_v18, %v3169_v47  ;;  %v3205_v37 = vand.u32 4294901760, %v3204_v58  ;;  %v12442_v47 = vld [vmem:[#allocation81_spill] sm:$0xff]  ;;  %v12444_v62 = vld [vmem:[#allocation51_spill] sm:$0xff] }
 0x3bc   : > { %7618 = vmatpush1.bf16.msra.mxu0 %v12435_v3  ;;  %3089 = vmatpush1.msra.mxu1 %v10770_v44  ;;  %v3234_v22 = vsub.f32 %v10732_v38, %v12077_v16  ;;  %v7621_v45 = vpack.c.bf16 %v12439_v7, %v12438_v10  ;;  %v7699_v40 = vpack.c.bf16 %v3199_v43, %v3187_v36  ;;  %v3223_v33 = vand.u32 4294901760, %v3222_v60  ;;  %v12440_v3 = vld [vmem:[#allocation88_spill] sm:$0xff]  ;;  %v12443_v58 = vld [vmem:[#allocation89_spill] sm:$0xff]  ;;  %v12445_v16 = vld [vmem:[#allocation94_spill] sm:$0xff] }
 0x3bd   : > { %7620 = vmatprep.subr.bf16.mxu0 %v12437_v53  ;;  %7696 = vmatprep.subr.bf16.mxu1 %v7695_v11  ;;  %v12441_v20 = vand.u32 4294901760, %v12440_v3  ;;  %v7623_v18 = vpack.c.bf16 %v12443_v58, %v12442_v47  ;;  %v7625_v46 = vpack.c.bf16 %v12445_v16, %v12444_v62  ;;  %v3193_v49 = vand.u32 4294901760, %v10676_v63  ;;  %v12446_v11 = vld [vmem:[#allocation86_spill] sm:$0xff] }
 0x3be   : > { %3142 = vmatmul.mubr.f32.vlgmr.msra.gmra.mrb[2].mxu1 %v10399_v50  ;;  %2600 = vmatmul.mubr.f32.gmra.mrb[4].mxu0 %v12446_v11  ;;  %v12447_v50 = vand.u32 4294901760, %v10741_v26  ;;  %v10813_v43 = vsub.f32 %v2310_v19, %v10770_v44  ;;  %v3229_v63 = vand.u32 4294901760, %v10763_v6  ;;  %v3235_v35 = vand.u32 4294901760, %v3234_v22 }
 0x3bf   : > { %v3216_v53 = vsub.f32 %v12440_v3, %v12441_v20  ;;  %7698 = vmatpush1.bf16.msra.mxu1 %v7697_v27  ;;  %v12448_v20 = vld [vmem:[#allocation67_spill] sm:$0xff]  ;;  %v12449_v27 = vand.u32 4294901760, %v10727_v34  ;;  %v7701_v24 = vpack.c.bf16 %v3205_v37, %v3193_v49  ;;  %2706 = vmatprep.mubr.f32.mxu0 %v12230_v9  ;;  %v12450_v19 = vand.u32 4294901760, %v12436_v0 }
 0x3c0   : > { %v3240_v36 = vsub.f32 %v10741_v26, %v12447_v50  ;;  %7622 = vmatpush1.bf16.msra.mxu0 %v7621_v45  ;;  %7700 = vmatprep.subr.bf16.mxu1 %v7699_v40  ;;  %v3211_v60 = vand.u32 4294901760, %v12448_v20  ;;  %v3257_v50 = vand.u32 4294901760, %v10787_v48  ;;  %v12451_v45 = vand.u32 4294901760, %v10415_v55 }
 0x3c1   : > { %v3246_v32 = vsub.f32 %v10727_v34, %v12449_v27  ;;  %7624 = vmatprep.subr.bf16.mxu0 %v7623_v18  ;;  %3147 = vmatprep.mubr.f32.mxu1 %v12230_v9  ;;  %v12452_v20 = vand.u32 4294901760, %v12438_v10  ;;  %v12453_v37 = vand.u32 4294901760, %v12439_v7  ;;  %v12454_v6 = vand.u32 4294901760, %v12442_v47 }
 0x3c2   : > { %v7703_v42 = vpack.c.bf16 %v3223_v33, %v3211_v60  ;;  %v10827_v40 = vpack.c.bf16 %v12451_v45, %v12450_v19  ;;  %v12455_v22 = vand.u32 4294901760, %v12443_v58  ;;  %v12456_v33 = vand.u32 4294901760, %v10766_v41  ;;  %3153 = vmatmul.mubr.f32.gmra.mrb[4].mxu1 %v10430_v8 }
 0x3c3   : > { %v10833_v49 = vpack.c.bf16 %v12453_v37, %v12452_v20  ;;  %v7627_v55 = vpack.c.bf16 %v10546_v4, %v10516_v13  ;;  %7702 = vmatpush1.bf16.msra.mxu1 %v7701_v24  ;;  %v3217_v60 = vand.u32 4294901760, %v3216_v53  ;;  %v3247_v10 = vand.u32 4294901760, %v3246_v32  ;;  %3313 = vmatprep.mubr.f32.mxu1 %v12230_v9  ;;  %v12460_v20 = vld [vmem:[#allocation66_spill] sm:$0xff] }
 0x3c4   : > { %v10839_v18 = vpack.c.bf16 %v12455_v22, %v12454_v6  ;;  %v3252_v0 = vsub.f32 %v10766_v41, %v12456_v33  ;;  %7626 = vmatpush1.bf16.msra.mxu0 %v7625_v46  ;;  %7704 = vmatprep.subr.bf16.mxu1 %v7703_v42  ;;  %v3263_v7 = vand.u32 4294901760, %v10813_v43  ;;  %v3241_v27 = vand.u32 4294901760, %v3240_v36  ;;  %v12458_v46 = vld [vmem:[#allocation93_spill] sm:$0xff]  ;;  %v12461_v22 = vld [vmem:[#allocation58_spill] sm:$0xff]  ;;  %v2315_v33 = vld [vmem:[#allocation11 + $0x8] sm:$0xff] }
 0x3c5   : > { %7628 = vmatprep.subr.bf16.mxu0 %v7627_v55  ;;  %v7705_v47 = vpack.c.bf16 %v3229_v63, %v3217_v60  ;;  %v7629_v58 = vpack.c.bf16 %v10521_v54, %v10491_v15  ;;  %v7707_v19 = vpack.c.bf16 %v3247_v10, %v3235_v35  ;;  %v3258_v45 = vsub.f32 %v10787_v48, %v3257_v50  ;;  %v12457_v35 = vld [vmem:[#allocation79_spill] sm:$0xff]  ;;  %v12459_v36 = vld [vmem:[#allocation65_spill] sm:$0xff]  ;;  %v12463_v55 = vld [vmem:[#allocation82_spill] sm:$0xff] }
 0x3c6   : > { %v3253_v42 = vand.u32 4294901760, %v3252_v0  ;;  %v3264_v8 = vsub.f32 %v10813_v43, %v3263_v7  ;;  %v7711_v63 = vpack.c.bf16 %v10691_v17, %v10604_v39  ;;  %v7713_v37 = vpack.c.bf16 %v10665_v2, %v10587_v5  ;;  %v12462_v0 = vld [vmem:[#allocation84_spill] sm:$0xff]  ;;  %v12464_v10 = vld [vmem:[#allocation87_spill] sm:$0xff]  ;;  %2323 = vperm.xlu1 %8414, %v2315_v33  }
 0x3c7   : > { %7706 = vmatpush1.bf16.msra.mxu1 %v7705_v47  ;;  %v3259_v24 = vand.u32 4294901760, %v3258_v45  ;;  %v7715_v6 = vpack.c.bf16 %v10703_v31, %v10626_v61  ;;  %v7717_v60 = vpack.c.bf16 %v10687_v21, %v10612_v56  ;;  %v7719_v47 = vpack.c.bf16 %v10683_v1, %v12464_v10 }
 0x3c8   : > { %7630 = vmatpush1.bf16.msra.mxu0 %v7629_v58  ;;  %7708 = vmatprep.subr.bf16.mxu1 %v7707_v19  ;;  %v7709_v32 = vpack.c.bf16 %v3253_v42, %v3241_v27  ;;  %v3265_v53 = vand.u32 4294901760, %v3264_v8  ;;  %v6717_v27 = vld [vmem:[#allocation14 + $0x8] sm:$0xff]  ;;  %v12465_v58 = vld [vmem:[#allocation92_spill] sm:$0xff]  ;;  %v7721_v19 = vpack.c.bf16 %v10647_v12, %v12440_v3  ;;  %v7723_v45 = vpack.c.bf16 %v10727_v34, %v10732_v38  ;;  %v12467_v8 = vld [vmem:[#allocation90_spill] sm:$0xff] }
 0x3c9   : > { %2656 = vmatprep.subr.mxu0 %v10607_v59  ;;  %v7725_v42 = vpack.c.bf16 %v10766_v41, %v10741_v26  ;;  %vm3794_vm9 = vcmask 64512   ;;  %vm6713_vm11 = vcmask 523264  }
 0x3ca   : > { %6725 = vperm.xlu1 %8414, %v6717_v27   ;;  %v12481_v27 = vld [vmem:[#allocation32_spill] sm:$0xff] }
 0x3cb   : > { %7710 = vmatpush1.bf16.msra.mxu1 %v7709_v32  ;;  %v12466_v32 = vld [vmem:[#allocation26_spill] sm:$0xff] }
 0x3cc   : > { %2659 = vmatpush1.msra.mxu0 %v10629_v28  ;;  %3260 = vmatprep.subr.mxu1 %v3259_v24  ;;  %v12468_v24 = vld [vmem:[#allocation52_spill] sm:$0xff] }
 0x3cd   : > { %7632 = vmatprep.subr.bf16.mxu0 %v12457_v35  ;;  %2709 = vmatmul.mubr.f32.vlgmr.msra.gmra.mrb[2].mxu0 %v12458_v46 }
 0x3ce   : > { %7634 = vmatpush1.bf16.msra.mxu0 %v12459_v36  ;;  %2714 = vmatprep.mubr.f32.mxu0 %v12230_v9 }
 0x3cf   : > { %7636 = vmatprep.subr.bf16.mxu0 %v12460_v20  ;;  %3266 = vmatpush1.msra.mxu1 %v3265_v53  ;;  %v12469_v53 = vld [vmem:[#allocation64_spill] sm:$0xff] }
 0x3d0   : > { %7712 = vmatprep.subr.bf16.mxu1 %v7711_v63  ;;  %3315 = vmatmul.mubr.f32.vlgmr.msra.gmra.mrb[2].mxu1 %v10273_v51  ;;  %v12470_v63 = vld [vmem:[#allocation24_spill] sm:$0xff] }
 0x3d1   : > { %7714 = vmatpush1.bf16.msra.mxu1 %v7713_v37  ;;  %2717 = vmatmul.mubr.f32.gmra.mrb[4].mxu0 %v12461_v22  ;;  %v12471_v37 = vld [vmem:[#allocation80_spill] sm:$0xff] }
 0x3d2   : > { %7638 = vmatpush1.bf16.msra.mxu0 %v12462_v0  ;;  %7716 = vmatprep.subr.bf16.mxu1 %v7715_v6  ;;  %v12473_v6 = vand.u32 4294901760, %v12445_v16  ;;  %v12477_v16 = vand.u32 4294901760, %v10521_v54  ;;  %v12484_v54 = vand.u32 4294901760, %v10604_v39  ;;  %v12489_v39 = vand.u32 4294901760, %v10703_v31 }
 0x3d3   : > { %7640 = vmatprep.subr.bf16.mxu0 %v12463_v55  ;;  %2805 = vmatprep.mubr.f32.mxu0 %v12230_v9  ;;  %v12492_v31 = vand.u32 4294901760, %v12464_v10 }
 0x3d4   : > { %3320 = vmatprep.mubr.f32.mxu1 %v12230_v9 }
 0x3d5   : > { %7718 = vmatpush1.bf16.msra.mxu1 %v7717_v60  ;;  %v12475_v60 = vand.u32 4294901760, %v10546_v4  ;;  %v12480_v4 = vand.u32 4294901760, %v10607_v59  ;;  %v12485_v59 = vand.u32 4294901760, %v10691_v17 }
 0x3d6   : > { %7642 = vmatpush1.bf16.msra.mxu0 %v12465_v58  ;;  %7720 = vmatprep.subr.bf16.mxu1 %v7719_v47 }
 0x3d7   : > { %7644 = vmatprep.subr.bf16.mxu0 %v10514_v14  ;;  %3322 = vmatmul.mubr.f32.gmra.mrb[4].mxu1 %v12446_v11 }
 0x3d8   : > { %3428 = vmatprep.mubr.f32.mxu1 %v12230_v9 }
 0x3d9   : > { %7722 = vmatpush1.bf16.msra.mxu1 %v7721_v19  ;;  %v12482_v19 = vand.u32 4294901760, %v10629_v28  ;;  %v12486_v28 = vand.u32 4294901760, %v10587_v5  ;;  %v12490_v5 = vand.u32 4294901760, %v10612_v56  ;;  %v12494_v56 = vand.u32 4294901760, %v12440_v3 }
 0x3da   : > { %7646 = vmatpush1.bf16.msra.mxu0 %v10505_v25  ;;  %7724 = vmatprep.subr.bf16.mxu1 %v7723_v45  ;;  %v7743_v45 = vpack.c.bf16 %v12485_v59, %v12484_v54 }
 0x3db   : > { %2756 = vmatprep.subr.mxu0 %v10526_v52 }
 0x3dd   : > { %7726 = vmatpush1.bf16.msra.mxu1 %v7725_v42 }
 0x3de   : > { %2758 = vmatpush1.msra.mxu0 %v12466_v32  ;;  %3378 = vmatprep.subr.mxu1 %v10787_v48 }
 0x3df   : > { %7648 = vmatprep.subr.bf16.mxu0 %v12467_v8  ;;  %2809 = vmatmul.mubr.f32.vlgmr.msra.gmra.mrb[2].mxu0 %v12468_v24 }
 0x3e0   : > { %7650 = vmatpush1.bf16.msra.mxu0 %v12469_v53  ;;  %2814 = vmatprep.mubr.f32.mxu0 %v12230_v9  ;;  %v12493_v53 = vand.u32 4294901760, %v10683_v1 }
 0x3e1   : > { %7652 = vmatprep.subr.bf16.mxu0 %v10827_v40  ;;  %3381 = vmatpush1.msra.mxu1 %v10813_v43  ;;  %v12472_v40 = vand.u32 4294901760, %v12444_v62  ;;  %v12476_v62 = vand.u32 4294901760, %v10491_v15  ;;  %v3792_v15 = vld [vmem:[#allocation13] sm:$0xff] }
 0x3e2   : > { %7728 = vmatprep.subr.bf16.mxu1 %v12470_v63  ;;  %3431 = vmatmul.mubr.f32.vlgmr.msra.gmra.mrb[2].mxu1 %v12458_v46  ;;  %v12474_v46 = vand.u32 4294901760, %v10516_v13  ;;  %v12479_v13 = vld [vmem:[#allocation29_spill] sm:$0xff]  ;;  %v3796_v8 = vsel %vm3794_vm9, %v3792_v15, 0 }
 0x3e3   : > { %7730 = vmatpush1.bf16.msra.mxu1 %v10635_v29  ;;  %2818 = vmatmul.mubr.f32.gmra.mrb[4].mxu0 %v12471_v37  ;;  %v7657_v33 = vpack.c.bf16 %v12473_v6, %v12472_v40  ;;  %v7751_v40 = vpack.c.bf16 %v12493_v53, %v12492_v31  ;;  %v12496_v6 = vand.u32 4294901760, %v10732_v38  ;;  %v4839_v53 = vld [vmem:[#allocation16 + $0x10] sm:$0xff] }
 0x3e4   : > { %7654 = vmatpush1.bf16.msra.mxu0 %v10833_v49  ;;  %7732 = vmatprep.subr.bf16.mxu1 %v10671_v30  ;;  %v7659_v47 = vpack.c.bf16 %v12475_v60, %v12474_v46  ;;  %v7661_v49 = vpack.c.bf16 %v12477_v16, %v12476_v62  ;;  %v12513_v46 = vld [vmem:[#allocation54_spill] sm:$0xff]  ;;  %v12514_v60 = vld [vmem:[#allocation57_spill] sm:$0xff]  ;;  %v4853_v62 = vld [vmem:[#allocation16 + $0x80] sm:$0xff] }
 0x3e5   : > { %7656 = vmatprep.subr.bf16.mxu0 %v10839_v18  ;;  %2942 = vmatprep.mubr.f32.mxu0 %v12230_v9  ;;  %v12478_v18 = vld [vmem:[#allocation25_spill] sm:$0xff] }
 0x3e6   : > { %3436 = vmatprep.mubr.f32.mxu1 %v12230_v9  ;;  %v4854_v16 = vld [vmem:[#allocation16 + $0x88] sm:$0xff] }
 0x3e7   : > { %7734 = vmatpush1.bf16.msra.mxu1 %v10668_v23 }
 0x3e8   : > { %7658 = vmatpush1.bf16.msra.mxu0 %v7657_v33  ;;  %7736 = vmatprep.subr.bf16.mxu1 %v10701_v57  ;;  %v12497_v33 = vand.u32 4294901760, %v10727_v34 }
 0x3e9   : > { %7660 = vmatprep.subr.bf16.mxu0 %v7659_v47  ;;  %3439 = vmatmul.mubr.f32.gmra.mrb[4].mxu1 %v12461_v22  ;;  %v12483_v22 = vld [vmem:[#allocation33_spill] sm:$0xff] }
 0x3ea   : > { %3527 = vmatprep.mubr.f32.mxu1 %v12230_v9  ;;  %v12515_v47 = vld [vmem:[#allocation61_spill] sm:$0xff] }
 0x3eb   : > { %7738 = vmatpush1.bf16.msra.mxu1 %v12478_v18 }
 0x3ec   : > { %7662 = vmatpush1.bf16.msra.mxu0 %v7661_v49  ;;  %7740 = vmatprep.subr.bf16.mxu1 %v12479_v13  ;;  %v4918_v49 = vand.u32 4294901760, %v4853_v62 }
 0x3ed   : > { %2891 = vmatprep.subr.mxu0 %v12480_v4 }
 0x3ee   : > { %v11100_v4 = vsub.f32 %v4853_v62, %v4918_v49 }
 0x3ef   : > { %7742 = vmatpush1.bf16.msra.mxu1 %v12481_v27 }
 0x3f0   : > { %2895 = vmatpush1.msra.mxu0 %v12482_v19  ;;  %3478 = vmatprep.subr.mxu1 %v12483_v22  ;;  %12516 = vst [vmem:[#allocation36_spill] sm:$0xff] %v11100_v4  ;;  %v12093_v19 = vand.u32 4294901760, %v11100_v4 }
 0x3f1   : > { %7664 = vmatprep.subr.bf16.mxu0 %v12457_v35  ;;  %2944 = vmatmul.mubr.f32.vlgmr.msra.gmra.mrb[2].mxu0 %v10273_v51  ;;  %v12487_v35 = vand.u32 4294901760, %v10665_v2  ;;  %v12491_v2 = vand.u32 4294901760, %v10687_v21  ;;  %v12495_v21 = vand.u32 4294901760, %v10647_v12  ;;  %v12499_v12 = vand.u32 4294901760, %v10766_v41  ;;  %v12502_v41 = vld [vmem:[#allocation69_spill] sm:$0xff] }
 0x3f2   : > { %7666 = vmatpush1.bf16.msra.mxu0 %v12459_v36  ;;  %2949 = vmatprep.mubr.f32.mxu0 %v12230_v9  ;;  %v12488_v36 = vand.u32 4294901760, %v10626_v61  ;;  %v10961_v61 = vand.u32 4294901760, %v3796_v8 }
 0x3f3   : > { %7668 = vmatprep.subr.bf16.mxu0 %v12460_v20  ;;  %3480 = vmatpush1.msra.mxu1 %v10770_v44  ;;  %v7745_v42 = vpack.c.bf16 %v12487_v35, %v12486_v28  ;;  %v3793_v20 = vld [vmem:[#allocation13 + $0x8] sm:$0xff]  ;;  %v4837_v28 = vld [vmem:[#allocation16] sm:$0xff] }
 0x3f4   : > { %7744 = vmatprep.subr.bf16.mxu1 %v7743_v45  ;;  %3531 = vmatmul.mubr.f32.vlgmr.msra.gmra.mrb[2].mxu1 %v12468_v24  ;;  %v7747_v17 = vpack.c.bf16 %v12489_v39, %v12488_v36  ;;  %v7749_v24 = vpack.c.bf16 %v12491_v2, %v12490_v5  ;;  %v10977_v1 = vsub.f32 %v3796_v8, %v10961_v61  ;;  %v4838_v35 = vld [vmem:[#allocation16 + $0x8] sm:$0xff]  ;;  %v4855_v39 = vld [vmem:[#allocation16 + $0x90] sm:$0xff] }
 0x3f5   : > { %7746 = vmatpush1.bf16.msra.mxu1 %v7745_v42  ;;  %2951 = vmatmul.mubr.f32.gmra.mrb[4].mxu0 %v12446_v11  ;;  %v4870_v42 = vand.u32 4294901760, %v4837_v28  ;;  %v4873_v36 = vand.u32 4294901760, %v4838_v35  ;;  %v4924_v8 = vand.u32 4294901760, %v4855_v39 }
 0x3f6   : > { %7670 = vmatpush1.bf16.msra.mxu0 %v12462_v0  ;;  %7748 = vmatprep.subr.bf16.mxu1 %v7747_v17  ;;  %v3799_v0 = vsel %vm3794_vm9, %v3793_v20, 0  ;;  %v4856_v17 = vld [vmem:[#allocation16 + $0x98] sm:$0xff] }
 0x3f7   : > { %7672 = vmatprep.subr.bf16.mxu0 %v12463_v55  ;;  %3039 = vmatprep.mubr.f32.mxu0 %v12230_v9  ;;  %v7753_v55 = vpack.c.bf16 %v12495_v21, %v12494_v56  ;;  %v10979_v10 = vand.u32 4294901760, %v3799_v0  ;;  %v4927_v20 = vand.u32 4294901760, %v4856_v17  ;;  %v11116_v5 = vsub.f32 %v4837_v28, %v4870_v42 }
 0x3f8   : > { %3536 = vmatprep.mubr.f32.mxu1 %v12230_v9  ;;  %v11118_v2 = vsub.f32 %v4838_v35, %v4873_v36  ;;  %v4876_v21 = vand.u32 4294901760, %v4839_v53 }
 0x3f9   : > { %7750 = vmatpush1.bf16.msra.mxu1 %v7749_v24  ;;  %v10996_v38 = vsub.f32 %v3799_v0, %v10979_v10  ;;  %12519 = vst [vmem:[#allocation39_spill] sm:$0xff] %v11116_v5  ;;  %v11120_v24 = vpack.c.bf16 %v4927_v20, %v4924_v8  ;;  %v11124_v31 = vsub.f32 %v4856_v17, %v4927_v20  ;;  %v12091_v0 = vand.u32 4294901760, %v11116_v5 }
 0x3fa   : > { %7674 = vmatpush1.bf16.msra.mxu0 %v12465_v58  ;;  %7752 = vmatprep.subr.bf16.mxu1 %v7751_v40  ;;  %v7755_v58 = vpack.c.bf16 %v12497_v33, %v12496_v6  ;;  %12520 = vst [vmem:[#allocation62_spill] sm:$0xff] %v11118_v2  ;;  %v4840_v40 = vld [vmem:[#allocation16 + $0x18] sm:$0xff]  ;;  %v12090_v56 = vand.u32 4294901760, %v11118_v2 }
 0x3fb   : > { %7676 = vmatprep.subr.bf16.mxu0 %v10514_v14  ;;  %3540 = vmatmul.mubr.f32.gmra.mrb[4].mxu1 %v12471_v37  ;;  %v12498_v14 = vand.u32 4294901760, %v10741_v26  ;;  %v10993_v37 = vand.u32 4294901760, %v10977_v1  ;;  %v11006_v34 = vand.u32 4294901760, %v10996_v38  ;;  %v12501_v26 = vld [vmem:[#allocation43_spill] sm:$0xff]  ;;  %12522 = vst [vmem:[#allocation70_spill] sm:$0xff] %v11124_v31  ;;  %v12088_v33 = vand.u32 4294901760, %v11124_v31 }
 0x3fc   : > { %3664 = vmatprep.mubr.f32.mxu1 %v12230_v9 }
 0x3fd   : > { %7754 = vmatpush1.bf16.msra.mxu1 %v7753_v55  ;;  %v7757_v3 = vpack.c.bf16 %v12499_v12, %v12498_v14  ;;  %v4879_v55 = vand.u32 4294901760, %v4840_v40  ;;  %v5000_v12 = vsub.f32 %v11116_v5, %v12091_v0 }
 0x3fe   : > { %7678 = vmatpush1.bf16.msra.mxu0 %v10505_v25  ;;  %7756 = vmatprep.subr.bf16.mxu1 %v7755_v58  ;;  %v12500_v25 = vld [vmem:[#allocation37_spill] sm:$0xff] }
 0x3ff   : > { %2990 = vmatprep.subr.mxu0 %v10526_v52  ;;  %v3871_v52 = vsub.f32 %v10977_v1, %v10993_v37 }
 0x401   : > { %7758 = vmatpush1.bf16.msra.mxu1 %v7757_v3  ;;  %v3872_v48 = vand.u32 4294901760, %v3871_v52  ;;  %v5007_v3 = vsub.f32 %v11118_v2, %v12090_v56  ;;  %v5133_v52 = vsub.f32 %v11124_v31, %v12088_v33 }
 0x402   : > { %2992 = vmatpush1.msra.mxu0 %v12466_v32  ;;  %3613 = vmatprep.subr.mxu1 %v3257_v50  ;;  %v3882_v50 = vsub.f32 %v10996_v38, %v11006_v34  ;;  %v12508_v32 = vld [vmem:[#allocation73_spill] sm:$0xff] }
 0x403   : > { %3041 = vmatmul.mubr.f32.vlgmr.msra.gmra.mrb[2].mxu0 %v10273_v51  ;;  %3802 = vmatprep.subr.mxu0 %v12500_v25 }
 0x404   : > { %3804 = vmatpush1.msra.mxu0 %v12501_v26  ;;  %3046 = vmatprep.mubr.f32.mxu0 %v12230_v9  ;;  %v3883_v43 = vand.u32 4294901760, %v3882_v50 }
 0x405   : > { %3617 = vmatpush1.msra.mxu1 %v3263_v7  ;;  %3895 = vmatprep.subr.mxu0 %v12502_v41  ;;  %v12503_v7 = vld [vmem:[#allocation74_spill] sm:$0xff]  ;;  %v5001_v41 = vand.u32 4294901760, %v5000_v12 }
 0x406   : > { %7760 = vmatprep.subr.bf16.mxu1 %v12470_v63  ;;  %3666 = vmatmul.mubr.f32.vlgmr.msra.gmra.mrb[2].mxu1 %v10273_v51  ;;  %v12511_v63 = vld [vmem:[#allocation46_spill] sm:$0xff] }
 0x407   : > { %3048 = vmatmul.mubr.f32.gmra.mrb[4].mxu0 %v12446_v11  ;;  %7762 = vmatpush1.bf16.msra.mxu1 %v10635_v29  ;;  %v12504_v29 = vld [vmem:[#allocation45_spill] sm:$0xff] }
 0x408   : > { %7764 = vmatprep.subr.bf16.mxu1 %v10671_v30  ;;  %3867 = vmatprep.mubr.f32.mxu0 %v12230_v9  ;;  %v12506_v30 = vld [vmem:[#allocation38_spill] sm:$0xff] }
 0x409   : > { %3671 = vmatprep.mubr.f32.mxu1 %v12230_v9 }
 0x40a   : > { %3673 = vmatmul.mubr.f32.gmra.mrb[4].mxu1 %v12446_v11 }
 0x40b   : > { %3873 = vmatmul.mubr.f32.vlgmr.msra.gmra.mrb[6].mxu0 %v3872_v48  ;;  %7766 = vmatpush1.bf16.msra.mxu1 %v10668_v23  ;;  %v12505_v23 = vld [vmem:[#allocation53_spill] sm:$0xff] }
 0x40c   : > { %3901 = vmatpush1.msra.mxu0 %v12503_v7  ;;  %7768 = vmatprep.subr.bf16.mxu1 %v10701_v57  ;;  %v12507_v57 = vld [vmem:[#allocation44_spill] sm:$0xff] }
 0x40d   : > { %3878 = vmatprep.mubr.f32.mxu0 %v12230_v9  ;;  %3981 = vmatprep.subr.mxu0 %v12504_v29  ;;  %v11152_v7 = vld [vmem:[#allocation16 + $0x20] sm:$0xff] }
 0x40e   : > { %3761 = vmatprep.mubr.f32.mxu1 %v12230_v9 }
 0x40f   : > { %3884 = vmatmul.mubr.f32.gmra.mrb[8].mxu0 %v3883_v43  ;;  %7770 = vmatpush1.bf16.msra.mxu1 %v12478_v18  ;;  %v4921_v18 = vand.u32 4294901760, %v4854_v16 }
 0x410   : > { %7772 = vmatprep.subr.bf16.mxu1 %v12479_v13  ;;  %3964 = vmatprep.mubr.f32.mxu0 %v12230_v9 }
 0x411   : > { %v11098_v13 = vpack.c.bf16 %v4921_v18, %v4918_v49  ;;  %v4882_v49 = vand.u32 4294901760, %v11152_v7 }
 0x413   : > { %3966 = vmatmul.mubr.f32.vlgmr.msra.gmra.mrb[6].mxu0 %v10961_v61  ;;  %7774 = vmatpush1.bf16.msra.mxu1 %v12481_v27  ;;  %v11102_v27 = vsub.f32 %v4854_v16, %v4921_v18  ;;  %v11184_v35 = vsub.f32 %v11152_v7, %v4882_v49 }
 0x414   : > { %3984 = vmatpush1.msra.mxu0 %v12505_v23  ;;  %3712 = vmatprep.subr.mxu1 %v12483_v22  ;;  %v5134_v23 = vand.u32 4294901760, %v5133_v52 }
 0x415   : > { %3971 = vmatprep.mubr.f32.mxu0 %v12230_v9  ;;  %4065 = vmatprep.subr.mxu0 %v12500_v25  ;;  %12517 = vst [vmem:[#allocation48_spill] sm:$0xff] %v11102_v27  ;;  %v12092_v22 = vand.u32 4294901760, %v11102_v27 }
 0x417   : > { %3973 = vmatmul.mubr.f32.gmra.mrb[8].mxu0 %v10979_v10  ;;  %3714 = vmatpush1.msra.mxu1 %v10770_v44  ;;  %v12510_v44 = vld [vmem:[#allocation75_spill] sm:$0xff]  ;;  %v5119_v15 = vsub.f32 %v11102_v27, %v12092_v22 }
 0x418   : > { %3763 = vmatmul.mubr.f32.vlgmr.msra.gmra.mrb[2].mxu1 %v10273_v51  ;;  %4047 = vmatprep.mubr.f32.mxu0 %v12230_v9  ;;  %v12509_v51 = vld [vmem:[#allocation56_spill] sm:$0xff] }
 0x419   : > { %3768 = vmatprep.mubr.f32.mxu1 %v12230_v9  ;;  %4316 = vmatprep.subr.mxu1 %v12506_v30  ;;  %v5120_v59 = vand.u32 4294901760, %v5119_v15 }
 0x41a   : > { %4318 = vmatpush1.msra.mxu1 %v12507_v57 }
 0x41b   : > { %4050 = vmatmul.mubr.f32.vlgmr.msra.gmra.mrb[6].mxu0 %v10977_v1  ;;  %4409 = vmatprep.subr.mxu1 %v12508_v32  ;;  %v11157_v32 = vld [vmem:[#allocation16 + $0x28] sm:$0xff] }
 0x41c   : > { %4067 = vmatpush1.msra.mxu0 %v12501_v26  ;;  %3770 = vmatmul.mubr.f32.gmra.mrb[4].mxu1 %v12446_v11  ;;  %v12512_v11 = vld [vmem:[#allocation60_spill] sm:$0xff]  ;;  %v4885_v15 = vand.u32 4294901760, %v11157_v32 }
 0x41d   : > { %4055 = vmatprep.mubr.f32.mxu0 %v12230_v9  ;;  %4381 = vmatprep.mubr.f32.mxu1 %v12230_v9 }
 0x41e   : > { %4152 = vmatprep.subr.mxu0 %v12509_v51  ;;  %v4859_v51 = vld [vmem:[#allocation16 + $0xb0] sm:$0xff] }
 0x41f   : > { %4058 = vmatmul.mubr.f32.gmra.mrb[8].mxu0 %v10996_v38 }
 0x420   : > { %4130 = vmatprep.mubr.f32.mxu0 %v12230_v9  ;;  %4387 = vmatmul.mubr.f32.vlgmr.msra.gmra.mrb[6].mxu1 %v3872_v48  ;;  %v5008_v48 = vand.u32 4294901760, %v5007_v3 }
 0x421   : > { %4392 = vmatprep.mubr.f32.mxu1 %v12230_v9  ;;  %4415 = vmatpush1.msra.mxu1 %v12510_v44 }
 0x422   : > { %4495 = vmatprep.subr.mxu1 %v12511_v63  ;;  %v11159_v44 = vpack.c.bf16 %v5008_v48, %v5001_v41 }
 0x423   : > { %4134 = vmatmul.mubr.f32.vlgmr.msra.gmra.mrb[6].mxu0 %v10993_v37 }
 0x424   : > { %4156 = vmatpush1.msra.mxu0 %v12512_v11  ;;  %4139 = vmatprep.mubr.f32.mxu0 %v12230_v9  ;;  %12525 = vst [vmem:[#allocation30_spill] sm:$0xff] %v11159_v44 }
 0x425   : > { %4398 = vmatmul.mubr.f32.gmra.mrb[8].mxu1 %v3883_v43  ;;  %4235 = vmatprep.subr.mxu0 %v12500_v25 }
 0x426   : > { %4478 = vmatprep.mubr.f32.mxu1 %v12230_v9 }
 0x427   : > { %4143 = vmatmul.mubr.f32.gmra.mrb[8].mxu0 %v11006_v34 }
 0x428   : > { %4219 = vmatprep.mubr.f32.mxu0 %v12230_v9 }
 0x429   : > { %4480 = vmatmul.mubr.f32.vlgmr.msra.gmra.mrb[6].mxu1 %v10961_v61 }
 0x42a   : > { %4485 = vmatprep.mubr.f32.mxu1 %v12230_v9  ;;  %4498 = vmatpush1.msra.mxu1 %v12513_v46  ;;  %v11167_v46 = vpack.c.bf16 %v4873_v36, %v4870_v42  ;;  %v11187_v36 = vld [vmem:[#allocation16 + $0x30] sm:$0xff] }
 0x42b   : > { %4221 = vmatmul.mubr.f32.vlgmr.msra.gmra.mrb[6].mxu0 %v10961_v61  ;;  %4579 = vmatprep.subr.mxu1 %v12506_v30 }
 0x42c   : > { %4237 = vmatpush1.msra.mxu0 %v12501_v26  ;;  %4226 = vmatprep.mubr.f32.mxu0 %v12230_v9 }
 0x42d   : > { %4487 = vmatmul.mubr.f32.gmra.mrb[8].mxu1 %v10979_v10  ;;  %7776 = vmatprep.subr.bf16.mxu0 %v11098_v13 }
 0x42e   : > { %4561 = vmatprep.mubr.f32.mxu1 %v12230_v9 }
 0x42f   : > { %4228 = vmatmul.mubr.f32.gmra.mrb[8].mxu0 %v10979_v10 }
 0x430   : > { %4300 = vmatprep.mubr.f32.mxu0 %v12230_v9 }
 0x431   : > { %4564 = vmatmul.mubr.f32.vlgmr.msra.gmra.mrb[6].mxu1 %v10977_v1  ;;  %v4857_v1 = vld [vmem:[#allocation16 + $0xa0] sm:$0xff] }
 0x432   : > { %4569 = vmatprep.mubr.f32.mxu1 %v12230_v9  ;;  %4581 = vmatpush1.msra.mxu1 %v12507_v57  ;;  %v4930_v58 = vand.u32 4294901760, %v4857_v1 }
 0x433   : > { %4302 = vmatmul.mubr.f32.vlgmr.msra.gmra.mrb[6].mxu0 %v10961_v61  ;;  %4666 = vmatprep.subr.mxu1 %v12514_v60  ;;  %v4860_v60 = vld [vmem:[#allocation16 + $0xb8] sm:$0xff] }
 0x434   : > { %4307 = vmatprep.mubr.f32.mxu0 %v12230_v9  ;;  %v11148_v26 = vsub.f32 %v4857_v1, %v4930_v58  ;;  %7778 = vmatpush3.bf16.msra.mxu0 %v11167_v46  ;;  %v4939_v42 = vand.u32 4294901760, %v4860_v60 }
 0x435   : > { %4572 = vmatmul.mubr.f32.gmra.mrb[8].mxu1 %v10996_v38  ;;  %v11138_v38 = vsub.f32 %v4840_v40, %v4879_v55  ;;  %7780 = vmatprep.subr.bf16.mxu0 %v11120_v24  ;;  %v4861_v40 = vld [vmem:[#allocation16 + $0xc0] sm:$0xff] }
 0x436   : > { %4644 = vmatprep.mubr.f32.mxu1 %v12230_v9  ;;  %12523 = vst [vmem:[#allocation55_spill] sm:$0xff] %v11148_v26  ;;  %v4942_v7 = vand.u32 4294901760, %v4861_v40 }
 0x437   : > { %4309 = vmatmul.mubr.f32.gmra.mrb[8].mxu0 %v10979_v10  ;;  %v12104_v43 = vand.u32 4294901760, %v11138_v38 }
 0x439   : > { %4648 = vmatmul.mubr.f32.vlgmr.msra.gmra.mrb[6].mxu1 %v10993_v37  ;;  %v11136_v37 = vsub.f32 %v4839_v53, %v4876_v21  ;;  %v5021_v11 = vsub.f32 %v11138_v38, %v12104_v43  ;;  %v11198_v53 = vpack.c.bf16 %v4879_v55, %v4876_v21  ;;  %v4862_v55 = vld [vmem:[#allocation16 + $0xc8] sm:$0xff] }
 0x43a   : > { %4653 = vmatprep.mubr.f32.mxu1 %v12230_v9  ;;  %4670 = vmatpush1.msra.mxu1 %v12515_v47 }
 0x43b   : > { %4749 = vmatprep.subr.mxu1 %v12506_v30  ;;  %v12106_v50 = vand.u32 4294901760, %v11136_v37  ;;  %v12087_v30 = vand.u32 4294901760, %v11148_v26  ;;  %7782 = vmatpush3.bf16.msra.mxu0 %v11198_v53 }
 0x43d   : > { %4657 = vmatmul.mubr.f32.gmra.mrb[8].mxu1 %v11006_v34  ;;  %v5014_v63 = vsub.f32 %v11136_v37, %v12106_v50  ;;  %v5140_v62 = vsub.f32 %v11148_v26, %v12087_v30  ;;  %v4849_v50 = vld [vmem:[#allocation16 + $0x60] sm:$0xff] }
 0x43e   : > { %4733 = vmatprep.mubr.f32.mxu1 %v12230_v9 }
 0x43f   : > { %v5015_v18 = vand.u32 4294901760, %v5014_v63 }
 0x441   : > { %4735 = vmatmul.mubr.f32.vlgmr.msra.gmra.mrb[6].mxu1 %v10961_v61 }
 0x442   : > { %4740 = vmatprep.mubr.f32.mxu1 %v12230_v9  ;;  %4751 = vmatpush1.msra.mxu1 %v12507_v57 }
 0x445   : > { %4742 = vmatmul.mubr.f32.gmra.mrb[8].mxu1 %v10979_v10 }
 0x446   : > { %4814 = vmatprep.mubr.f32.mxu1 %v12230_v9 }
 0x449   : > { %4816 = vmatmul.mubr.f32.vlgmr.msra.gmra.mrb[6].mxu1 %v10961_v61  ;;  %v11122_v61 = vsub.f32 %v4855_v39, %v4924_v8  ;;  %v11189_v39 = vld [vmem:[#allocation16 + $0x38] sm:$0xff]  ;;  %v11194_v8 = vsub.f32 %v11157_v32, %v4885_v15 }
 0x44a   : > { %4821 = vmatprep.mubr.f32.mxu1 %v12230_v9  ;;  %v5112_v9 = vsub.f32 %v11100_v4, %v12093_v19  ;;  %v4891_v21 = vand.u32 4294901760, %v11189_v39 }
 0x44b   : > { %12521 = vst [vmem:[#allocation50_spill] sm:$0xff] %v11122_v61  ;;  %v12089_v6 = vand.u32 4294901760, %v11122_v61  ;;  %v12101_v12 = vand.u32 4294901760, %v11194_v8 }
 0x44c   : > { %v5113_v54 = vand.u32 4294901760, %v5112_v9  ;;  %v5022_v9 = vand.u32 4294901760, %v5021_v11 }
 0x44d   : > { %4823 = vmatmul.mubr.f32.gmra.mrb[8].mxu1 %v10979_v10  ;;  %v4858_v10 = vld [vmem:[#allocation16 + $0xa8] sm:$0xff]  ;;  %v5126_v25 = vsub.f32 %v11122_v61, %v12089_v6 }
 0x44e   : > { %v11113_v45 = vpack.c.bf16 %v5120_v59, %v5113_v54  ;;  %v4933_v14 = vand.u32 4294901760, %v4858_v10  ;;  %v4936_v54 = vand.u32 4294901760, %v4859_v51  ;;  %v5141_v59 = vand.u32 4294901760, %v5140_v62 }
 0x44f   : > { %v5127_v29 = vand.u32 4294901760, %v5126_v25  ;;  %v11191_v17 = vpack.c.bf16 %v5022_v9, %v5015_v18  ;;  %v4888_v25 = vand.u32 4294901760, %v11187_v36  ;;  %v11234_v62 = vsub.f32 %v4861_v40, %v4942_v7 }
 0x450   : > { %12518 = vst [vmem:[#allocation42_spill] sm:$0xff] %v11113_v45  ;;  %7808 = vmatprep.subr.bf16.mxu1 %v11113_v45  ;;  %v11146_v34 = vpack.c.bf16 %v4933_v14, %v4930_v58  ;;  %v11155_v57 = vsub.f32 %v4858_v10, %v4933_v14  ;;  %v11196_v20 = vsub.f32 %v4859_v51, %v4936_v54  ;;  %v12102_v10 = vand.u32 4294901760, %v11184_v35 }
 0x451   : > { %v11169_v47 = vpack.c.bf16 %v5134_v23, %v5127_v29  ;;  %7810 = vmatpush3.bf16.msra.mxu1 %v11159_v44  ;;  %12527 = vst [vmem:[#allocation34_spill] sm:$0xff] %v11191_v17  ;;  %v11201_v58 = vpack.c.bf16 %v4939_v42, %v4936_v54  ;;  %v11203_v14 = vsub.f32 %v4860_v60, %v4939_v42  ;;  %v4945_v60 = vand.u32 4294901760, %v4862_v55 }
 0x452   : > { %12524 = vst [vmem:[#allocation72_spill] sm:$0xff] %v11155_v57  ;;  %v12086_v16 = vand.u32 4294901760, %v11155_v57  ;;  %v12100_v3 = vand.u32 4294901760, %v11196_v20  ;;  %v5028_v41 = vsub.f32 %v11184_v35, %v12102_v10  ;;  %7784 = vmatprep.subr.bf16.mxu0 %v11146_v34  ;;  %v5035_v29 = vsub.f32 %v11194_v8, %v12101_v12 }
 0x453   : > { %12526 = vst [vmem:[#allocation31_spill] sm:$0xff] %v11169_v47  ;;  %7812 = vmatprep.subr.bf16.mxu1 %v11169_v47  ;;  %v12098_v48 = vand.u32 4294901760, %v11203_v14  ;;  %v11225_v32 = vsub.f32 %v11187_v36, %v4888_v25  ;;  %v11228_v51 = vsub.f32 %v11189_v39, %v4891_v21  ;;  %v11240_v36 = vpack.c.bf16 %v4945_v60, %v4942_v7  ;;  %v4864_v7 = vld [vmem:[#allocation16 + $0xd8] sm:$0xff] }
 0x454   : > { %v5147_v28 = vsub.f32 %v11155_v57, %v12086_v16  ;;  %v5154_v23 = vsub.f32 %v11196_v20, %v12100_v3  ;;  %v5029_v63 = vand.u32 4294901760, %v5028_v41  ;;  %v5036_v18 = vand.u32 4294901760, %v5035_v29  ;;  %v11245_v41 = vld [vmem:[#allocation16 + $0x48] sm:$0xff]  ;;  %v4863_v16 = vld [vmem:[#allocation16 + $0xd0] sm:$0xff] }
 0x455   : > { %7814 = vmatpush3.bf16.msra.mxu1 %v11191_v17  ;;  %v5161_v11 = vsub.f32 %v11203_v14, %v12098_v48  ;;  %v12097_v54 = vand.u32 4294901760, %v11225_v32  ;;  %v12095_v39 = vand.u32 4294901760, %v11234_v62  ;;  %v4951_v56 = vand.u32 4294901760, %v4864_v7 }
 0x456   : > { %v5148_v1 = vand.u32 4294901760, %v5147_v28  ;;  %v5155_v9 = vand.u32 4294901760, %v5154_v23  ;;  %v11238_v28 = vld [vmem:[#allocation16 + $0x40] sm:$0xff]  ;;  %v11247_v40 = vpack.c.bf16 %v5036_v18, %v5029_v63  ;;  %v11286_v19 = vpack.c.bf16 %v4891_v21, %v4888_v25  ;;  %v4866_v21 = vld [vmem:[#allocation16 + $0xe8] sm:$0xff] }
 0x457   : > { %v5162_v42 = vand.u32 4294901760, %v5161_v11  ;;  %v5042_v29 = vsub.f32 %v11225_v32, %v12097_v54  ;;  %v11255_v11 = vpack.c.bf16 %v4885_v15, %v4882_v49  ;;  %v4897_v49 = vand.u32 4294901760, %v11245_v41 }
 0x458   : > { %v11211_v52 = vpack.c.bf16 %v5148_v1, %v5141_v59  ;;  %v12096_v59 = vand.u32 4294901760, %v11228_v51  ;;  %v11243_v1 = vsub.f32 %v4862_v55, %v4945_v60  ;;  %12529 = vst [vmem:[#allocation35_spill] sm:$0xff] %v11247_v40  ;;  %v5168_v55 = vsub.f32 %v11234_v62, %v12095_v39 }
 0x459   : > { %v11257_v30 = vpack.c.bf16 %v5162_v42, %v5155_v9  ;;  %v4894_v60 = vand.u32 4294901760, %v11238_v28  ;;  %v5043_v18 = vand.u32 4294901760, %v5042_v29  ;;  %7786 = vmatpush3.bf16.msra.mxu0 %v11255_v11  ;;  %v4948_v15 = vand.u32 4294901760, %v4863_v16  ;;  %v11275_v29 = vld [vmem:[#allocation16 + $0x50] sm:$0xff] }
 0x45a   : > { %12528 = vst [vmem:[#allocation77_spill] sm:$0xff] %v11211_v52  ;;  %7816 = vmatprep.subr.bf16.mxu1 %v11211_v52  ;;  %v5049_v23 = vsub.f32 %v11228_v51, %v12096_v59  ;;  %v12094_v63 = vand.u32 4294901760, %v11243_v1  ;;  %v5169_v9 = vand.u32 4294901760, %v5168_v55  ;;  %7788 = vmatprep.subr.bf16.mxu0 %v11201_v58  ;;  %v11282_v22 = vsub.f32 %v11245_v41, %v4897_v49  ;;  %v4851_v52 = vld [vmem:[#allocation16 + $0x70] sm:$0xff] }
 0x45b   : > { %12530 = vst [vmem:[#allocation47_spill] sm:$0xff] %v11257_v30  ;;  %7818 = vmatpush3.bf16.msra.mxu1 %v11247_v40  ;;  %v11272_v6 = vsub.f32 %v11238_v28, %v4894_v60  ;;  %v11284_v55 = vsub.f32 %v4863_v16, %v4948_v15  ;;  %v11289_v59 = vpack.c.bf16 %v4951_v56, %v4948_v15  ;;  %v4900_v16 = vand.u32 4294901760, %v11275_v29 }
 0x45c   : > { %v5050_v33 = vand.u32 4294901760, %v5049_v23  ;;  %7820 = vmatprep.subr.bf16.mxu1 %v11257_v30  ;;  %v5175_v42 = vsub.f32 %v11243_v1, %v12094_v63  ;;  %v11277_v23 = vld [vmem:[#allocation16 + $0x58] sm:$0xff]  ;;  %v4865_v63 = vld [vmem:[#allocation16 + $0xe0] sm:$0xff]  ;;  %v11291_v54 = vsub.f32 %v4864_v7, %v4951_v56  ;;  %v4957_v12 = vand.u32 4294901760, %v4866_v21  ;;  %v4850_v30 = vld [vmem:[#allocation16 + $0x68] sm:$0xff] }
 0x45d   : > { %v12099_v28 = vand.u32 4294901760, %v11272_v6  ;;  %7790 = vmatpush3.bf16.msra.mxu0 %v11286_v19  ;;  %v4903_v25 = vand.u32 4294901760, %v11277_v23  ;;  %v4954_v15 = vand.u32 4294901760, %v4865_v63 }
 0x45e   : > { %v11279_v0 = vpack.c.bf16 %v5050_v33, %v5043_v18  ;;  %v5176_v39 = vand.u32 4294901760, %v5175_v42  ;;  %v12103_v33 = vand.u32 4294901760, %v11282_v22  ;;  %v12105_v18 = vand.u32 4294901760, %v11284_v55  ;;  %7792 = vmatprep.subr.bf16.mxu0 %v11240_v36 }
 0x45f   : > { %v5056_v56 = vsub.f32 %v11272_v6, %v12099_v28  ;;  %v12111_v7 = vand.u32 4294901760, %v11291_v54  ;;  %v11322_v10 = vsub.f32 %v4865_v63, %v4954_v15  ;;  %v11362_v47 = vpack.c.bf16 %v4903_v25, %v4900_v16 }
 0x460   : > { %12531 = vst [vmem:[#allocation27_spill] sm:$0xff] %v11279_v0  ;;  %7822 = vmatpush3.bf16.msra.mxu1 %v11279_v0  ;;  %v11299_v41 = vpack.c.bf16 %v5176_v39, %v5169_v9  ;;  %v5063_v42 = vsub.f32 %v11282_v22, %v12103_v33  ;;  %v5182_v48 = vsub.f32 %v11284_v55, %v12105_v18 }
 0x461   : > { %v11313_v39 = vsub.f32 %v11275_v29, %v4900_v16  ;;  %v11316_v9 = vsub.f32 %v11277_v23, %v4903_v25  ;;  %v5057_v28 = vand.u32 4294901760, %v5056_v56  ;;  %v5189_v3 = vsub.f32 %v11291_v54, %v12111_v7 }
 0x462   : > { %12532 = vst [vmem:[#allocation28_spill] sm:$0xff] %v11299_v41  ;;  %7824 = vmatprep.subr.bf16.mxu1 %v11299_v41  ;;  %v5064_v33 = vand.u32 4294901760, %v5063_v42  ;;  %v5183_v43 = vand.u32 4294901760, %v5182_v48  ;;  %v11326_v23 = vpack.c.bf16 %v4957_v12, %v4954_v15  ;;  %v12114_v41 = vand.u32 4294901760, %v11322_v10  ;;  %v4868_v15 = vld [vmem:[#allocation16 + $0xf8] sm:$0xff] }
 0x463   : > { %v12112_v18 = vand.u32 4294901760, %v11313_v39  ;;  %v12113_v29 = vand.u32 4294901760, %v11316_v9  ;;  %v5190_v0 = vand.u32 4294901760, %v5189_v3  ;;  %v11329_v56 = vsub.f32 %v4866_v21, %v4957_v12  ;;  %v4867_v3 = vld [vmem:[#allocation16 + $0xf0] sm:$0xff] }
 0x464   : > { %12533 = vst [vmem:[#allocation49_spill] sm:$0xff] %v11326_v23  ;;  %v11331_v40 = vpack.c.bf16 %v5064_v33, %v5057_v28  ;;  %v11339_v42 = vpack.c.bf16 %v4897_v49, %v4894_v60  ;;  %v5196_v12 = vsub.f32 %v11322_v10, %v12114_v41  ;;  %v4906_v33 = vand.u32 4294901760, %v4849_v50 }
 0x465   : > { %v5070_v63 = vsub.f32 %v11313_v39, %v12112_v18  ;;  %v5077_v48 = vsub.f32 %v11316_v9, %v12113_v29  ;;  %v11341_v7 = vpack.c.bf16 %v5190_v0, %v5183_v43  ;;  %v12121_v28 = vand.u32 4294901760, %v11329_v56 }
 0x466   : > { %12534 = vst [vmem:[#allocation40_spill] sm:$0xff] %v11331_v40  ;;  %7826 = vmatpush3.bf16.msra.mxu1 %v11331_v40  ;;  %7794 = vmatpush3.bf16.msra.mxu0 %v11339_v42  ;;  %v4909_v29 = vand.u32 4294901760, %v4850_v30  ;;  %v4960_v60 = vand.u32 4294901760, %v4867_v3  ;;  %v5197_v49 = vand.u32 4294901760, %v5196_v12  ;;  %v11353_v43 = vsub.f32 %v4849_v50, %v4906_v33  ;;  %v4852_v40 = vld [vmem:[#allocation16 + $0x78] sm:$0xff] }
 0x467   : > { %12535 = vst [vmem:[#allocation41_spill] sm:$0xff] %v11341_v7  ;;  %v5071_v21 = vand.u32 4294901760, %v5070_v63  ;;  %v5078_v18 = vand.u32 4294901760, %v5077_v48  ;;  %7828 = vmatprep.subr.bf16.mxu1 %v11341_v7  ;;  %v5203_v0 = vsub.f32 %v11329_v56, %v12121_v28  ;;  %7796 = vmatprep.subr.bf16.mxu0 %v11289_v59  ;;  %v4963_v41 = vand.u32 4294901760, %v4868_v15 }
 0x468   : > { %v11358_v48 = vsub.f32 %v4850_v30, %v4909_v29  ;;  %v11360_v17 = vsub.f32 %v4867_v3, %v4960_v60  ;;  %v12122_v7 = vand.u32 4294901760, %v11353_v43  ;;  %v4912_v30 = vand.u32 4294901760, %v4851_v52 }
 0x469   : > { %v11356_v63 = vpack.c.bf16 %v5078_v18, %v5071_v21  ;;  %v5204_v12 = vand.u32 4294901760, %v5203_v0  ;;  %v11365_v44 = vpack.c.bf16 %v4963_v41, %v4960_v60  ;;  %v11367_v50 = vsub.f32 %v4868_v15, %v4963_v41 }
 0x46a   : > { %v12125_v28 = vand.u32 4294901760, %v11358_v48  ;;  %v12128_v18 = vand.u32 4294901760, %v11360_v17  ;;  %7798 = vmatpush3.bf16.msra.mxu0 %v11362_v47  ;;  %v4915_v3 = vand.u32 4294901760, %v4852_v40  ;;  %v5084_v16 = vsub.f32 %v11353_v43, %v12122_v7 }
 0x46b   : > { %12536 = vst [vmem:[#allocation68_spill] sm:$0xff] %v11356_v63  ;;  %7830 = vmatpush3.bf16.msra.mxu1 %v11356_v63  ;;  %v11373_v21 = vpack.c.bf16 %v5204_v12, %v5197_v49  ;;  %v5216_v25 = vand.u32 4294901760, %v11367_v50  ;;  %7800 = vmatprep.subr.bf16.mxu0 %v11326_v23  ;;  %v11380_v41 = vpack.c.bf16 %v4909_v29, %v4906_v33 }
 0x46c   : > { %v5091_v15 = vsub.f32 %v11358_v48, %v12125_v28  ;;  %v5210_v60 = vsub.f32 %v11360_v17, %v12128_v18  ;;  %v5096_v49 = vsub.f32 %v4851_v52, %v4912_v30  ;;  %v5103_v0 = vsub.f32 %v4852_v40, %v4915_v3 }
 0x46d   : > { %12537 = vst [vmem:[#allocation63_spill] sm:$0xff] %v11373_v21  ;;  %7832 = vmatprep.subr.bf16.mxu1 %v11373_v21  ;;  %v5085_v12 = vand.u32 4294901760, %v5084_v16  ;;  %v5217_v7 = vsub.f32 %v11367_v50, %v5216_v25  ;;  %v11390_v63 = vpack.c.bf16 %v4915_v3, %v4912_v30  ;;  %v11394_v29 = vpack.c.bf16 %v11102_v27, %v11100_v4 }
 0x46e   : > { %v5092_v33 = vand.u32 4294901760, %v5091_v15  ;;  %v5211_v45 = vand.u32 4294901760, %v5210_v60  ;;  %v5097_v28 = vand.u32 4294901760, %v5096_v49  ;;  %v5104_v23 = vand.u32 4294901760, %v5103_v0  ;;  %7802 = vmatpush3.bf16.msra.mxu0 %v11380_v41 }
 0x46f   : > { %12538 = vst [vmem:[#allocation71_spill] sm:$0xff] %v11394_v29  ;;  %v5218_v18 = vand.u32 4294901760, %v5217_v7  ;;  %7804 = vmatprep.subr.bf16.mxu0 %v11365_v44  ;;  %v11400_v52 = vpack.c.bf16 %v11118_v2, %v11116_v5  ;;  %v11404_v40 = vpack.c.bf16 %v11124_v31, %v11122_v61  ;;  %v11408_v30 = vpack.c.bf16 %v11138_v38, %v11136_v37 }
 0x470   : > { %v11410_v3 = vpack.c.bf16 %v5092_v33, %v5085_v12  ;;  %v5098_v16 = vsub.f32 %v5096_v49, %v5097_v28  ;;  %v5105_v15 = vsub.f32 %v5103_v0, %v5104_v23  ;;  %v11414_v7 = vpack.c.bf16 %v11155_v57, %v11148_v26 }
 0x471   : > { %v11416_v60 = vpack.c.bf16 %v5218_v18, %v5211_v45  ;;  %v11428_v45 = vpack.c.bf16 %v11194_v8, %v11184_v35  ;;  %v11432_v18 = vpack.c.bf16 %v11203_v14, %v11196_v20  ;;  %v11436_v33 = vpack.c.bf16 %v11228_v51, %v11225_v32 }
 0x472   : > { %12539 = vst [vmem:[#allocation59_spill] sm:$0xff] %v11410_v3  ;;  %7834 = vmatpush3.bf16.msra.mxu1 %v11410_v3  ;;  %v5099_v21 = vand.u32 4294901760, %v5098_v16  ;;  %v5106_v2 = vand.u32 4294901760, %v5105_v15  ;;  %7806 = vmatpush3.bf16.msra.mxu0 %v11390_v63  ;;  %v11448_v16 = vpack.c.bf16 %v11291_v54, %v11284_v55  ;;  %v11452_v15 = vpack.c.bf16 %v11316_v9, %v11313_v39 }
 0x473   : > { %12540 = vst [vmem:[#allocation78_spill] sm:$0xff] %v11416_v60  ;;  %7836 = vmatprep.subr.bf16.mxu1 %v11416_v60  ;;  %7840 = vmatprep.subr.bf16.mxu0 %v11394_v29  ;;  %v11456_v29 = vpack.c.bf16 %v11329_v56, %v11322_v10  ;;  %v11464_v60 = vpack.c.bf16 %v11367_v50, %v11360_v17  ;;  %v12543_v57 = vand.u32 4294901760, %v11136_v37  ;;  %v12544_v26 = vand.u32 4294901760, %v11138_v38 }
 0x474   : > { %v11422_v12 = vpack.c.bf16 %v5106_v2, %v5099_v21  ;;  %v11440_v2 = vpack.c.bf16 %v11243_v1, %v11234_v62  ;;  %v11444_v21 = vpack.c.bf16 %v11282_v22, %v11272_v6  ;;  %v11466_v3 = vpack.c.bf16 %v5103_v0, %v5096_v49 }
 0x475   : > { %v11472_v31 = vpack.c.bf16 %v12544_v26, %v12543_v57  ;;  %v12545_v61 = vand.u32 4294901760, %v11184_v35  ;;  %v12546_v5 = vand.u32 4294901760, %v11194_v8  ;;  %v12547_v4 = vand.u32 4294901760, %v11196_v20 }
 0x476   : > { %12541 = vst [vmem:[#allocation76_spill] sm:$0xff] %v11422_v12  ;;  %7838 = vmatpush3.bf16.msra.mxu1 %v11422_v12  ;;  %v11460_v12 = vpack.c.bf16 %v11358_v48, %v11353_v43  ;;  %v12549_v49 = vand.u32 4294901760, %v11225_v32  ;;  %v12550_v37 = vand.u32 4294901760, %v11228_v51  ;;  %v12551_v38 = vand.u32 4294901760, %v11234_v62 }
 0x477   : > { %7872 = vmatprep.subr.bf16.mxu1 %v11098_v13  ;;  %v11478_v27 = vpack.c.bf16 %v12546_v5, %v12545_v61  ;;  %v12552_v26 = vand.u32 4294901760, %v11243_v1  ;;  %v12553_v5 = vand.u32 4294901760, %v11272_v6  ;;  %v12554_v61 = vand.u32 4294901760, %v11282_v22 }
 0x478   : > { %12542 = vst [vmem:[#allocation83_spill] sm:$0xff] %v11460_v12  ;;  %v12548_v12 = vand.u32 4294901760, %v11203_v14  ;;  %v11490_v0 = vpack.c.bf16 %v12550_v37, %v12549_v49  ;;  %v12556_v8 = vand.u32 4294901760, %v11291_v54  ;;  %v12557_v14 = vand.u32 4294901760, %v11313_v39 }
 0x479   : > { %v11496_v57 = vpack.c.bf16 %v12552_v26, %v12551_v38  ;;  %v11502_v35 = vpack.c.bf16 %v12554_v61, %v12553_v5  ;;  %v12558_v32 = vand.u32 4294901760, %v11316_v9  ;;  %v12560_v62 = vand.u32 4294901760, %v11322_v10 }
 0x47a   : > { %v11484_v50 = vpack.c.bf16 %v12548_v12, %v12547_v4  ;;  %v12555_v4 = vand.u32 4294901760, %v11284_v55  ;;  %v12561_v6 = vand.u32 4294901760, %v11329_v56  ;;  %v12563_v22 = vand.u32 4294901760, %v11353_v43  ;;  %v2319_v43 = vpop.permute.xlu0 %2318 }
 0x47b   : > { %v11514_v51 = vpack.c.bf16 %v12558_v32, %v12557_v14  ;;  %v12564_v55 = vand.u32 4294901760, %v11358_v48  ;;  %v12566_v54 = vand.u32 4294901760, %v11360_v17  ;;  %v11532_v39 = vpack.c.bf16 %v5104_v23, %v5097_v28 }
 0x47c   : > { %v11508_v20 = vpack.c.bf16 %v12556_v8, %v12555_v4  ;;  %v11520_v1 = vpack.c.bf16 %v12561_v6, %v12560_v62  ;;  %v2324_v8 = vpop.permute.xlu1 %2323 }
 0x47d   : > { %12559 = vst [vmem:[#allocation85_spill] sm:$0xff] %v11514_v51  ;;  %v11526_v12 = vpack.c.bf16 %v12564_v55, %v12563_v22  ;;  %v11530_v49 = vpack.c.bf16 %v5216_v25, %v12566_v54  ;;  %12568 = vst [vmem:[#allocation89_spill] sm:$0xff] %v11532_v39 }
 0x47e   : > { %12562 = vst [vmem:[#allocation91_spill] sm:$0xff] %v11520_v1 }
 0x47f   : > { %12565 = vst [vmem:[#allocation88_spill] sm:$0xff] %v11526_v12  ;;  %12567 = vst [vmem:[#allocation81_spill] sm:$0xff] %v11530_v49 }
 0x4d6   : > { %v3042_v9 = vpop.f32.mrb[2].mxu0 }
 0x4d7   : > { %v3044_v37 = vpop.f32.mrb[3].mxu0  ;;  %v8163_v4 = vadd.f32 %v3042_v9, %v2319_v43 }
 0x4d8   : > { %v8164_v48 = vadd.f32 %v3044_v37, %v2319_v43 }
 0x4d9   : > { %v3776_v14 = vmul.f32 0.2, %v8163_v4 }
 0x4da   : > { %v3049_v38 = vpop.f32.mrb[4].mxu0  ;;  %v3777_v17 = vmul.f32 0.2, %v8164_v48 }
 0x4db   : > { %v3051_v10 = vpop.f32.mrb[5].mxu0  ;;  %v8165_v32 = vadd.f32 %v3049_v38, %v2324_v8  ;;  %v3784_v23 = vmax.f32 %v8163_v4, %v3776_v14 }
 0x4dc   : > { %v8166_v25 = vadd.f32 %v3051_v10, %v2324_v8  ;;  %v3785_v22 = vmax.f32 %v8164_v48, %v3777_v17 }
 0x4dd   : > { %v3780_v62 = vmul.f32 0.2, %v8165_v32 }
 0x4de   : > { %v3781_v28 = vmul.f32 0.2, %v8166_v25 }
 0x4df   : > { %v3788_v12 = vmax.f32 %v8165_v32, %v3780_v62 }
 0x4e0   : > { %v3789_v37 = vmax.f32 %v8166_v25, %v3781_v28 }
 0x4eb   : > { %v3764_v26 = vpop.f32.mrb[2].mxu1 }
 0x4ec   : > { %v3766_v56 = vpop.f32.mrb[3].mxu1 }
 0x4ef   : > { %v3771_v5 = vpop.f32.mrb[4].mxu1 }
 0x4f0   : > { %v11534_v61 = vpop.f32.mrb[5].mxu1 }
 0x506   : > { %v4303_v6 = vpop.f32.mrb[6].mxu0 }
 0x507   : > { %v4829_v55 = vadd.f32 %v4303_v6, %v3784_v23  ;;  %v4305_v54 = vpop.f32.mrb[7].mxu0 }
 0x508   : > { %v4830_v39 = vadd.f32 %v4305_v54, %v3785_v22 }
 0x509   : > { %v11536_v49 = vand.u32 4294901760, %v4829_v55 }
 0x50a   : > { %v11538_v1 = vand.u32 4294901760, %v4830_v39  ;;  %v4310_v9 = vpop.f32.mrb[8].mxu0 }
 0x50b   : > { %v11541_v51 = vsub.f32 %v4829_v55, %v11536_v49  ;;  %v4833_v38 = vadd.f32 %v4310_v9, %v3788_v12  ;;  %v4312_v10 = vpop.f32.mrb[9].mxu0  ;;  %v8167_v55 = vadd.f32 %v3764_v26, %v2319_v43 }
 0x50c   : > { %v4966_v4 = vsub.f32 %v4830_v39, %v11538_v1  ;;  %v4834_v14 = vadd.f32 %v4312_v10, %v3789_v37  ;;  %5221 = vmatprep.mubr.f32.mxu1 %v11538_v1  ;;  %v8168_v37 = vadd.f32 %v3766_v56, %v2319_v43 }
 0x50d   : > { %v4973_v48 = vand.u32 4294901760, %v11541_v51  ;;  %v11546_v17 = vand.u32 4294901760, %v4833_v38  ;;  %5223 = vmatmul.mubr.f32.vlgmr.msra.gmra.mrb[10].mxu1 %v11536_v49 }
 0x50e   : > { %v11549_v32 = vand.u32 4294901760, %v4834_v14  ;;  %7874 = vmatpush3.bf16.msra.mxu1 %v11167_v46  ;;  %v4967_v25 = vand.u32 4294901760, %v4966_v4 }
 0x50f   : > { %v4974_v12 = vsub.f32 %v11541_v51, %v4973_v48  ;;  %v11556_v39 = vsub.f32 %v4833_v38, %v11546_v17  ;;  %7876 = vmatprep.subr.bf16.mxu1 %v11120_v24 }
 0x510   : > { %v11560_v62 = vsub.f32 %v4834_v14, %v11549_v32  ;;  %5228 = vmatprep.mubr.f32.mxu1 %v11549_v32  ;;  %v4968_v23 = vsub.f32 %v4966_v4, %v4967_v25  ;;  %v3778_v14 = vmul.f32 0.2, %v8167_v55 }
 0x511   : > { %5230 = vmatmul.mubr.f32.gmra.mrb[12].mxu1 %v11546_v17  ;;  %v4988_v28 = vand.u32 4294901760, %v11556_v39  ;;  %v4975_v54 = vand.u32 4294901760, %v4974_v12  ;;  %v3779_v12 = vmul.f32 0.2, %v8168_v37 }
 0x512   : > { %7878 = vmatpush3.bf16.msra.mxu1 %v11198_v53  ;;  %5481 = vmatprep.mubr.f32.mxu1 %v4967_v25  ;;  %v4969_v6 = vand.u32 4294901760, %v4968_v23  ;;  %v4982_v22 = vand.u32 4294901760, %v11560_v62  ;;  %v8169_v25 = vadd.f32 %v3771_v5, %v2324_v8  ;;  %v8170_v23 = vadd.f32 %v11534_v61, %v2324_v8 }
 0x513   : > { %7880 = vmatprep.subr.bf16.mxu1 %v11146_v34  ;;  %v4989_v9 = vsub.f32 %v11556_v39, %v4988_v28  ;;  %v3786_v43 = vmax.f32 %v8167_v55, %v3778_v14 }
 0x514   : > { %4970 = vmatprep.mubr.f32.mxu0 %v4969_v6  ;;  %v4983_v38 = vsub.f32 %v11560_v62, %v4982_v22  ;;  %v3782_v56 = vmul.f32 0.2, %v8169_v25  ;;  %v3783_v5 = vmul.f32 0.2, %v8170_v23 }
 0x515   : > { %4976 = vmatmul.mubr.f32.vlgmr.msra.gmra.mrb[10].mxu0 %v4975_v54  ;;  %v4990_v26 = vand.u32 4294901760, %v4989_v9  ;;  %v3787_v54 = vmax.f32 %v8168_v37, %v3779_v12  ;;  %v12571_v12 = vld [vmem:[#allocation36_spill] sm:$0xff] }
 0x516   : > { %7842 = vmatpush3.bf16.msra.mxu0 %v11400_v52  ;;  %7882 = vmatpush3.bf16.msra.mxu1 %v11255_v11  ;;  %v4984_v10 = vand.u32 4294901760, %v4983_v38  ;;  %v3790_v8 = vmax.f32 %v8169_v25, %v3782_v56  ;;  %v3791_v55 = vmax.f32 %v8170_v23, %v3783_v5  ;;  %v12570_v25 = vld [vmem:[#allocation83_spill] sm:$0xff]  ;;  %v12572_v23 = vand.u32 4294901760, %v12571_v12  ;;  %v12573_v56 = vld [vmem:[#allocation48_spill] sm:$0xff] }
 0x517   : > { %7844 = vmatprep.subr.bf16.mxu0 %v11404_v40  ;;  %7884 = vmatprep.subr.bf16.mxu1 %v11201_v58 }
 0x518   : > { %4985 = vmatprep.mubr.f32.mxu0 %v4984_v10 }
 0x519   : > { %4991 = vmatmul.mubr.f32.gmra.mrb[12].mxu0 %v4990_v26  ;;  %v12569_v26 = vld [vmem:[#allocation49_spill] sm:$0xff] }
 0x51a   : > { %7846 = vmatpush3.bf16.msra.mxu0 %v11408_v30  ;;  %7886 = vmatpush3.bf16.msra.mxu1 %v11286_v19 }
 0x51b   : > { %5365 = vmatprep.mubr.f32.mxu0 %v4966_v4  ;;  %7848 = vmatprep.subr.bf16.mxu0 %v11414_v7 }
 0x51c   : > { %7888 = vmatprep.subr.bf16.mxu1 %v11240_v36  ;;  %v4817_v6 = vpop.f32.mrb[6].mxu1 }
 0x51d   : > { %v11581_v9 = vadd.f32 %v4817_v6, %v3786_v43  ;;  %v4819_v38 = vpop.f32.mrb[7].mxu1  ;;  %v12574_v43 = vand.u32 4294901760, %v12573_v56  ;;  %v12577_v6 = vld [vmem:[#allocation62_spill] sm:$0xff]  ;;  %v12585_v56 = vld [vmem:[#allocation72_spill] sm:$0xff] }
 0x51e   : > { %7850 = vmatpush3.bf16.msra.mxu0 %v11428_v45  ;;  %7890 = vmatpush3.bf16.msra.mxu1 %v11339_v42  ;;  %v11585_v61 = vadd.f32 %v4819_v38, %v3787_v54  ;;  %v12578_v54 = vand.u32 4294901760, %v12577_v6  ;;  %v12590_v6 = vld [vmem:[#allocation88_spill] sm:$0xff] }
 0x51f   : > { %7852 = vmatprep.subr.bf16.mxu0 %v11432_v18  ;;  %7892 = vmatprep.subr.bf16.mxu1 %v11289_v59  ;;  %v11614_v5 = vpack.c.bf16 %v12574_v43, %v12572_v23  ;;  %v12586_v43 = vand.u32 4294901760, %v12585_v56  ;;  %v12597_v56 = vld [vmem:[#allocation35_spill] sm:$0xff] }
 0x520   : > { %v4824_v4 = vpop.f32.mrb[8].mxu1 }
 0x521   : > { %v11589_v10 = vadd.f32 %v4824_v4, %v3790_v8  ;;  %v4826_v14 = vpop.f32.mrb[9].mxu1  ;;  %v12579_v8 = vld [vmem:[#allocation50_spill] sm:$0xff] }
 0x522   : > { %7854 = vmatpush3.bf16.msra.mxu0 %v11436_v33  ;;  %7894 = vmatpush3.bf16.msra.mxu1 %v11362_v47  ;;  %v11593_v37 = vadd.f32 %v4826_v14, %v3791_v55  ;;  %v12580_v4 = vand.u32 4294901760, %v12579_v8  ;;  %v12581_v55 = vld [vmem:[#allocation70_spill] sm:$0xff]  ;;  %v12592_v8 = vld [vmem:[#allocation81_spill] sm:$0xff] }
 0x523   : > { %7856 = vmatprep.subr.bf16.mxu0 %v11440_v2  ;;  %7896 = vmatprep.subr.bf16.mxu1 %v12569_v26  ;;  %v12582_v14 = vand.u32 4294901760, %v12581_v55 }
 0x525   : > { %v11633_v12 = vpack.c.bf16 %v12582_v14, %v12580_v4  ;;  %v12593_v4 = vld [vmem:[#allocation31_spill] sm:$0xff]  ;;  %v12595_v14 = vld [vmem:[#allocation34_spill] sm:$0xff] }
 0x526   : > { %7858 = vmatpush3.bf16.msra.mxu0 %v11444_v21  ;;  %7898 = vmatpush3.bf16.msra.mxu1 %v11380_v41 }
 0x527   : > { %7860 = vmatprep.subr.bf16.mxu0 %v11448_v16  ;;  %7900 = vmatprep.subr.bf16.mxu1 %v11365_v44 }
 0x52a   : > { %7862 = vmatpush3.bf16.msra.mxu0 %v11452_v15  ;;  %7902 = vmatpush3.bf16.msra.mxu1 %v11390_v63 }
 0x52b   : > { %7864 = vmatprep.subr.bf16.mxu0 %v11456_v29  ;;  %7936 = vmatprep.subr.bf16.mxu1 %v11098_v13 }
 0x52d   : > { %5485 = vmatmul.mubr.f32.vlgmr.msra.gmra.mrb[14].mxu1 %v4973_v48  ;;  %v12575_v48 = vld [vmem:[#allocation39_spill] sm:$0xff] }
 0x52e   : > { %7866 = vmatpush3.bf16.msra.mxu0 %v12570_v25  ;;  %5492 = vmatprep.mubr.f32.mxu1 %v4982_v22  ;;  %v12576_v22 = vand.u32 4294901760, %v12575_v48 }
 0x52f   : > { %7938 = vmatpush3.bf16.msra.mxu1 %v11167_v46  ;;  %7868 = vmatprep.subr.bf16.mxu0 %v11464_v60 }
 0x530   : > { %7940 = vmatprep.subr.bf16.mxu1 %v11120_v24  ;;  %v11625_v38 = vpack.c.bf16 %v12578_v54, %v12576_v22  ;;  %v12589_v22 = vld [vmem:[#allocation42_spill] sm:$0xff] }
 0x531   : > { %5496 = vmatmul.mubr.f32.gmra.mrb[16].mxu1 %v4988_v28  ;;  %v12583_v28 = vld [vmem:[#allocation55_spill] sm:$0xff]  ;;  %v12591_v54 = vld [vmem:[#allocation30_spill] sm:$0xff] }
 0x532   : > { %7870 = vmatpush3.bf16.msra.mxu0 %v11466_v3  ;;  %5773 = vmatprep.mubr.f32.mxu1 %v11538_v1  ;;  %v12584_v23 = vand.u32 4294901760, %v12583_v28  ;;  %v12596_v28 = vld [vmem:[#allocation77_spill] sm:$0xff] }
 0x533   : > { %7942 = vmatpush3.bf16.msra.mxu1 %v11198_v53  ;;  %7904 = vmatprep.subr.bf16.mxu0 %v11614_v5 }
 0x534   : > { %7944 = vmatprep.subr.bf16.mxu1 %v11146_v34  ;;  %v11645_v48 = vpack.c.bf16 %v12586_v43, %v12584_v23  ;;  %v12598_v43 = vld [vmem:[#allocation47_spill] sm:$0xff] }
 0x535   : > { %5368 = vmatmul.mubr.f32.vlgmr.msra.gmra.mrb[14].mxu0 %v11541_v51  ;;  %v11666_v51 = vand.u32 4294901760, %v11585_v61 }
 0x536   : > { %5374 = vmatprep.mubr.f32.mxu0 %v11560_v62  ;;  %7906 = vmatpush3.bf16.msra.mxu0 %v11625_v38 }
 0x537   : > { %7946 = vmatpush3.bf16.msra.mxu1 %v11255_v11  ;;  %7908 = vmatprep.subr.bf16.mxu0 %v11633_v12  ;;  %v11674_v62 = vsub.f32 %v11585_v61, %v11666_v51  ;;  %v12594_v61 = vld [vmem:[#allocation89_spill] sm:$0xff] }
 0x538   : > { %7948 = vmatprep.subr.bf16.mxu1 %v11201_v58 }
 0x539   : > { %5377 = vmatmul.mubr.f32.gmra.mrb[16].mxu0 %v11556_v39  ;;  %v12588_v39 = vld [vmem:[#allocation91_spill] sm:$0xff]  ;;  %v5885_v55 = vand.u32 4294901760, %v11674_v62 }
 0x53a   : > { %7910 = vmatpush3.bf16.msra.mxu0 %v11472_v31  ;;  %5662 = vmatprep.mubr.f32.mxu0 %v11538_v1  ;;  %v12587_v1 = vld [vmem:[#allocation85_spill] sm:$0xff] }
 0x53b   : > { %7950 = vmatpush3.bf16.msra.mxu1 %v11286_v19  ;;  %7912 = vmatprep.subr.bf16.mxu0 %v11645_v48  ;;  %v5886_v23 = vsub.f32 %v11674_v62, %v5885_v55 }
 0x53c   : > { %7952 = vmatprep.subr.bf16.mxu1 %v11240_v36 }
 0x53e   : > { %7914 = vmatpush3.bf16.msra.mxu0 %v11478_v27 }
 0x53f   : > { %7954 = vmatpush3.bf16.msra.mxu1 %v11339_v42  ;;  %7916 = vmatprep.subr.bf16.mxu0 %v11484_v50 }
 0x540   : > { %7956 = vmatprep.subr.bf16.mxu1 %v11289_v59 }
 0x542   : > { %7918 = vmatpush3.bf16.msra.mxu0 %v11490_v0 }
 0x543   : > { %7958 = vmatpush3.bf16.msra.mxu1 %v11362_v47  ;;  %7920 = vmatprep.subr.bf16.mxu0 %v11496_v57 }
 0x544   : > { %7960 = vmatprep.subr.bf16.mxu1 %v12569_v26 }
 0x546   : > { %7922 = vmatpush3.bf16.msra.mxu0 %v11502_v35 }
 0x547   : > { %7962 = vmatpush3.bf16.msra.mxu1 %v11380_v41  ;;  %7924 = vmatprep.subr.bf16.mxu0 %v11508_v20 }
 0x548   : > { %7964 = vmatprep.subr.bf16.mxu1 %v11365_v44 }
 0x54a   : > { %7926 = vmatpush3.bf16.msra.mxu0 %v12587_v1 }
 0x54b   : > { %7966 = vmatpush3.bf16.msra.mxu1 %v11390_v63  ;;  %7928 = vmatprep.subr.bf16.mxu0 %v12588_v39 }
 0x54c   : > { %8000 = vmatprep.subr.bf16.mxu1 %v12589_v22  ;;  %v5887_v22 = vand.u32 4294901760, %v5886_v23  ;;  %v12604_v23 = vld [vmem:[#allocation63_spill] sm:$0xff] }
 0x54e   : > { %5775 = vmatmul.mubr.f32.vlgmr.msra.gmra.mrb[18].mxu1 %v11536_v49  ;;  %7930 = vmatpush3.bf16.msra.mxu0 %v12590_v6 }
 0x54f   : > { %5780 = vmatprep.mubr.f32.mxu1 %v11549_v32  ;;  %8002 = vmatpush3.bf16.msra.mxu1 %v12591_v54  ;;  %v12599_v54 = vld [vmem:[#allocation27_spill] sm:$0xff] }
 0x550   : > { %7932 = vmatprep.subr.bf16.mxu0 %v12592_v8  ;;  %8004 = vmatprep.subr.bf16.mxu1 %v12593_v4  ;;  %v12602_v4 = vld [vmem:[#allocation41_spill] sm:$0xff] }
 0x552   : > { %5782 = vmatmul.mubr.f32.gmra.mrb[20].mxu1 %v11546_v17  ;;  %7934 = vmatpush3.bf16.msra.mxu0 %v12594_v61 }
 0x553   : > { %8006 = vmatpush3.bf16.msra.mxu1 %v12595_v14  ;;  %6139 = vmatprep.mubr.f32.mxu1 %v11666_v51  ;;  %v12603_v14 = vld [vmem:[#allocation68_spill] sm:$0xff] }
 0x554   : > { %7968 = vmatprep.subr.bf16.mxu0 %v11098_v13  ;;  %8008 = vmatprep.subr.bf16.mxu1 %v12596_v28  ;;  %v11713_v28 = vand.u32 4294901760, %v11593_v37 }
 0x555   : > { %5664 = vmatmul.mubr.f32.vlgmr.msra.gmra.mrb[18].mxu0 %v11536_v49  ;;  %v12600_v49 = vld [vmem:[#allocation28_spill] sm:$0xff] }
 0x556   : > { %5669 = vmatprep.mubr.f32.mxu0 %v11549_v32  ;;  %7970 = vmatpush3.bf16.msra.mxu0 %v11167_v46  ;;  %v12601_v32 = vld [vmem:[#allocation40_spill] sm:$0xff] }
 0x557   : > { %8010 = vmatpush3.bf16.msra.mxu1 %v12597_v56  ;;  %7972 = vmatprep.subr.bf16.mxu0 %v11120_v24 }
 0x558   : > { %8012 = vmatprep.subr.bf16.mxu1 %v12598_v43  ;;  %v11722_v43 = vand.u32 4294901760, %v11589_v10 }
 0x559   : > { %5671 = vmatmul.mubr.f32.gmra.mrb[20].mxu0 %v11546_v17  ;;  %v11708_v17 = vand.u32 4294901760, %v11581_v9 }
 0x55a   : > { %7974 = vmatpush3.bf16.msra.mxu0 %v11198_v53  ;;  %5888 = vmatprep.mubr.f32.mxu0 %v5887_v22  ;;  %12605 = vst [vmem:[#allocation51_spill] sm:$0xff] %v11722_v43  ;;  %v12606_v22 = vld [vmem:[#allocation59_spill] sm:$0xff] }
 0x55b   : > { %8014 = vmatpush3.bf16.msra.mxu1 %v12599_v54  ;;  %7976 = vmatprep.subr.bf16.mxu0 %v11146_v34  ;;  %v11719_v56 = vsub.f32 %v11581_v9, %v11708_v17  ;;  %v11728_v54 = vsub.f32 %v11593_v37, %v11713_v28  ;;  %v11735_v9 = vsub.f32 %v11589_v10, %v11722_v43 }
 0x55c   : > { %8016 = vmatprep.subr.bf16.mxu1 %v12600_v49  ;;  %v12607_v49 = vld [vmem:[#allocation78_spill] sm:$0xff] }
 0x55d   : > { %v5906_v10 = vand.u32 4294901760, %v11735_v9 }
 0x55e   : > { %7978 = vmatpush3.bf16.msra.mxu0 %v11255_v11 }
 0x55f   : > { %8018 = vmatpush3.bf16.msra.mxu1 %v12601_v32  ;;  %7980 = vmatprep.subr.bf16.mxu0 %v11201_v58  ;;  %v5891_v32 = vand.u32 4294901760, %v11719_v56 }
 0x560   : > { %8020 = vmatprep.subr.bf16.mxu1 %v12602_v4  ;;  %v12608_v4 = vld [vmem:[#allocation76_spill] sm:$0xff] }
 0x561   : > { %v5892_v37 = vsub.f32 %v11719_v56, %v5891_v32 }
 0x562   : > { %7982 = vmatpush3.bf16.msra.mxu0 %v11286_v19 }
 0x563   : > { %8022 = vmatpush3.bf16.msra.mxu1 %v12603_v14  ;;  %7984 = vmatprep.subr.bf16.mxu0 %v11240_v36  ;;  %v5900_v14 = vand.u32 4294901760, %v11728_v54 }
 0x564   : > { %8024 = vmatprep.subr.bf16.mxu1 %v12604_v23 }
 0x565   : > { %v5901_v23 = vsub.f32 %v11728_v54, %v5900_v14 }
 0x566   : > { %7986 = vmatpush3.bf16.msra.mxu0 %v11339_v42 }
 0x567   : > { %8026 = vmatpush3.bf16.msra.mxu1 %v12606_v22  ;;  %7988 = vmatprep.subr.bf16.mxu0 %v11289_v59  ;;  %v5893_v22 = vand.u32 4294901760, %v5892_v37  ;;  %v5902_v61 = vand.u32 4294901760, %v5901_v23 }
 0x568   : > { %8028 = vmatprep.subr.bf16.mxu1 %v12607_v49  ;;  %v5907_v49 = vsub.f32 %v11735_v9, %v5906_v10 }
 0x56a   : > { %7990 = vmatpush3.bf16.msra.mxu0 %v11362_v47 }
 0x56b   : > { %8030 = vmatpush3.bf16.msra.mxu1 %v12608_v4  ;;  %7992 = vmatprep.subr.bf16.mxu0 %v12569_v26  ;;  %v12609_v4 = vld [vmem:[#allocation71_spill] sm:$0xff] }
 0x56c   : > { %8064 = vmatprep.subr.bf16.mxu1 %v11098_v13 }
 0x56e   : > { %6141 = vmatmul.mubr.f32.vlgmr.msra.gmra.mrb[22].mxu1 %v11708_v17  ;;  %7994 = vmatpush3.bf16.msra.mxu0 %v11380_v41 }
 0x56f   : > { %6146 = vmatprep.mubr.f32.mxu1 %v11713_v28  ;;  %8066 = vmatpush3.bf16.msra.mxu1 %v11167_v46 }
 0x570   : > { %7996 = vmatprep.subr.bf16.mxu0 %v11365_v44  ;;  %8068 = vmatprep.subr.bf16.mxu1 %v11120_v24 }
 0x572   : > { %6148 = vmatmul.mubr.f32.gmra.mrb[24].mxu1 %v11722_v43  ;;  %7998 = vmatpush3.bf16.msra.mxu0 %v11390_v63  ;;  %v5908_v43 = vand.u32 4294901760, %v5907_v49 }
 0x573   : > { %8070 = vmatpush3.bf16.msra.mxu1 %v11198_v53  ;;  %6399 = vmatprep.mubr.f32.mxu1 %v5885_v55 }
 0x574   : > { %8032 = vmatprep.subr.bf16.mxu0 %v12609_v4  ;;  %8072 = vmatprep.subr.bf16.mxu1 %v11146_v34 }
 0x575   : > { %5894 = vmatmul.mubr.f32.vlgmr.msra.gmra.mrb[22].mxu0 %v5893_v22 }
 0x576   : > { %5903 = vmatprep.mubr.f32.mxu0 %v5902_v61  ;;  %8034 = vmatpush3.bf16.msra.mxu0 %v11400_v52 }
 0x577   : > { %8074 = vmatpush3.bf16.msra.mxu1 %v11255_v11  ;;  %8036 = vmatprep.subr.bf16.mxu0 %v11404_v40 }
 0x578   : > { %8076 = vmatprep.subr.bf16.mxu1 %v11201_v58 }
 0x579   : > { %5909 = vmatmul.mubr.f32.gmra.mrb[24].mxu0 %v5908_v43 }
 0x57a   : > { %8038 = vmatpush3.bf16.msra.mxu0 %v11408_v30  ;;  %6283 = vmatprep.mubr.f32.mxu0 %v11674_v62 }
 0x57b   : > { %8078 = vmatpush3.bf16.msra.mxu1 %v11286_v19  ;;  %8040 = vmatprep.subr.bf16.mxu0 %v11414_v7 }
 0x57c   : > { %8080 = vmatprep.subr.bf16.mxu1 %v11240_v36 }
 0x57e   : > { %8042 = vmatpush3.bf16.msra.mxu0 %v11428_v45 }
 0x57f   : > { %8082 = vmatpush3.bf16.msra.mxu1 %v11339_v42  ;;  %8044 = vmatprep.subr.bf16.mxu0 %v11432_v18 }
 0x580   : > { %8084 = vmatprep.subr.bf16.mxu1 %v11289_v59 }
 0x582   : > { %8046 = vmatpush3.bf16.msra.mxu0 %v11436_v33 }
 0x583   : > { %8086 = vmatpush3.bf16.msra.mxu1 %v11362_v47  ;;  %8048 = vmatprep.subr.bf16.mxu0 %v11440_v2 }
 0x584   : > { %8088 = vmatprep.subr.bf16.mxu1 %v12569_v26 }
 0x586   : > { %8050 = vmatpush3.bf16.msra.mxu0 %v11444_v21 }
 0x587   : > { %8090 = vmatpush3.bf16.msra.mxu1 %v11380_v41  ;;  %8052 = vmatprep.subr.bf16.mxu0 %v11448_v16 }
 0x588   : > { %8092 = vmatprep.subr.bf16.mxu1 %v11365_v44 }
 0x58a   : > { %8054 = vmatpush3.bf16.msra.mxu0 %v11452_v15 }
 0x58b   : > { %8094 = vmatpush3.bf16.msra.mxu1 %v11390_v63  ;;  %8056 = vmatprep.subr.bf16.mxu0 %v11456_v29 }
 0x58c   : > { %8128 = vmatprep.subr.bf16.mxu1 %v11098_v13  ;;  %v12610_v13 = vld [vmem:[#allocation51_spill] sm:$0xff] }
 0x58e   : > { %6403 = vmatmul.mubr.f32.vlgmr.msra.gmra.mrb[26].mxu1 %v5891_v32  ;;  %8058 = vmatpush3.bf16.msra.mxu0 %v12570_v25 }
 0x58f   : > { %6410 = vmatprep.mubr.f32.mxu1 %v5900_v14  ;;  %8130 = vmatpush3.bf16.msra.mxu1 %v11167_v46 }
 0x590   : > { %8060 = vmatprep.subr.bf16.mxu0 %v11464_v60  ;;  %8132 = vmatprep.subr.bf16.mxu1 %v11120_v24 }
 0x592   : > { %6414 = vmatmul.mubr.f32.gmra.mrb[28].mxu1 %v5906_v10  ;;  %8062 = vmatpush3.bf16.msra.mxu0 %v11466_v3 }
 0x593   : > { %8134 = vmatpush3.bf16.msra.mxu1 %v11198_v53  ;;  %6691 = vmatprep.mubr.f32.mxu1 %v11666_v51 }
 0x594   : > { %8096 = vmatprep.subr.bf16.mxu0 %v11614_v5  ;;  %8136 = vmatprep.subr.bf16.mxu1 %v11146_v34 }
 0x595   : > { %6286 = vmatmul.mubr.f32.vlgmr.msra.gmra.mrb[26].mxu0 %v11719_v56 }
 0x596   : > { %6292 = vmatprep.mubr.f32.mxu0 %v11728_v54  ;;  %8098 = vmatpush3.bf16.msra.mxu0 %v11625_v38 }
 0x597   : > { %8138 = vmatpush3.bf16.msra.mxu1 %v11255_v11  ;;  %8100 = vmatprep.subr.bf16.mxu0 %v11633_v12 }
 0x598   : > { %8140 = vmatprep.subr.bf16.mxu1 %v11201_v58 }
 0x599   : > { %6295 = vmatmul.mubr.f32.gmra.mrb[28].mxu0 %v11735_v9 }
 0x59a   : > { %8102 = vmatpush3.bf16.msra.mxu0 %v11472_v31  ;;  %6580 = vmatprep.mubr.f32.mxu0 %v11666_v51 }
 0x59b   : > { %8142 = vmatpush3.bf16.msra.mxu1 %v11286_v19  ;;  %8104 = vmatprep.subr.bf16.mxu0 %v11645_v48 }
 0x59c   : > { %8144 = vmatprep.subr.bf16.mxu1 %v11240_v36 }
 0x59e   : > { %8106 = vmatpush3.bf16.msra.mxu0 %v11478_v27  ;;  %v12611_v27 = vld [vmem:[#allocation89_spill] sm:$0xff] }
 0x59f   : > { %8146 = vmatpush3.bf16.msra.mxu1 %v11339_v42  ;;  %8108 = vmatprep.subr.bf16.mxu0 %v11484_v50 }
 0x5a0   : > { %8148 = vmatprep.subr.bf16.mxu1 %v11289_v59 }
 0x5a2   : > { %8110 = vmatpush3.bf16.msra.mxu0 %v11490_v0 }
 0x5a3   : > { %8150 = vmatpush3.bf16.msra.mxu1 %v11362_v47  ;;  %8112 = vmatprep.subr.bf16.mxu0 %v11496_v57 }
 0x5a4   : > { %8152 = vmatprep.subr.bf16.mxu1 %v12569_v26 }
 0x5a6   : > { %8114 = vmatpush3.bf16.msra.mxu0 %v11502_v35 }
 0x5a7   : > { %8154 = vmatpush3.bf16.msra.mxu1 %v11380_v41  ;;  %8116 = vmatprep.subr.bf16.mxu0 %v11508_v20 }
 0x5a8   : > { %8156 = vmatprep.subr.bf16.mxu1 %v11365_v44 }
 0x5aa   : > { %8118 = vmatpush3.bf16.msra.mxu0 %v12587_v1 }
 0x5ab   : > { %8158 = vmatpush3.bf16.msra.mxu1 %v11390_v63  ;;  %8120 = vmatprep.subr.bf16.mxu0 %v12588_v39 }
 0x5ae   : > { %6693 = vmatmul.mubr.f32.vlgmr.msra.gmra.mrb[30].mxu1 %v11708_v17  ;;  %8122 = vmatpush3.bf16.msra.mxu0 %v12590_v6 }
 0x5af   : > { %6698 = vmatprep.mubr.f32.mxu1 %v11713_v28  ;;  %8124 = vmatprep.subr.bf16.mxu0 %v12592_v8 }
 0x5b2   : > { %6700 = vmatmul.mubr.f32.gmra.mrb[32].mxu1 %v12610_v13  ;;  %8126 = vmatpush3.bf16.msra.mxu0 %v12611_v27 }
 0x5b5   : > { %6582 = vmatmul.mubr.f32.vlgmr.msra.gmra.mrb[30].mxu0 %v11708_v17 }
 0x5b6   : > { %6587 = vmatprep.mubr.f32.mxu0 %v11713_v28 }
 0x5b9   : > { %6589 = vmatmul.mubr.f32.gmra.mrb[32].mxu0 %v12610_v13 }
 0x5e0   : > { %v7005_v19 = vpop.f32.mrb[10].mxu1 }
 0x5e1   : > { %v7006_v24 = vpop.f32.mrb[11].mxu1 }
 0x5e2   : > { %v7007_v31 = vadd.f32 %v7006_v24, %v7005_v19 }
 0x5e4   : > { %v7008_v34 = vpop.f32.mrb[12].mxu1 }
 0x5e5   : > { %v7009_v44 = vpop.f32.mrb[13].mxu1 }
 0x5e6   : > { %v7010_v46 = vadd.f32 %v7009_v44, %v7008_v34 }
 0x5e8   : > { %v6967_v47 = vpop.f32.mrb[10].mxu0 }
 0x5e9   : > { %v6968_v53 = vpop.f32.mrb[11].mxu0 }
 0x5ea   : > { %v6969_v58 = vadd.f32 %v6968_v53, %v6967_v47 }
 0x5ec   : > { %v5225_v59 = vadd.f32 %v7007_v31, %v6969_v58  ;;  %v6970_v36 = vpop.f32.mrb[12].mxu0 }
 0x5ed   : > { %v6971_v11 = vpop.f32.mrb[13].mxu0 }
 0x5ee   : > { %v6972_v42 = vadd.f32 %v6971_v11, %v6970_v36 }
 0x5f0   : > { %v5232_v63 = vadd.f32 %v7010_v46, %v6972_v42 }
 0x600   : > { %v7081_v41 = vpop.f32.mrb[14].mxu1 }
 0x601   : > { %v7082_v29 = vpop.f32.mrb[15].mxu1 }
 0x602   : > { %v7083_v52 = vadd.f32 %v7082_v29, %v7081_v41 }
 0x604   : > { %v7084_v40 = vpop.f32.mrb[16].mxu1 }
 0x605   : > { %v7085_v30 = vpop.f32.mrb[17].mxu1 }
 0x606   : > { %v7086_v3 = vadd.f32 %v7085_v30, %v7084_v40 }
 0x608   : > { %v7043_v7 = vpop.f32.mrb[14].mxu0 }
 0x609   : > { %v7044_v60 = vpop.f32.mrb[15].mxu0 }
 0x60a   : > { %v7045_v45 = vadd.f32 %v7044_v60, %v7043_v7 }
 0x60c   : > { %v5370_v18 = vadd.f32 %v7045_v45, %v5225_v59  ;;  %v7046_v33 = vpop.f32.mrb[16].mxu0 }
 0x60d   : > { %v7047_v2 = vpop.f32.mrb[17].mxu0 }
 0x60e   : > { %v7048_v21 = vadd.f32 %v7047_v2, %v7046_v33  ;;  %v5487_v16 = vadd.f32 %v7083_v52, %v5370_v18 }
 0x610   : > { %v5379_v15 = vadd.f32 %v7048_v21, %v5232_v63 }
 0x612   : > { %v5498_v50 = vadd.f32 %v7086_v3, %v5379_v15  ;;  %v6721_v15 = vpop.permute.xlu0 %6720 }
 0x621   : > { %v7157_v0 = vpop.f32.mrb[18].mxu1 }
 0x622   : > { %v7158_v57 = vpop.f32.mrb[19].mxu1 }
 0x623   : > { %v7159_v35 = vadd.f32 %v7158_v57, %v7157_v0 }
 0x625   : > { %v7160_v20 = vpop.f32.mrb[20].mxu1 }
 0x626   : > { %v7161_v26 = vpop.f32.mrb[21].mxu1 }
 0x627   : > { %v7162_v25 = vadd.f32 %v7161_v26, %v7160_v20 }
 0x628   : > { %v7119_v5 = vpop.f32.mrb[18].mxu0 }
 0x629   : > { %v7120_v38 = vpop.f32.mrb[19].mxu0 }
 0x62a   : > { %v7121_v12 = vadd.f32 %v7120_v38, %v7119_v5 }
 0x62c   : > { %v5666_v48 = vadd.f32 %v7121_v12, %v5487_v16  ;;  %v7122_v51 = vpop.f32.mrb[20].mxu0 }
 0x62d   : > { %v7123_v1 = vpop.f32.mrb[21].mxu0 }
 0x62e   : > { %v5777_v39 = vadd.f32 %v7159_v35, %v5666_v48  ;;  %v7124_v62 = vadd.f32 %v7123_v1, %v7122_v51 }
 0x630   : > { %v5673_v6 = vadd.f32 %v7124_v62, %v5498_v50  ;;  %v6726_v50 = vpop.permute.xlu1 %6725 }
 0x632   : > { %v11826_v8 = vadd.f32 %v7162_v25, %v5673_v6 }
 0x641   : > { %v7233_v55 = vpop.f32.mrb[22].mxu1 }
 0x642   : > { %v7234_v61 = vpop.f32.mrb[23].mxu1 }
 0x643   : > { %v7235_v17 = vadd.f32 %v7234_v61, %v7233_v55 }
 0x645   : > { %v7236_v28 = vpop.f32.mrb[24].mxu1 }
 0x646   : > { %v7237_v56 = vpop.f32.mrb[25].mxu1 }
 0x647   : > { %v7238_v43 = vadd.f32 %v7237_v56, %v7236_v28 }
 0x648   : > { %v7195_v54 = vpop.f32.mrb[22].mxu0 }
 0x649   : > { %v7196_v32 = vpop.f32.mrb[23].mxu0 }
 0x64a   : > { %v7197_v9 = vadd.f32 %v7196_v32, %v7195_v54 }
 0x64c   : > { %v6143_v14 = vadd.f32 %v7235_v17, %v7197_v9  ;;  %v7198_v37 = vpop.f32.mrb[24].mxu0 }
 0x64d   : > { %v7199_v10 = vpop.f32.mrb[25].mxu0 }
 0x64e   : > { %v7200_v23 = vadd.f32 %v7199_v10, %v7198_v37 }
 0x650   : > { %v6150_v22 = vadd.f32 %v7238_v43, %v7200_v23 }
 0x661   : > { %v7309_v49 = vpop.f32.mrb[26].mxu1 }
 0x662   : > { %v7310_v4 = vpop.f32.mrb[27].mxu1 }
 0x663   : > { %v7311_v13 = vadd.f32 %v7310_v4, %v7309_v49 }
 0x665   : > { %v7312_v27 = vpop.f32.mrb[28].mxu1 }
 0x666   : > { %v7313_v19 = vpop.f32.mrb[29].mxu1 }
 0x667   : > { %v7314_v24 = vadd.f32 %v7313_v19, %v7312_v27 }
 0x668   : > { %v7271_v31 = vpop.f32.mrb[26].mxu0 }
 0x669   : > { %v7272_v34 = vpop.f32.mrb[27].mxu0 }
 0x66a   : > { %v7273_v44 = vadd.f32 %v7272_v34, %v7271_v31 }
 0x66c   : > { %v6288_v46 = vadd.f32 %v7273_v44, %v6143_v14  ;;  %v7274_v47 = vpop.f32.mrb[28].mxu0 }
 0x66d   : > { %v7275_v53 = vpop.f32.mrb[29].mxu0 }
 0x66e   : > { %v7276_v58 = vadd.f32 %v7275_v53, %v7274_v47  ;;  %v6405_v59 = vadd.f32 %v7311_v13, %v6288_v46 }
 0x670   : > { %v6297_v36 = vadd.f32 %v7276_v58, %v6150_v22 }
 0x672   : > { %v6416_v11 = vadd.f32 %v7314_v24, %v6297_v36 }
 0x681   : > { %v7385_v42 = vpop.f32.mrb[30].mxu1 }
 0x682   : > { %v7386_v63 = vpop.f32.mrb[31].mxu1 }
 0x683   : > { %v7387_v41 = vadd.f32 %v7386_v63, %v7385_v42 }
 0x685   : > { %v7388_v29 = vpop.f32.mrb[32].mxu1 }
 0x686   : > { %v7389_v52 = vpop.f32.mrb[33].mxu1 }
 0x687   : > { %v7390_v40 = vadd.f32 %v7389_v52, %v7388_v29 }
 0x688   : > { %v7347_v30 = vpop.f32.mrb[30].mxu0 }
 0x689   : > { %v7348_v3 = vpop.f32.mrb[31].mxu0 }
 0x68a   : > { %v7349_v7 = vadd.f32 %v7348_v3, %v7347_v30 }
 0x68c   : > { %v6584_v60 = vadd.f32 %v7349_v7, %v6405_v59  ;;  %v7350_v45 = vpop.f32.mrb[32].mxu0 }
 0x68d   : > { %v7351_v18 = vpop.f32.mrb[33].mxu0 }
 0x68e   : > { %v7352_v33 = vadd.f32 %v7351_v18, %v7350_v45  ;;  %v6695_v2 = vadd.f32 %v7387_v41, %v6584_v60 }
 0x690   : > { %v6591_v21 = vadd.f32 %v7352_v33, %v6416_v11  ;;  %6707 = vrot.lane.b32.xlu0 %v6695_v2, %s8774_s20 }
 0x692   : > { %v6702_v16 = vadd.f32 %v7390_v40, %v6591_v21 }
 0x694   : > { %6709 = vrot.lane.b32.xlu1 %v6702_v16, %s8774_s20 }
 0x702   : > { %v6708_v0 = vpop.permute.xlu0 %6707 }
 0x703   : > { %v6714_v57 = vsel %vm6713_vm11, %v5777_v39, %v6708_v0 }
 0x704   : > { %v6728_v35 = vadd.f32 %v6721_v15, %v6714_v57 }
 0x706   : > { %6730 = vst [vmem:[%s458_s28] sm:$0xff] %v6728_v35  ;;  %v6710_v20 = vpop.permute.xlu1 %6709 }
 0x707   : > { %v6715_v26 = vsel %vm6713_vm11, %v11826_v8, %v6710_v20 }
 0x708   : > { %v6729_v25 = vadd.f32 %v6726_v50, %v6715_v26 }
 0x70a   : > { %6731 = vst [vmem:[%s458_s28 + $0x8] sm:$0xff] %v6729_v25 }
 0x70b   : > { %8682 = shalt.err (!%p8679_p0)
}
 0x70c   : > { %s8683_s14 = scalar_lea.hbm %s11836_s23, 256  ;;  %s8687_s28 = scalar_lea.hbm %s12612_s29, 512 }
 0x70d   : > { %p8684_p2 = scmp.ne.s32.totalorder %s11836_s23, %s8683_s14  ;;  %p8688_p11 = scmp.lt.u32.totalorder %s11836_s23, %s12612_s29 }
 0x70e   : > { %p8689_p6 = scmp.lt.u32.totalorder %s8687_s28, %s8683_s14  ;;  %p8691_p5 = scmp.lt.u32.totalorder %s8683_s14, %s11836_s23 }
 0x70f   : > { %p8685_p8 = pnand %p8684_p2, %p12613_p7 }
 0x710   : > { %p8690_p12 = por %p8689_p6, %p8688_p11 }
 0x711   : > { %p8686_p10 = pneg %p8685_p8 }
 0x712   : > { %p8692_p4 = por %p8691_p5, %p8690_p12 }
 0x714   : > { %p8693_p1 = pnand %p8692_p4, %p8686_p10 }
 0x716   : > { %8696 = shalt.err (!%p8693_p1)
}
 0x717   : > { %s8776_s16 = smov 128   ;;  %s8777_s26 = smov 8  }
 0x718   : > { %8305 = dma.vmem_to_hbm [thread:$0]  (%p12613_p7), %s11830_s3, 256, %s11836_s23, %s6733_s25, %s8776_s16, %s8776_s16, %s8777_s26  }
 0x719 PF: > { %s6761_s15 = sand.u32 1, %s8739_s30   ;;  %p12614_p3 = scmp.ne.s32.totalorder %s12162_s21, 0 }
 0x71a   : > { %p12615_p9 = scmp.ge.s32.totalorder %s8751_s12, 2  ;;  %s6762_s19 = scalar_lea.sflag [#allocation4], %s6761_s15 }
 0x71c   : > { %p8337_p13 = pnand %p12615_p9, %p12614_p3 }
 0x71e   : > { %8734 = dma.done.wait (!%p8337_p13), %s6762_s19, 256  }
 0x71f   : > { %8736 = vsyncadd (!%p8337_p13), %s6762_s19, 4294967040  ;;  %p26_p0 = scmp.ge.s32.totalorder %s9048_s27, 4   ;;  %s12616_s30 = smov %s8743_s10 }
 0x720   : > { %s12617_s10 = smov %s8747_s11  ;;  %s12618_s11 = smov %s9059_s24 }
 0x721   : > { %s12619_s12 = smov %s9048_s27  ;;  %28 = sbr.rel (!%p26_p0) target bundleno = 13 (0xd), region = 134 }
 0x728   :  { %6767 = vsyncpa [#allocation3], 1 }
 0x729   :  { %6769 = vsyncpa [#allocation3 + $0x1], 1 }
 0x72a   :  { %6770 = vsyncpa [#allocation6], 1 }
 0x72b   :  { %6771 = vsyncpa [#allocation9], 1 }
 0x72c   :  { %6772 = vsyncpa [#allocation12], 1 }
 0x72d   :  { %6773 = vsyncpa [#allocation15], 1 }
 0x72e   :  { %6774 = vsyncpa [#allocation4], 1 }
 0x72f   :  { %6776 = vsyncpa [#allocation4 + $0x1], 1 }

</bundles_post_ra>
